<compile_context>
chip_gen: v5e
topology: v5e:2x2
jax: 0.10.0
libtpu: 0.0.40
codegen_flags: <defaults>
</compile_context>

<pallas_src>
import functools

import jax
import jax.numpy as jnp
import numpy as np
from jax.experimental import pallas as pl
from jax.experimental.pallas import tpu as pltpu


def _se_kernel(x_ref, w1_ref, b1_ref, w2_ref, b2_ref, o_ref, *, inv_hw):
    # x_ref: (bt, C, HWp) f32, spatial (HWp) on the lane axis (padded lanes are 0).
    x = x_ref[...]

    # Squeeze: global average pool over spatial dim as sum * (1/HW); padded lanes
    # contribute 0 so the mean over the true HW is exact.
    y = jnp.sum(x, axis=2) * inv_hw                                    # (bt, C)

    # Excite: fc1 -> ReLU -> fc2 -> sigmoid (tiny MXU matmuls + EUP sigmoid).
    h = jnp.dot(y, w1_ref[...], preferred_element_type=jnp.float32) + b1_ref[...]
    h = jnp.maximum(h, 0.0)                                            # (bt, Cr)
    s = jnp.dot(h, w2_ref[...], preferred_element_type=jnp.float32) + b2_ref[...]
    s = jax.nn.sigmoid(s)                                              # (bt, C)

    # Scale: broadcast per-(batch, channel) gate across spatial lanes.
    o_ref[...] = x * s[:, :, None]


def _vmem_capacity_bytes():
    """Per-TensorCore physical VMEM (128 MiB v5e/v6e, 64 MiB v7x)."""
    try:
        return int(pltpu.get_tpu_info().vmem_capacity_bytes)
    except Exception:
        return 64 << 20  # v7x has the smallest VMEM; conservative fallback


def _const_spec(shape):
    """BlockSpec for a resident constant (weights/biases): constant index_map,
    single buffer (no double-buffering of data that never changes)."""
    ndim = len(shape)
    idx = lambda i, _n=ndim: (0,) * _n
    try:
        return pl.BlockSpec(shape, idx, pipeline_mode=pl.Buffered(1))
    except TypeError:  # older Pallas without pipeline_mode: fall back silently
        return pl.BlockSpec(shape, idx)


def _pick_bt(batch, bt_cap):
    """Largest batch tile (divisor of `batch`, <= bt_cap) preferring:
    >=2 grid steps (pipelining) > even grid (v7x megacore) > bt % 8 == 0
    (sublane-aligned matmul M) > largest bt (fewest ~0.35us grid steps)."""
    bt_cap = max(1, bt_cap)
    divs = [d for d in range(1, batch + 1) if batch % d == 0 and d <= bt_cap]
    if not divs:
        return 1

    def score(d):
        g = batch // d
        return (
            g >= 2 or batch == 1,     # keep >=2 steps so auto-pipeline overlaps DMA
            g % 2 == 0 or batch == 1,  # even grid -> both v7x TCs equally loaded
            d % 8 == 0,                # sublane-aligned M for the tiny MXU matmuls
            d,                         # otherwise: biggest block
        )

    return max(divs, key=score)


def se_block(x_nchw, w1, b1, w2, b2):
    """x_nchw: (B, C, H, W) f32. w1: (Cr, C), b1: (Cr,), w2: (C, Cr), b2: (C,)
    (PyTorch nn.Linear weight layout: (out_features, in_features))."""
    B, C, H, W = x_nchw.shape
    Cr = w1.shape[0]
    HW = H * W
    HWp = ((HW + 127) // 128) * 128  # lane-dense stores: pad spatial to mult of 128

    x_flat = x_nchw.reshape(B, C, HW)  # free reshape; HW becomes the lane axis
    if HWp != HW:
        x_flat = jnp.pad(x_flat, ((0, 0), (0, 0), (0, HWp - HW)))

    # Transpose weights so the kernel does y @ W_t (== y @ W.T + b in PyTorch).
    w1_t = jnp.transpose(w1)            # (C, Cr)
    w2_t = jnp.transpose(w2)            # (Cr, C)
    b1_2d = b1.reshape(1, Cr)
    b2_2d = b2.reshape(1, C)

    # ---- generation-aware tile / VMEM budgeting ----------------------------
    vmem_cap = _vmem_capacity_bytes()            # 128 MiB (v5e/v6e) / 64 MiB (v7x)
    budget_total = int(vmem_cap * 0.625)         # 80 MiB / 40 MiB for pipeline bufs
    slab_bytes = C * HWp * 4                     # one batch row of x (== of out)
    per_block_cap = max(1, budget_total // 4)    # 2 input + 2 output buffers
    bt = _pick_bt(B, per_block_cap // slab_bytes)
    grid = (B // bt,)

    weight_bytes = (2 * C * Cr + C + Cr) * 4
    needed_bytes = 4 * bt * slab_bytes + weight_bytes + (2 << 20)  # + headroom
    vmem_limit = int(min(vmem_cap - (2 << 20), max(budget_total, needed_bytes)))
    # TODO(synk): if even a bt=1 slab (4*C*HWp*4 bytes) exceeds physical VMEM,
    # tile HW on a second grid axis (sum-accumulate pass + gated-scale pass).

    cost = pl.CostEstimate(
        flops=int(4 * B * C * Cr + 2 * B * C * HWp),   # matmuls + mean/scale
        transcendentals=int(B * C),                    # sigmoid
        bytes_accessed=int(2 * B * C * HWp * 4 + weight_bytes),
    )

    out_flat = pl.pallas_call(
        functools.partial(_se_kernel, inv_hw=1.0 / HW),
        out_shape=jax.ShapeDtypeStruct((B, C, HWp), jnp.float32),
        grid=grid,
        in_specs=[
            pl.BlockSpec((bt, C, HWp), lambda i: (i, 0, 0)),  # x: one batch tile/step
            _const_spec((C, Cr)),                             # resident weights/biases
            _const_spec((1, Cr)),
            _const_spec((Cr, C)),
            _const_spec((1, C)),
        ],
        out_specs=pl.BlockSpec((bt, C, HWp), lambda i: (i, 0, 0)),
        compiler_params=pltpu.CompilerParams(
            dimension_semantics=("parallel",),      # megacore sharding on v7x
            vmem_limit_bytes=vmem_limit,            # unlock large blocks per gen
        ),
        cost_estimate=cost,
    )(x_flat, w1_t, b1_2d, w2_t, b2_2d)

    if HWp != HW:
        out_flat = out_flat[:, :, :HW]
    return out_flat.reshape(B, C, H, W)


def _reference(x, w1, b1, w2, b2):
    B, C, H, W = x.shape
    y = x.reshape(B, C, -1).mean(axis=2)
    y = jnp.maximum(y @ w1.T + b1, 0.0)
    y = jax.nn.sigmoid(y @ w2.T + b2)
    return x * y[:, :, None, None]


if __name__ == "__main__":
    # Shapes consistent with the module (in_channels >= reduction=16). HW=256 is a
    # multiple of 128 (lane-dense); B=16 lets the heuristic pick bt=8 -> grid=(2,)
    # (even, >=2 steps, sublane-aligned matmul M).
    B, C, H, W = 16, 128, 16, 16
    reduction = 16
    Cr = C // reduction  # 8

    key = jax.random.PRNGKey(0)
    kx, kw1, kb1, kw2, kb2 = jax.random.split(key, 5)

    x = jax.random.normal(kx, (B, C, H, W), dtype=jnp.float32)
    # Deterministic param init (PyTorch Linear-style uniform bounds).
    lim1 = 1.0 / np.sqrt(C)
    lim2 = 1.0 / np.sqrt(Cr)
    w1 = jax.random.uniform(kw1, (Cr, C), minval=-lim1, maxval=lim1, dtype=jnp.float32)
    b1 = jax.random.uniform(kb1, (Cr,), minval=-lim1, maxval=lim1, dtype=jnp.float32)
    w2 = jax.random.uniform(kw2, (C, Cr), minval=-lim2, maxval=lim2, dtype=jnp.float32)
    b2 = jax.random.uniform(kb2, (C,), minval=-lim2, maxval=lim2, dtype=jnp.float32)

    out = jax.block_until_ready(se_block(x, w1, b1, w2, b2))
    ref = jax.block_until_ready(_reference(x, w1, b1, w2, b2))
    np.testing.assert_allclose(np.asarray(out), np.asarray(ref), rtol=1e-5, atol=1e-5)

    print("KERNEL_OK")
</pallas_src>

<mosaic_0001>
module attributes {stable_mosaic.version = 11 : i64} {
  func.func @_se_kernel(%arg0: i32, %arg1: memref<8x128x256xf32, #tpu.memory_space<vmem>>, %arg2: memref<128x8xf32, #tpu.memory_space<vmem>>, %arg3: memref<1x8xf32, #tpu.memory_space<vmem>>, %arg4: memref<8x128xf32, #tpu.memory_space<vmem>>, %arg5: memref<1x128xf32, #tpu.memory_space<vmem>>, %arg6: memref<8x128x256xf32, #tpu.memory_space<vmem>>) attributes {dimension_semantics = [#tpu.dimension_semantics<parallel>], iteration_bounds = array<i64: 2>, scalar_prefetch = 0 : i64, scratch_operands = 0 : i64, tpu.core_type = #tpu.core_type<tc>, window_params = [{transform_indices = @transform_0, window_bounds = array<i64: 8, 128, 256>}, {pipeline_mode = #tpu.pipeline_mode<synchronous>, transform_indices = @transform_1, window_bounds = array<i64: 128, 8>}, {pipeline_mode = #tpu.pipeline_mode<synchronous>, transform_indices = @transform_2, window_bounds = array<i64: 1, 8>}, {pipeline_mode = #tpu.pipeline_mode<synchronous>, transform_indices = @transform_3, window_bounds = array<i64: 8, 128>}, {pipeline_mode = #tpu.pipeline_mode<synchronous>, transform_indices = @transform_4, window_bounds = array<i64: 1, 128>}, {transform_indices = @transform_5, window_bounds = array<i64: 8, 128, 256>}]} {
    %c0 = arith.constant 0 : index
    %c0_0 = arith.constant 0 : index
    %c0_1 = arith.constant 0 : index
    %0 = vector.load %arg1[%c0, %c0_0, %c0_1] : memref<8x128x256xf32, #tpu.memory_space<vmem>>, vector<8x128x256xf32>
    %cst = arith.constant dense<0.000000e+00> : vector<8x128xf32>
    %1 = vector.multi_reduction <add>, %0, %cst [2] : vector<8x128x256xf32> to vector<8x128xf32>
    %cst_2 = arith.constant 3.906250e-03 : f32
    %2 = vector.broadcast %cst_2 : f32 to vector<8x128xf32>
    %3 = arith.mulf %1, %2 : vector<8x128xf32>
    %c0_3 = arith.constant 0 : index
    %c0_4 = arith.constant 0 : index
    %4 = vector.load %arg2[%c0_3, %c0_4] : memref<128x8xf32, #tpu.memory_space<vmem>>, vector<128x8xf32>
    %cst_5 = arith.constant dense<0.000000e+00> : vector<8x8xf32>
    %5 = tpu.matmul %3, %4, %cst_5 {dimension_numbers = #tpu.dot_dimension_numbers<[1], [0], [0], [1], [0, 0, 1, 1], [], []>} : vector<8x128xf32>, vector<128x8xf32>, vector<8x8xf32> -> vector<8x8xf32>
    %c0_6 = arith.constant 0 : index
    %c0_7 = arith.constant 0 : index
    %6 = vector.load %arg3[%c0_6, %c0_7] : memref<1x8xf32, #tpu.memory_space<vmem>>, vector<1x8xf32>
    %7 = vector.broadcast %6 : vector<1x8xf32> to vector<8x8xf32>
    %8 = arith.addf %5, %7 : vector<8x8xf32>
    %cst_8 = arith.constant 0.000000e+00 : f32
    %9 = vector.broadcast %cst_8 : f32 to vector<8x8xf32>
    %10 = arith.maximumf %8, %9 : vector<8x8xf32>
    %c0_9 = arith.constant 0 : index
    %c0_10 = arith.constant 0 : index
    %11 = vector.load %arg4[%c0_9, %c0_10] : memref<8x128xf32, #tpu.memory_space<vmem>>, vector<8x128xf32>
    %cst_11 = arith.constant dense<0.000000e+00> : vector<8x128xf32>
    %12 = tpu.matmul %10, %11, %cst_11 {dimension_numbers = #tpu.dot_dimension_numbers<[1], [0], [0], [1], [0, 0, 1, 1], [], []>} : vector<8x8xf32>, vector<8x128xf32>, vector<8x128xf32> -> vector<8x128xf32>
    %c0_12 = arith.constant 0 : index
    %c0_13 = arith.constant 0 : index
    %13 = vector.load %arg5[%c0_12, %c0_13] : memref<1x128xf32, #tpu.memory_space<vmem>>, vector<1x128xf32>
    %14 = vector.broadcast %13 : vector<1x128xf32> to vector<8x128xf32>
    %15 = arith.addf %12, %14 : vector<8x128xf32>
    %16 = arith.negf %15 : vector<8x128xf32>
    %17 = math.exp %16 : vector<8x128xf32>
    %cst_14 = arith.constant 1.000000e+00 : f32
    %18 = vector.broadcast %cst_14 : f32 to vector<8x128xf32>
    %19 = arith.addf %18, %17 : vector<8x128xf32>
    %20 = arith.divf %18, %19 : vector<8x128xf32>
    %21 = vector.shape_cast %20 : vector<8x128xf32> to vector<8x128x1xf32>
    %22 = vector.broadcast %21 : vector<8x128x1xf32> to vector<8x128x256xf32>
    %23 = arith.mulf %0, %22 : vector<8x128x256xf32>
    %c0_15 = arith.constant 0 : index
    %c0_16 = arith.constant 0 : index
    %c0_17 = arith.constant 0 : index
    %24 = vector.load %arg6[%c0_15, %c0_16, %c0_17] : memref<8x128x256xf32, #tpu.memory_space<vmem>>, vector<8x128x256xf32>
    tpu.vector_store %arg6[%c0_15, %c0_16, %c0_17], %23 {strides = array<i32>} : memref<8x128x256xf32, #tpu.memory_space<vmem>>, vector<8x128x256xf32>,
    return
  }
  func.func @transform_0(%arg0: i32) -> (i32, i32, i32) {
    %c0_i32 = arith.constant 0 : i32
    %c0_i32_0 = arith.constant 0 : i32
    %c0_i32_1 = arith.constant 0 : i32
    return %arg0, %c0_i32, %c0_i32_0 : i32, i32, i32
  }
  func.func @transform_1(%arg0: i32) -> (i32, i32) {
    %c0_i32 = arith.constant 0 : i32
    %c0_i32_0 = arith.constant 0 : i32
    %c0_i32_1 = arith.constant 0 : i32
    return %c0_i32, %c0_i32_0 : i32, i32
  }
  func.func @transform_2(%arg0: i32) -> (i32, i32) {
    %c0_i32 = arith.constant 0 : i32
    %c0_i32_0 = arith.constant 0 : i32
    %c0_i32_1 = arith.constant 0 : i32
    return %c0_i32, %c0_i32_0 : i32, i32
  }
  func.func @transform_3(%arg0: i32) -> (i32, i32) {
    %c0_i32 = arith.constant 0 : i32
    %c0_i32_0 = arith.constant 0 : i32
    %c0_i32_1 = arith.constant 0 : i32
    return %c0_i32, %c0_i32_0 : i32, i32
  }
  func.func @transform_4(%arg0: i32) -> (i32, i32) {
    %c0_i32 = arith.constant 0 : i32
    %c0_i32_0 = arith.constant 0 : i32
    %c0_i32_1 = arith.constant 0 : i32
    return %c0_i32, %c0_i32_0 : i32, i32
  }
  func.func @transform_5(%arg0: i32) -> (i32, i32, i32) {
    %c0_i32 = arith.constant 0 : i32
    %c0_i32_0 = arith.constant 0 : i32
    %c0_i32_1 = arith.constant 0 : i32
    return %arg0, %c0_i32, %c0_i32_0 : i32, i32, i32
  }
}

</mosaic_0001>

<bundles_post_ra>
// kernel: tpu_custom_call.1
= control target key start
LH: loop header
LB: loop body
LE: loop exit
PB: predicated region body
PF: predicated region fallthrough
CT: control target
= control target key end

     0   :  { %10 = vsyncpa [#allocation3], 0  ;;  %s5477_s0 = inlined_call_operand.hbm [shape: f32[16,128,256], index: 0, kind: input, shape index: {}]   ;;  %s5478_s1 = inlined_call_operand.vmem [shape: f32[128,8], index: 1, kind: input, shape index: {}]   ;;  %s5479_s2 = inlined_call_operand.hbm [shape: f32[1,8], index: 2, kind: input, shape index: {}]   ;;  %s5480_s3 = inlined_call_operand.hbm [shape: f32[8,128], index: 3, kind: input, shape index: {}]   ;;  %s5481_s4 = inlined_call_operand.hbm [shape: f32[1,128], index: 4, kind: input, shape index: {}]   ;;  %s5482_s5 = inlined_call_operand.hbm [shape: f32[16,128,256], index: 5, kind: output, shape index: {}]  }
   0x1   :  { %12 = vsyncpa [#allocation3 + $0x1], 0 }
   0x2   :  { %13 = vsyncpa [#allocation6], 0 }
   0x3   :  { %14 = vsyncpa [#allocation9], 0 }
   0x4   :  { %15 = vsyncpa [#allocation4], 0 }
   0x5   :  { %17 = vsyncpa [#allocation4 + $0x1], 0  ;;  %s3703_s18 = smov 0   ;;  %s3705_s19 = smov 0  }
   0x6   :  { %s3707_s20 = smov 0   ;;  %s3709_s21 = smov 0  }
   0x7 LB: > { %s3724_s22 = sadd.s32 4294967295, %s3664_s21   ;;  %s2979_s23 = sadd.s32 4294967294, %s3664_s21   ;;  %s3664_s21 = sphi %s3709_s21, %s5535_s21   ;;  %s3660_s20 = sphi %s3707_s20, %s5534_s20   ;;  %s3656_s19 = sphi %s3705_s19, %s5533_s19   ;;  %s3652_s18 = sphi %s3703_s18, %s5532_s18  }
   0x8   : > { %p43_p0 = scmp.ne.s32.totalorder %s3656_s19, %s3652_s18  ;;  %p44_p1 = scmp.eq.s32.totalorder %s3724_s22, 0 }
   0x9   : > { %p151_p2 = scmp.eq.s32.totalorder %s3724_s22, 1  ;;  %p157_p3 = scmp.eq.s32.totalorder %s2979_s23, 1 }
   0xa   : > { %p3733_p4 = por %p44_p1, %p43_p0  ;;  %p2980_p5 = scmp.ge.s32.totalorder %s3664_s21, 1 }
   0xb   : > { %p3738_p6 = por %p157_p3, %p43_p0  ;;  %p164_p7 = scmp.lt.s32.totalorder %s3664_s21, 3 }
   0xc   : > { %s179_s28 = sshll.u32 %s5479_s2, 4  ;;  %s3666_s30 = smov [#allocation5]   ;;  %s180_s28 = int_to_ptr.hbm [resolvable:$true] %s179_s28 }
   0xd   : > { %p3746_p8 = pnand %p2980_p5, %p164_p7  ;;  %s181_s6 = sshll.u32 %s3666_s30, 4  ;;  %s182_s6 = int_to_ptr.vmem [resolvable:$true] %s181_s6 }
   0xe   : > { %s191_s9 = sshll.u32 %s5480_s3, 4  ;;  %s203_s12 = sshll.u32 %s5481_s4, 4  ;;  %s192_s9 = int_to_ptr.hbm [resolvable:$true] %s191_s9  ;;  %s204_s12 = int_to_ptr.hbm [resolvable:$true] %s203_s12 }
   0xf   : > { %p3023_p10 = pneg %p3746_p8  ;;  %s3667_s13 = smov [#allocation7]  }
  0x10   : > { %s193_s14 = sshll.u32 %s3667_s13, 4  ;;  %s3668_s15 = smov [#allocation8]   ;;  %s194_s14 = int_to_ptr.vmem [resolvable:$true] %s193_s14 }
  0x11   : > { %p3024_p11 = pnand %p3023_p10, %p44_p1  ;;  %s205_s16 = sshll.u32 %s3668_s15, 4  ;;  %s206_s16 = int_to_ptr.vmem [resolvable:$true] %s205_s16 }
  0x12   : > { %s3762_s17 = sadd.s32 1, %s3664_s21   ;;  %s30_s26 = sadd.s32 1, %s3660_s20 }
  0x13   : > { %3026 = dma.hbm_to_vmem [thread:$0]  (!%p3024_p11), %s180_s28, 16, %s182_s6, [#allocation6]  }
  0x14   : > { %3029 = dma.hbm_to_vmem [thread:$0]  (!%p3024_p11), %s192_s9, 128, %s194_s14, [#allocation6]  }
  0x15   : > { %3032 = dma.hbm_to_vmem [thread:$0]  (!%p3024_p11), %s204_s12, 16, %s206_s16, [#allocation9]  }
  0x16   : > { %s27_s23 = ssub.s32 %s3664_s21, %s3762_s17  ;;  %p37_p13 = scmp.ne.s32.totalorder %s3660_s20, %s3656_s19 }
  0x17   : > { %p28_p12 = scmp.eq.s32.totalorder %s27_s23, 0  ;;  %p38_p0 = scmp.eq.s32.totalorder %s3664_s21, 0 }
  0x18   : > { %p3044_p3 = scmp.lt.s32.totalorder %s3664_s21, 2  ;;  %p3776_p7 = por %p151_p2, %p37_p13 }
  0x19   : > { %s3772_s27 = scalar_select %p28_p12, %s3660_s20, %s30_s26  }
  0x1a   : > { %p39_p5 = por %p38_p0, %p37_p13  ;;  %s216_s30 = sand.u32 1, %s3660_s20  }
  0x1b   : > { %s3004_s6 = sshll.u32 %s3664_s21, 11  ;;  %s2985_s7 = sshll.u32 %s216_s30, 11 }
  0x1c   : > { %s226_s10 = scalar_lea.hbm %s5477_s0, %s3004_s6  ;;  %s220_s12 = scalar_lea.vmem [#allocation2], %s2985_s7 }
  0x1d   : > { %s227_s11 = sshll.u32 %s226_s10, 4  ;;  %s229_s13 = sshll.u32 %s220_s12, 4  ;;  %s228_s11 = int_to_ptr.hbm [resolvable:$true] %s227_s11  ;;  %s230_s13 = int_to_ptr.vmem [resolvable:$true] %s229_s13 }
  0x1e   : > { %p3787_p10 = pnand %p3044_p3, %p39_p5  ;;  %s217_s15 = scalar_lea.sflag [#allocation3], %s216_s30 }
  0x1f   : > { %s3560_s16 = sshra.s32 %s228_s11, 4  ;;  %s3567_s7 = scalar_lea.hbm %s5477_s0, 4096  ;;  %s3561_s16 = int_to_ptr.hbm [resolvable:$true] %s3560_s16 }
  0x20   : > { %s3562_s23 = scalar_lea.hbm %s3561_s16, 2048  ;;  %p3564_p11 = pneg %p3787_p10 }
  0x21   : > { %p3563_p2 = scmp.ne.s32.totalorder %s3561_s16, %s3562_s23  ;;  %p3568_p0 = scmp.lt.s32.totalorder %s3561_s16, %s5477_s0 }
  0x22   : > { %p3569_p3 = scmp.lt.s32.totalorder %s3567_s7, %s3562_s23 }
  0x23   : > { %p3565_p12 = pnand %p3564_p11, %p3563_p2 }
  0x24   : > { %p3570_p5 = por %p3569_p3, %p3568_p0 }
  0x25   : > { %p3566_p13 = pneg %p3565_p12 }
  0x27   : > { %p3571_p9 = pnand %p3570_p5, %p3566_p13 }
  0x29   : > { %3574 = shalt.err (!%p3571_p9)
}
  0x2a   : > { %s3669_s30 = smov 256   ;;  %s3670_s10 = smov 16  }
  0x2b   : > { %3036 = dma.hbm_to_vmem [thread:$0]  (!%p3787_p10), %s228_s11, 32768, %s230_s13, %s217_s15, %s3669_s30, %s3669_s30, %s3670_s10  }
  0x2c   : > { %241 = sbr.rel (%p3746_p8) target bundleno = 1730 (0x6c2), region = 40 }
  0x31   : > { %s3804_s12 = sand.u32 1, %s3656_s19  }
  0x32   : > { %s2990_s16 = sshll.u32 %s3804_s12, 11  ;;  %s244_s23 = scalar_lea.sflag [#allocation3], %s3804_s12 }
  0x33   : > { %s3810_s26 = scalar_lea.vmem [#allocation2], %s2990_s16 }
  0x34   : > { %3635 = dma.done.wait (%p3733_p4), %s244_s23, 32768  }
  0x35   : > { %3637 = vsyncadd (%p3733_p4), %s244_s23, 4294934528 }
  0x36   : > { %3639 = dma.done.wait (%p44_p1), [#allocation6], 144  }
  0x37   : > { %3641 = vsyncadd (%p44_p1), [#allocation6], 4294967152 }
  0x38   : > { %3643 = dma.done.wait (%p44_p1), [#allocation9], 16  }
  0x39   : > { %3645 = vsyncadd (%p44_p1), [#allocation9], 4294967280  ;;  %v296_v0 = vld [vmem:[%s3810_s26 + $0x20] sm:$0xff]  ;;  %v297_v1 = vld [vmem:[%s3810_s26 + $0x28] sm:$0xff]  ;;  %vm1213_vm0 = vcmask 130112   ;;  %vm1217_vm1 = vcmask 195712  }
  0x3a   : > { %v292_v2 = vld [vmem:[%s3810_s26] sm:$0xff]  ;;  %v554_v3 = vadd.f32 %v297_v1, %v296_v0  ;;  %v293_v4 = vld [vmem:[%s3810_s26 + $0x8] sm:$0xff]  ;;  %v298_v9 = vld [vmem:[%s3810_s26 + $0x30] sm:$0xff]  ;;  %vm1221_vm2 = vcmask 261312   ;;  %vm1225_vm3 = vcmask 326912   ;;  %vm1229_vm4 = vcmask 392512  }
  0x3b   : > { %v300_v5 = vld [vmem:[%s3810_s26 + $0x40] sm:$0xff]  ;;  %v301_v6 = vld [vmem:[%s3810_s26 + $0x48] sm:$0xff]  ;;  %v548_v7 = vadd.f32 %v293_v4, %v292_v2  ;;  %v299_v10 = vld [vmem:[%s3810_s26 + $0x38] sm:$0xff]  ;;  %vm1233_vm5 = vcmask 458112   ;;  %vm1237_vm6 = vcmask 523712   ;;  %vm1241_vm7 = vcmask 589312  }
  0x3c   : > { %v560_v8 = vadd.f32 %v301_v6, %v300_v5  ;;  %555 = vadd.xlane.f32.xlu1 %v554_v3  ;;  %v294_v11 = vld [vmem:[%s3810_s26 + $0x10] sm:$0xff]  ;;  %v295_v12 = vld [vmem:[%s3810_s26 + $0x18] sm:$0xff]  ;;  %v557_v15 = vadd.f32 %v299_v10, %v298_v9  ;;  %v304_v20 = vld [vmem:[%s3810_s26 + $0x60] sm:$0xff]  ;;  %vm1245_vm8 = vcmask 654912   ;;  %vm5485_vm9 = vcmask 720512   ;;  %s4704_s6 = scalar_lea.vmem [#allocation10], %s2990_s16 }
  0x3d   : > { %549 = vadd.xlane.f32.xlu0 %v548_v7  ;;  %v302_v13 = vld [vmem:[%s3810_s26 + $0x50] sm:$0xff]  ;;  %v303_v14 = vld [vmem:[%s3810_s26 + $0x58] sm:$0xff]  ;;  %v551_v16 = vadd.f32 %v295_v12, %v294_v11  ;;  %v305_v21 = vld [vmem:[%s3810_s26 + $0x68] sm:$0xff]  ;;  %vm5484_vm10 = vcmask 786112   ;;  %vm5486_vm11 = vcmask 851712   ;;  %vm1261_vm12 = vcmask 917312  }
  0x3e   : > { %561 = vadd.xlane.f32.xlu2 %v560_v8  ;;  %v563_v17 = vadd.f32 %v303_v14, %v302_v13  ;;  %v306_v18 = vld [vmem:[%s3810_s26 + $0x70] sm:$0xff]  ;;  %v307_v19 = vld [vmem:[%s3810_s26 + $0x78] sm:$0xff]  ;;  %v308_v22 = vld [vmem:[%s3810_s26 + $0x80] sm:$0xff]  ;;  %v566_v25 = vadd.f32 %v305_v21, %v304_v20  ;;  %vm1265_vm13 = vcmask 982912   ;;  %vm1269_vm14 = vcmask 1048512   ;;  %s3006_s16 = sshll.u32 %s3724_s22, 11 }
  0x3f   : > { %v309_v23 = vld [vmem:[%s3810_s26 + $0x88] sm:$0xff]  ;;  %v569_v24 = vadd.f32 %v307_v19, %v306_v18  ;;  %v312_v27 = vld [vmem:[%s3810_s26 + $0xa0] sm:$0xff]  ;;  %v310_v29 = vld [vmem:[%s3810_s26 + $0x90] sm:$0xff]  ;;  %vm1488_vm15 = vcmask 1041409   ;;  %s2873_s9 = scalar_lea.hbm %s5482_s5, %s3006_s16  ;;  %s2874_s30 = sshll.u32 %s4704_s6, 4  ;;  %s2875_s30 = int_to_ptr.vmem [resolvable:$true] %s2874_s30 }
  0x40   : > { %v572_v26 = vadd.f32 %v309_v23, %v308_v22  ;;  %v313_v28 = vld [vmem:[%s3810_s26 + $0xa8] sm:$0xff]  ;;  %v311_v30 = vld [vmem:[%s3810_s26 + $0x98] sm:$0xff]  ;;  %v314_v31 = vld [vmem:[%s3810_s26 + $0xb0] sm:$0xff]  ;;  %s2876_s10 = sshll.u32 %s2873_s9, 4  ;;  %s2861_s22 = scalar_lea.sflag [#allocation4], %s3804_s12  ;;  %s2877_s10 = int_to_ptr.hbm [resolvable:$true] %s2876_s10 }
  0x41   : > { %v315_v32 = vld [vmem:[%s3810_s26 + $0xb8] sm:$0xff]  ;;  %v578_v33 = vadd.f32 %v313_v28, %v312_v27  ;;  %v575_v34 = vadd.f32 %v311_v30, %v310_v29  ;;  %v318_v36 = vld [vmem:[%s3810_s26 + $0xd0] sm:$0xff]  ;;  %v316_v38 = vld [vmem:[%s3810_s26 + $0xc0] sm:$0xff]  ;;  %s3604_s23 = sshra.s32 %s2877_s10, 4  ;;  %s3610_s13 = scalar_lea.hbm %s5482_s5, 4096  ;;  %s3605_s23 = int_to_ptr.hbm [resolvable:$true] %s3604_s23 }
  0x42   : > { %v581_v35 = vadd.f32 %v315_v32, %v314_v31  ;;  %v319_v37 = vld [vmem:[%s3810_s26 + $0xd8] sm:$0xff]  ;;  %v317_v39 = vld [vmem:[%s3810_s26 + $0xc8] sm:$0xff]  ;;  %v320_v40 = vld [vmem:[%s3810_s26 + $0xe0] sm:$0xff]  ;;  %s3606_s24 = scalar_lea.hbm %s3605_s23, 2048  ;;  %p3611_p9 = scmp.lt.s32.totalorder %s3605_s23, %s5482_s5 }
  0x43   : > { %v321_v41 = vld [vmem:[%s3810_s26 + $0xe8] sm:$0xff]  ;;  %v587_v42 = vadd.f32 %v319_v37, %v318_v36  ;;  %v584_v43 = vadd.f32 %v317_v39, %v316_v38  ;;  %v324_v45 = vld [vmem:[%s3810_s26 + $0x100] sm:$0xff]  ;;  %v322_v47 = vld [vmem:[%s3810_s26 + $0xf0] sm:$0xff]  ;;  %p3607_p1 = scmp.ne.s32.totalorder %s3605_s23, %s3606_s24  ;;  %p3612_p10 = scmp.lt.s32.totalorder %s3610_s13, %s3606_s24 }
  0x44   : > { %558 = vadd.xlane.f32.xlu1 %v557_v15  ;;  %v590_v44 = vadd.f32 %v321_v41, %v320_v40  ;;  %v325_v46 = vld [vmem:[%s3810_s26 + $0x108] sm:$0xff]  ;;  %v323_v48 = vld [vmem:[%s3810_s26 + $0xf8] sm:$0xff]  ;;  %v326_v49 = vld [vmem:[%s3810_s26 + $0x110] sm:$0xff] }
  0x45   : > { %552 = vadd.xlane.f32.xlu0 %v551_v16  ;;  %v327_v50 = vld [vmem:[%s3810_s26 + $0x118] sm:$0xff]  ;;  %v596_v51 = vadd.f32 %v325_v46, %v324_v45  ;;  %v593_v52 = vadd.f32 %v323_v48, %v322_v47  ;;  %v330_v54 = vld [vmem:[%s3810_s26 + $0x130] sm:$0xff]  ;;  %v328_v56 = vld [vmem:[%s3810_s26 + $0x120] sm:$0xff]  ;;  %p3608_p4 = pnand %p3607_p1, %p3776_p7  ;;  %p3613_p2 = por %p3612_p10, %p3611_p9 }
  0x46   : > { %564 = vadd.xlane.f32.xlu2 %v563_v17  ;;  %v599_v53 = vadd.f32 %v327_v50, %v326_v49  ;;  %v331_v55 = vld [vmem:[%s3810_s26 + $0x138] sm:$0xff]  ;;  %v329_v57 = vld [vmem:[%s3810_s26 + $0x128] sm:$0xff]  ;;  %v332_v58 = vld [vmem:[%s3810_s26 + $0x140] sm:$0xff] }
  0x47   : > { %v333_v59 = vld [vmem:[%s3810_s26 + $0x148] sm:$0xff]  ;;  %v605_v60 = vadd.f32 %v331_v55, %v330_v54  ;;  %v602_v61 = vadd.f32 %v329_v57, %v328_v56  ;;  %v336_v63 = vld [vmem:[%s3810_s26 + $0x160] sm:$0xff]  ;;  %v334_v1 = vld [vmem:[%s3810_s26 + $0x150] sm:$0xff]  ;;  %p3609_p8 = pneg %p3608_p4 }
  0x48   : > { %v608_v62 = vadd.f32 %v333_v59, %v332_v58  ;;  %v337_v0 = vld [vmem:[%s3810_s26 + $0x168] sm:$0xff]  ;;  %v335_v2 = vld [vmem:[%s3810_s26 + $0x158] sm:$0xff]  ;;  %v338_v3 = vld [vmem:[%s3810_s26 + $0x170] sm:$0xff] }
  0x49   : > { %v339_v4 = vld [vmem:[%s3810_s26 + $0x178] sm:$0xff]  ;;  %v614_v5 = vadd.f32 %v337_v0, %v336_v63  ;;  %v611_v6 = vadd.f32 %v335_v2, %v334_v1  ;;  %v342_v8 = vld [vmem:[%s3810_s26 + $0x190] sm:$0xff]  ;;  %v340_v10 = vld [vmem:[%s3810_s26 + $0x180] sm:$0xff]  ;;  %p3614_p11 = pnand %p3613_p2, %p3609_p8 }
  0x4a   : > { %v617_v7 = vadd.f32 %v339_v4, %v338_v3  ;;  %v343_v9 = vld [vmem:[%s3810_s26 + $0x198] sm:$0xff]  ;;  %v341_v11 = vld [vmem:[%s3810_s26 + $0x188] sm:$0xff]  ;;  %v344_v12 = vld [vmem:[%s3810_s26 + $0x1a0] sm:$0xff] }
  0x4b   : > { %v345_v13 = vld [vmem:[%s3810_s26 + $0x1a8] sm:$0xff]  ;;  %v623_v14 = vadd.f32 %v343_v9, %v342_v8  ;;  %v620_v15 = vadd.f32 %v341_v11, %v340_v10  ;;  %v348_v17 = vld [vmem:[%s3810_s26 + $0x1c0] sm:$0xff]  ;;  %v346_v19 = vld [vmem:[%s3810_s26 + $0x1b0] sm:$0xff] }
  0x4c   : > { %570 = vadd.xlane.f32.xlu1 %v569_v24  ;;  %v626_v16 = vadd.f32 %v345_v13, %v344_v12  ;;  %v349_v18 = vld [vmem:[%s3810_s26 + $0x1c8] sm:$0xff]  ;;  %v347_v20 = vld [vmem:[%s3810_s26 + $0x1b8] sm:$0xff]  ;;  %v350_v21 = vld [vmem:[%s3810_s26 + $0x1d0] sm:$0xff] }
  0x4d   : > { %567 = vadd.xlane.f32.xlu0 %v566_v25  ;;  %v351_v22 = vld [vmem:[%s3810_s26 + $0x1d8] sm:$0xff]  ;;  %v632_v23 = vadd.f32 %v349_v18, %v348_v17  ;;  %v629_v24 = vadd.f32 %v347_v20, %v346_v19  ;;  %v352_v28 = vld [vmem:[%s3810_s26 + $0x1e0] sm:$0xff]  ;;  %v353_v29 = vld [vmem:[%s3810_s26 + $0x1e8] sm:$0xff] }
  0x4e   : > { %573 = vadd.xlane.f32.xlu2 %v572_v26  ;;  %v635_v25 = vadd.f32 %v351_v22, %v350_v21  ;;  %v354_v26 = vld [vmem:[%s3810_s26 + $0x1f0] sm:$0xff]  ;;  %v355_v27 = vld [vmem:[%s3810_s26 + $0x1f8] sm:$0xff]  ;;  %v356_v30 = vld [vmem:[%s3810_s26 + $0x200] sm:$0xff] }
  0x4f   : > { %v357_v31 = vld [vmem:[%s3810_s26 + $0x208] sm:$0xff]  ;;  %v641_v32 = vadd.f32 %v355_v27, %v354_v26  ;;  %v358_v37 = vld [vmem:[%s3810_s26 + $0x210] sm:$0xff]  ;;  %v359_v38 = vld [vmem:[%s3810_s26 + $0x218] sm:$0xff] }
  0x50   : > { %v361_v36 = vld [vmem:[%s3810_s26 + $0x228] sm:$0xff]  ;;  %v362_v39 = vld [vmem:[%s3810_s26 + $0x230] sm:$0xff]  ;;  %v363_v40 = vld [vmem:[%s3810_s26 + $0x238] sm:$0xff] }
  0x51   : > { %v367_v45 = vld [vmem:[%s3810_s26 + $0x258] sm:$0xff]  ;;  %v364_v46 = vld [vmem:[%s3810_s26 + $0x240] sm:$0xff]  ;;  %v365_v47 = vld [vmem:[%s3810_s26 + $0x248] sm:$0xff] }
  0x52   : > { %v368_v48 = vld [vmem:[%s3810_s26 + $0x260] sm:$0xff]  ;;  %v369_v49 = vld [vmem:[%s3810_s26 + $0x268] sm:$0xff]  ;;  %v370_v55 = vld [vmem:[%s3810_s26 + $0x270] sm:$0xff] }
  0x53   : > { %v373_v54 = vld [vmem:[%s3810_s26 + $0x288] sm:$0xff]  ;;  %v371_v56 = vld [vmem:[%s3810_s26 + $0x278] sm:$0xff]  ;;  %v374_v57 = vld [vmem:[%s3810_s26 + $0x290] sm:$0xff] }
  0x54   : > { %579 = vadd.xlane.f32.xlu1 %v578_v33  ;;  %v638_v33 = vadd.f32 %v353_v29, %v352_v28  ;;  %v375_v58 = vld [vmem:[%s3810_s26 + $0x298] sm:$0xff]  ;;  %v376_v0 = vld [vmem:[%s3810_s26 + $0x2a0] sm:$0xff]  ;;  %v377_v1 = vld [vmem:[%s3810_s26 + $0x2a8] sm:$0xff] }
  0x55   : > { %576 = vadd.xlane.f32.xlu0 %v575_v34  ;;  %v644_v34 = vadd.f32 %v357_v31, %v356_v30  ;;  %v379_v63 = vld [vmem:[%s3810_s26 + $0x2b8] sm:$0xff]  ;;  %v380_v2 = vld [vmem:[%s3810_s26 + $0x2c0] sm:$0xff]  ;;  %v381_v3 = vld [vmem:[%s3810_s26 + $0x2c8] sm:$0xff] }
  0x56   : > { %582 = vadd.xlane.f32.xlu2 %v581_v35  ;;  %v360_v35 = vld [vmem:[%s3810_s26 + $0x220] sm:$0xff]  ;;  %v385_v8 = vld [vmem:[%s3810_s26 + $0x2e8] sm:$0xff]  ;;  %v382_v9 = vld [vmem:[%s3810_s26 + $0x2d0] sm:$0xff] }
  0x57   : > { %v650_v41 = vadd.f32 %v361_v36, %v360_v35  ;;  %v383_v10 = vld [vmem:[%s3810_s26 + $0x2d8] sm:$0xff]  ;;  %v386_v11 = vld [vmem:[%s3810_s26 + $0x2f0] sm:$0xff]  ;;  %v388_v21 = vld [vmem:[%s3810_s26 + $0x300] sm:$0xff] }
  0x58   : > { %v387_v12 = vld [vmem:[%s3810_s26 + $0x2f8] sm:$0xff]  ;;  %v683_v17 = vadd.f32 %v383_v10, %v382_v9  ;;  %v390_v19 = vld [vmem:[%s3810_s26 + $0x310] sm:$0xff]  ;;  %v389_v22 = vld [vmem:[%s3810_s26 + $0x308] sm:$0xff] }
  0x59   : > { %v689_v18 = vadd.f32 %v387_v12, %v386_v11  ;;  %v391_v20 = vld [vmem:[%s3810_s26 + $0x318] sm:$0xff]  ;;  %v692_v29 = vadd.f32 %v389_v22, %v388_v21  ;;  %v396_v31 = vld [vmem:[%s3810_s26 + $0x340] sm:$0xff]  ;;  %v398_v35 = vld [vmem:[%s3810_s26 + $0x350] sm:$0xff] }
  0x5a   : > { %v695_v28 = vadd.f32 %v391_v20, %v390_v19  ;;  %v399_v36 = vld [vmem:[%s3810_s26 + $0x358] sm:$0xff]  ;;  %v421_v19 = vld [vmem:[%s3810_s26 + $0x408] sm:$0xff]  ;;  %v418_v20 = vld [vmem:[%s3810_s26 + $0x3f0] sm:$0xff] }
  0x5b   : > { %v419_v21 = vld [vmem:[%s3810_s26 + $0x3f8] sm:$0xff]  ;;  %v422_v22 = vld [vmem:[%s3810_s26 + $0x410] sm:$0xff] }
  0x5c   : > { %588 = vadd.xlane.f32.xlu1 %v587_v42  ;;  %v647_v42 = vadd.f32 %v359_v38, %v358_v37 }
  0x5d   : > { %585 = vadd.xlane.f32.xlu0 %v584_v43  ;;  %v653_v43 = vadd.f32 %v363_v40, %v362_v39 }
  0x5e   : > { %591 = vadd.xlane.f32.xlu2 %v590_v44  ;;  %v366_v44 = vld [vmem:[%s3810_s26 + $0x250] sm:$0xff] }
  0x5f   : > { %v659_v50 = vadd.f32 %v367_v45, %v366_v44  ;;  %v403_v44 = vld [vmem:[%s3810_s26 + $0x378] sm:$0xff]  ;;  %v400_v45 = vld [vmem:[%s3810_s26 + $0x360] sm:$0xff] }
  0x64   : > { %597 = vadd.xlane.f32.xlu1 %v596_v51  ;;  %v656_v51 = vadd.f32 %v365_v47, %v364_v46  ;;  %v401_v46 = vld [vmem:[%s3810_s26 + $0x368] sm:$0xff]  ;;  %v404_v47 = vld [vmem:[%s3810_s26 + $0x380] sm:$0xff] }
  0x65   : > { %594 = vadd.xlane.f32.xlu0 %v593_v52  ;;  %v662_v52 = vadd.f32 %v369_v49, %v368_v48  ;;  %v405_v48 = vld [vmem:[%s3810_s26 + $0x388] sm:$0xff] }
  0x66   : > { %600 = vadd.xlane.f32.xlu2 %v599_v53  ;;  %v372_v53 = vld [vmem:[%s3810_s26 + $0x280] sm:$0xff] }
  0x67   : > { %v668_v59 = vadd.f32 %v373_v54, %v372_v53  ;;  %v710_v53 = vadd.f32 %v401_v46, %v400_v45  ;;  %v716_v54 = vadd.f32 %v405_v48, %v404_v47  ;;  %v432_v48 = vld [vmem:[%s3810_s26 + $0x460] sm:$0xff] }
  0x6c   : > { %606 = vadd.xlane.f32.xlu1 %v605_v60  ;;  %v665_v60 = vadd.f32 %v371_v56, %v370_v55  ;;  %v408_v55 = vld [vmem:[%s3810_s26 + $0x3a0] sm:$0xff]  ;;  %v409_v56 = vld [vmem:[%s3810_s26 + $0x3a8] sm:$0xff] }
  0x6d   : > { %603 = vadd.xlane.f32.xlu0 %v602_v61  ;;  %v671_v61 = vadd.f32 %v375_v58, %v374_v57  ;;  %v406_v57 = vld [vmem:[%s3810_s26 + $0x390] sm:$0xff]  ;;  %v407_v58 = vld [vmem:[%s3810_s26 + $0x398] sm:$0xff] }
  0x6e   : > { %609 = vadd.xlane.f32.xlu2 %v608_v62  ;;  %v378_v62 = vld [vmem:[%s3810_s26 + $0x2b0] sm:$0xff] }
  0x6f   : > { %v677_v4 = vadd.f32 %v379_v63, %v378_v62 }
  0x74   : > { %615 = vadd.xlane.f32.xlu1 %v614_v5  ;;  %v674_v5 = vadd.f32 %v377_v1, %v376_v0  ;;  %v722_v0 = vadd.f32 %v409_v56, %v408_v55  ;;  %v719_v1 = vadd.f32 %v407_v58, %v406_v57  ;;  %v434_v55 = vld [vmem:[%s3810_s26 + $0x470] sm:$0xff]  ;;  %v435_v56 = vld [vmem:[%s3810_s26 + $0x478] sm:$0xff] }
  0x75   : > { %612 = vadd.xlane.f32.xlu0 %v611_v6  ;;  %v680_v6 = vadd.f32 %v381_v3, %v380_v2  ;;  %v414_v3 = vld [vmem:[%s3810_s26 + $0x3d0] sm:$0xff] }
  0x76   : > { %618 = vadd.xlane.f32.xlu2 %v617_v7  ;;  %v384_v7 = vld [vmem:[%s3810_s26 + $0x2e0] sm:$0xff] }
  0x7c   : > { %624 = vadd.xlane.f32.xlu1 %v623_v14 }
  0x7d   : > { %621 = vadd.xlane.f32.xlu0 %v620_v15 }
  0x7e   : > { %627 = vadd.xlane.f32.xlu2 %v626_v16  ;;  %v686_v16 = vadd.f32 %v385_v8, %v384_v7  ;;  %v416_v7 = vld [vmem:[%s3810_s26 + $0x3e0] sm:$0xff]  ;;  %v417_v8 = vld [vmem:[%s3810_s26 + $0x3e8] sm:$0xff] }
  0x84   : > { %633 = vadd.xlane.f32.xlu1 %v632_v23  ;;  %v392_v23 = vld [vmem:[%s3810_s26 + $0x320] sm:$0xff] }
  0x85   : > { %630 = vadd.xlane.f32.xlu0 %v629_v24  ;;  %v393_v24 = vld [vmem:[%s3810_s26 + $0x328] sm:$0xff] }
  0x86   : > { %636 = vadd.xlane.f32.xlu2 %v635_v25  ;;  %v698_v30 = vadd.f32 %v393_v24, %v392_v23  ;;  %v423_v23 = vld [vmem:[%s3810_s26 + $0x418] sm:$0xff] }
  0x8c   : > { %642 = vadd.xlane.f32.xlu1 %v641_v32  ;;  %v397_v32 = vld [vmem:[%s3810_s26 + $0x348] sm:$0xff] }
  0x8d   : > { %639 = vadd.xlane.f32.xlu0 %v638_v33  ;;  %v394_v33 = vld [vmem:[%s3810_s26 + $0x330] sm:$0xff]  ;;  %v704_v40 = vadd.f32 %v397_v32, %v396_v31  ;;  %v737_v31 = vadd.f32 %v419_v21, %v418_v20  ;;  %v743_v32 = vadd.f32 %v423_v23, %v422_v22  ;;  %v444_v20 = vld [vmem:[%s3810_s26 + $0x4c0] sm:$0xff]  ;;  %v445_v21 = vld [vmem:[%s3810_s26 + $0x4c8] sm:$0xff] }
  0x8e   : > { %645 = vadd.xlane.f32.xlu2 %v644_v34  ;;  %v395_v34 = vld [vmem:[%s3810_s26 + $0x338] sm:$0xff]  ;;  %v442_v22 = vld [vmem:[%s3810_s26 + $0x4b0] sm:$0xff] }
  0x8f   : > { %v443_v23 = vld [vmem:[%s3810_s26 + $0x4b8] sm:$0xff] }
  0x94   : > { %651 = vadd.xlane.f32.xlu1 %v650_v41  ;;  %v701_v41 = vadd.f32 %v395_v34, %v394_v33  ;;  %v426_v33 = vld [vmem:[%s3810_s26 + $0x430] sm:$0xff]  ;;  %v427_v34 = vld [vmem:[%s3810_s26 + $0x438] sm:$0xff] }
  0x95   : > { %648 = vadd.xlane.f32.xlu0 %v647_v42  ;;  %v707_v42 = vadd.f32 %v399_v36, %v398_v35  ;;  %v424_v35 = vld [vmem:[%s3810_s26 + $0x420] sm:$0xff]  ;;  %v425_v36 = vld [vmem:[%s3810_s26 + $0x428] sm:$0xff]  ;;  %v749_v45 = vadd.f32 %v427_v34, %v426_v33 }
  0x96   : > { %654 = vadd.xlane.f32.xlu2 %v653_v43  ;;  %v402_v43 = vld [vmem:[%s3810_s26 + $0x370] sm:$0xff]  ;;  %v746_v46 = vadd.f32 %v425_v36, %v424_v35  ;;  %v776_v35 = vadd.f32 %v445_v21, %v444_v20  ;;  %v773_v36 = vadd.f32 %v443_v23, %v442_v22  ;;  %v463_v23 = vld [vmem:[%s3810_s26 + $0x558] sm:$0xff] }
  0x97   : > { %v462_v22 = vld [vmem:[%s3810_s26 + $0x550] sm:$0xff] }
  0x9c   : > { %660 = vadd.xlane.f32.xlu1 %v659_v50 }
  0x9d   : > { %657 = vadd.xlane.f32.xlu0 %v656_v51 }
  0x9e   : > { %663 = vadd.xlane.f32.xlu2 %v662_v52  ;;  %v713_v52 = vadd.f32 %v403_v44, %v402_v43 }
  0xa4   : > { %669 = vadd.xlane.f32.xlu1 %v668_v59  ;;  %v410_v59 = vld [vmem:[%s3810_s26 + $0x3b0] sm:$0xff] }
  0xa5   : > { %666 = vadd.xlane.f32.xlu0 %v665_v60  ;;  %v411_v60 = vld [vmem:[%s3810_s26 + $0x3b8] sm:$0xff] }
  0xa6   : > { %672 = vadd.xlane.f32.xlu2 %v671_v61  ;;  %v725_v2 = vadd.f32 %v411_v60, %v410_v59 }
  0xac   : > { %678 = vadd.xlane.f32.xlu1 %v677_v4  ;;  %v415_v4 = vld [vmem:[%s3810_s26 + $0x3d8] sm:$0xff] }
  0xad   : > { %675 = vadd.xlane.f32.xlu0 %v674_v5  ;;  %v412_v5 = vld [vmem:[%s3810_s26 + $0x3c0] sm:$0xff]  ;;  %v731_v12 = vadd.f32 %v415_v4, %v414_v3  ;;  %v439_v3 = vld [vmem:[%s3810_s26 + $0x498] sm:$0xff] }
  0xae   : > { %681 = vadd.xlane.f32.xlu2 %v680_v6  ;;  %v413_v6 = vld [vmem:[%s3810_s26 + $0x3c8] sm:$0xff]  ;;  %v436_v4 = vld [vmem:[%s3810_s26 + $0x480] sm:$0xff] }
  0xaf   : > { %v3920_v13 = vpop.xlane.xlu1 %555 }
  0xb0   : > { %v3922_v14 = vpop.xlane.xlu0 %549 }
  0xb1   : > { %v3924_v15 = vpop.xlane.xlu2 %561 }
  0xb4   : > { %687 = vadd.xlane.f32.xlu1 %v686_v16  ;;  %v728_v16 = vadd.f32 %v413_v6, %v412_v5  ;;  %v437_v5 = vld [vmem:[%s3810_s26 + $0x488] sm:$0xff]  ;;  %v440_v6 = vld [vmem:[%s3810_s26 + $0x4a0] sm:$0xff] }
  0xb5   : > { %684 = vadd.xlane.f32.xlu0 %v683_v17  ;;  %v734_v17 = vadd.f32 %v417_v8, %v416_v7  ;;  %v441_v7 = vld [vmem:[%s3810_s26 + $0x4a8] sm:$0xff] }
  0xb6   : > { %690 = vadd.xlane.f32.xlu2 %v689_v18  ;;  %v420_v18 = vld [vmem:[%s3810_s26 + $0x400] sm:$0xff] }
  0xb7   : > { %v3932_v25 = vpop.xlane.xlu1 %558 }
  0xb8   : > { %v3934_v26 = vpop.xlane.xlu0 %552 }
  0xb9   : > { %v3936_v27 = vpop.xlane.xlu2 %564 }
  0xbc   : > { %696 = vadd.xlane.f32.xlu1 %v695_v28 }
  0xbd   : > { %693 = vadd.xlane.f32.xlu0 %v692_v29 }
  0xbe   : > { %699 = vadd.xlane.f32.xlu2 %v698_v30  ;;  %v740_v30 = vadd.f32 %v421_v19, %v420_v18  ;;  %v764_v18 = vadd.f32 %v437_v5, %v436_v4  ;;  %v770_v19 = vadd.f32 %v441_v7, %v440_v6  ;;  %v455_v4 = vld [vmem:[%s3810_s26 + $0x518] sm:$0xff]  ;;  %v458_v5 = vld [vmem:[%s3810_s26 + $0x530] sm:$0xff] }
  0xbf   : > { %v3944_v37 = vpop.xlane.xlu1 %570  ;;  %v459_v6 = vld [vmem:[%s3810_s26 + $0x538] sm:$0xff] }
  0xc0   : > { %v3946_v38 = vpop.xlane.xlu0 %567  ;;  %v797_v21 = vadd.f32 %v459_v6, %v458_v5 }
  0xc1   : > { %v3948_v39 = vpop.xlane.xlu2 %573 }
  0xc4   : > { %705 = vadd.xlane.f32.xlu1 %v704_v40  ;;  %v428_v40 = vld [vmem:[%s3810_s26 + $0x440] sm:$0xff] }
  0xc5   : > { %702 = vadd.xlane.f32.xlu0 %v701_v41  ;;  %v429_v41 = vld [vmem:[%s3810_s26 + $0x448] sm:$0xff] }
  0xc6   : > { %708 = vadd.xlane.f32.xlu2 %v707_v42  ;;  %v752_v47 = vadd.f32 %v429_v41, %v428_v40  ;;  %v450_v41 = vld [vmem:[%s3810_s26 + $0x4f0] sm:$0xff] }
  0xc7   : > { %v3956_v49 = vpop.xlane.xlu1 %579 }
  0xc8   : > { %v3958_v50 = vpop.xlane.xlu0 %576 }
  0xc9   : > { %v3960_v51 = vpop.xlane.xlu2 %582 }
  0xcc   : > { %714 = vadd.xlane.f32.xlu1 %v713_v52  ;;  %v433_v52 = vld [vmem:[%s3810_s26 + $0x468] sm:$0xff] }
  0xcd   : > { %711 = vadd.xlane.f32.xlu0 %v710_v53  ;;  %v430_v53 = vld [vmem:[%s3810_s26 + $0x450] sm:$0xff]  ;;  %v758_v60 = vadd.f32 %v433_v52, %v432_v48  ;;  %v452_v48 = vld [vmem:[%s3810_s26 + $0x500] sm:$0xff]  ;;  %v453_v52 = vld [vmem:[%s3810_s26 + $0x508] sm:$0xff] }
  0xce   : > { %717 = vadd.xlane.f32.xlu2 %v716_v54  ;;  %v431_v54 = vld [vmem:[%s3810_s26 + $0x458] sm:$0xff] }
  0xcf   : > { %v3968_v61 = vpop.xlane.xlu1 %588 }
  0xd0   : > { %5492 = vst [vmem:[#allocation15_spill] sm:$0xff] %v3968_v61  ;;  %v3970_v62 = vpop.xlane.xlu0 %585  ;;  %v488_v61 = vld [vmem:[%s3810_s26 + $0x620] sm:$0xff] }
  0xd1   : > { %5493 = vst [vmem:[#allocation16_spill] sm:$0xff] %v3970_v62  ;;  %v3972_v63 = vpop.xlane.xlu2 %591 }
  0xd2   : > { %5494 = vst [vmem:[#allocation17_spill] sm:$0xff] %v3972_v63  ;;  %v485_v63 = vld [vmem:[%s3810_s26 + $0x608] sm:$0xff] }
  0xd4   : > { %723 = vadd.xlane.f32.xlu1 %v722_v0  ;;  %v755_v0 = vadd.f32 %v431_v54, %v430_v53 }
  0xd5   : > { %720 = vadd.xlane.f32.xlu0 %v719_v1  ;;  %v761_v1 = vadd.f32 %v435_v56, %v434_v55 }
  0xd6   : > { %726 = vadd.xlane.f32.xlu2 %v725_v2  ;;  %v438_v2 = vld [vmem:[%s3810_s26 + $0x490] sm:$0xff] }
  0xd7   : > { %v3980_v9 = vpop.xlane.xlu1 %597 }
  0xd8   : > { %v3982_v10 = vpop.xlane.xlu0 %594 }
  0xd9   : > { %5495 = vst [vmem:[#allocation18_spill] sm:$0xff] %v3982_v10  ;;  %v3984_v11 = vpop.xlane.xlu2 %600  ;;  %v5483_v10 = vlaneseq }
  0xdc   : > { %732 = vadd.xlane.f32.xlu1 %v731_v12 }
  0xdd   : > { %729 = vadd.xlane.f32.xlu0 %v728_v16 }
  0xde   : > { %735 = vadd.xlane.f32.xlu2 %v734_v17  ;;  %v767_v17 = vadd.f32 %v439_v3, %v438_v2  ;;  %v457_v2 = vld [vmem:[%s3810_s26 + $0x528] sm:$0xff]  ;;  %v454_v3 = vld [vmem:[%s3810_s26 + $0x510] sm:$0xff] }
  0xdf   : > { %v3992_v24 = vpop.xlane.xlu1 %606  ;;  %v791_v20 = vadd.f32 %v455_v4, %v454_v3 }
  0xe0   : > { %v3994_v28 = vpop.xlane.xlu0 %603 }
  0xe1   : > { %v3996_v29 = vpop.xlane.xlu2 %609 }
  0xe4   : > { %741 = vadd.xlane.f32.xlu1 %v740_v30  ;;  %v446_v30 = vld [vmem:[%s3810_s26 + $0x4d0] sm:$0xff] }
  0xe5   : > { %738 = vadd.xlane.f32.xlu0 %v737_v31  ;;  %v447_v31 = vld [vmem:[%s3810_s26 + $0x4d8] sm:$0xff] }
  0xe6   : > { %744 = vadd.xlane.f32.xlu2 %v743_v32  ;;  %v779_v40 = vadd.f32 %v447_v31, %v446_v30  ;;  %v460_v30 = vld [vmem:[%s3810_s26 + $0x540] sm:$0xff]  ;;  %v461_v31 = vld [vmem:[%s3810_s26 + $0x548] sm:$0xff] }
  0xe7   : > { %v4004_v42 = vpop.xlane.xlu1 %615 }
  0xe8   : > { %v4006_v43 = vpop.xlane.xlu0 %612 }
  0xe9   : > { %v4008_v44 = vpop.xlane.xlu2 %618 }
  0xec   : > { %750 = vadd.xlane.f32.xlu1 %v749_v45  ;;  %v451_v45 = vld [vmem:[%s3810_s26 + $0x4f8] sm:$0xff] }
  0xed   : > { %747 = vadd.xlane.f32.xlu0 %v746_v46  ;;  %v448_v46 = vld [vmem:[%s3810_s26 + $0x4e0] sm:$0xff]  ;;  %v785_v56 = vadd.f32 %v451_v45, %v450_v41 }
  0xee   : > { %753 = vadd.xlane.f32.xlu2 %v752_v47  ;;  %v449_v47 = vld [vmem:[%s3810_s26 + $0x4e8] sm:$0xff] }
  0xef   : > { %v4016_v57 = vpop.xlane.xlu1 %624 }
  0xf0   : > { %v4018_v58 = vpop.xlane.xlu0 %621 }
  0xf1   : > { %v4020_v59 = vpop.xlane.xlu2 %627 }
  0xf4   : > { %759 = vadd.xlane.f32.xlu1 %v758_v60  ;;  %v782_v60 = vadd.f32 %v449_v47, %v448_v46  ;;  %v803_v46 = vadd.f32 %v463_v23, %v462_v22  ;;  %v800_v47 = vadd.f32 %v461_v31, %v460_v30  ;;  %v475_v22 = vld [vmem:[%s3810_s26 + $0x5b8] sm:$0xff]  ;;  %v472_v23 = vld [vmem:[%s3810_s26 + $0x5a0] sm:$0xff]  ;;  %v473_v30 = vld [vmem:[%s3810_s26 + $0x5a8] sm:$0xff] }
  0xf5   : > { %756 = vadd.xlane.f32.xlu0 %v755_v0  ;;  %v788_v0 = vadd.f32 %v453_v52, %v452_v48  ;;  %v468_v52 = vld [vmem:[%s3810_s26 + $0x580] sm:$0xff] }
  0xf6   : > { %762 = vadd.xlane.f32.xlu2 %v761_v1  ;;  %v456_v1 = vld [vmem:[%s3810_s26 + $0x520] sm:$0xff] }
  0xf7   : > { %v4028_v8 = vpop.xlane.xlu1 %633  ;;  %v476_v31 = vld [vmem:[%s3810_s26 + $0x5c0] sm:$0xff] }
  0xf8   : > { %5496 = vst [vmem:[#allocation19_spill] sm:$0xff] %v4028_v8  ;;  %v4030_v12 = vpop.xlane.xlu0 %630 }
  0xf9   : > { %5497 = vst [vmem:[#allocation20_spill] sm:$0xff] %v4030_v12  ;;  %v4032_v16 = vpop.xlane.xlu2 %636  ;;  %v939_v12 = vmul.f32 0.00390625, %v3944_v37 }
  0xfa   : > { %5498 = vst [vmem:[#allocation21_spill] sm:$0xff] %v4032_v16 }
  0xfc   : > { %768 = vadd.xlane.f32.xlu1 %v767_v17 }
  0xfd   : > { %765 = vadd.xlane.f32.xlu0 %v764_v18 }
  0xfe   : > { %771 = vadd.xlane.f32.xlu2 %v770_v19  ;;  %v794_v19 = vadd.f32 %v457_v2, %v456_v1  ;;  %v470_v1 = vld [vmem:[%s3810_s26 + $0x590] sm:$0xff]  ;;  %v471_v2 = vld [vmem:[%s3810_s26 + $0x598] sm:$0xff] }
  0xff   : > { %v4040_v32 = vpop.xlane.xlu1 %642 }
 0x100   : > { %5499 = vst [vmem:[#allocation22_spill] sm:$0xff] %v4040_v32  ;;  %v4042_v33 = vpop.xlane.xlu0 %639 }
 0x101   : > { %5500 = vst [vmem:[#allocation23_spill] sm:$0xff] %v4042_v33  ;;  %v4044_v34 = vpop.xlane.xlu2 %645 }
 0x104   : > { %777 = vadd.xlane.f32.xlu1 %v776_v35  ;;  %v464_v35 = vld [vmem:[%s3810_s26 + $0x560] sm:$0xff] }
 0x105   : > { %774 = vadd.xlane.f32.xlu0 %v773_v36  ;;  %v465_v36 = vld [vmem:[%s3810_s26 + $0x568] sm:$0xff] }
 0x106   : > { %780 = vadd.xlane.f32.xlu2 %v779_v40  ;;  %v806_v48 = vadd.f32 %v465_v36, %v464_v35  ;;  %v477_v35 = vld [vmem:[%s3810_s26 + $0x5c8] sm:$0xff] }
 0x107   : > { %v4052_v53 = vpop.xlane.xlu1 %651 }
 0x108   : > { %v4054_v54 = vpop.xlane.xlu0 %648 }
 0x109   : > { %v4056_v55 = vpop.xlane.xlu2 %654 }
 0x10c   : > { %786 = vadd.xlane.f32.xlu1 %v785_v56  ;;  %v469_v56 = vld [vmem:[%s3810_s26 + $0x588] sm:$0xff] }
 0x10d   : > { %783 = vadd.xlane.f32.xlu0 %v782_v60  ;;  %v466_v60 = vld [vmem:[%s3810_s26 + $0x570] sm:$0xff]  ;;  %v812_v6 = vadd.f32 %v469_v56, %v468_v52  ;;  %v818_v52 = vadd.f32 %v473_v30, %v472_v23  ;;  %v824_v56 = vadd.f32 %v477_v35, %v476_v31  ;;  %v4113_v31 = vand.u32 127, %v5483_v10 }
 0x10e   : > { %789 = vadd.xlane.f32.xlu2 %v788_v0  ;;  %v467_v0 = vld [vmem:[%s3810_s26 + $0x578] sm:$0xff] }
 0x10f   : > { %v4064_v7 = vpop.xlane.xlu1 %660  ;;  %v4119_v32 = vadd.s32 4294967288, %v4113_v31 }
 0x110   : > { %v4066_v17 = vpop.xlane.xlu0 %657 }
 0x111   : > { %v4068_v18 = vpop.xlane.xlu2 %663 }
 0x114   : > { %795 = vadd.xlane.f32.xlu1 %v794_v19  ;;  %v809_v19 = vadd.f32 %v467_v0, %v466_v60  ;;  %v480_v60 = vld [vmem:[%s3810_s26 + $0x5e0] sm:$0xff]  ;;  %v481_v0 = vld [vmem:[%s3810_s26 + $0x5e8] sm:$0xff] }
 0x115   : > { %792 = vadd.xlane.f32.xlu0 %v791_v20  ;;  %v815_v20 = vadd.f32 %v471_v2, %v470_v1  ;;  %v478_v1 = vld [vmem:[%s3810_s26 + $0x5d0] sm:$0xff]  ;;  %v479_v2 = vld [vmem:[%s3810_s26 + $0x5d8] sm:$0xff] }
 0x116   : > { %798 = vadd.xlane.f32.xlu2 %v797_v21  ;;  %v474_v21 = vld [vmem:[%s3810_s26 + $0x5b0] sm:$0xff]  ;;  %v827_v23 = vadd.f32 %v479_v2, %v478_v1  ;;  %v4125_v1 = vadd.s32 4294967280, %v4113_v31 }
 0x117   : > { %v4076_v40 = vpop.xlane.xlu1 %669 }
 0x118   : > { %v4078_v41 = vpop.xlane.xlu0 %666 }
 0x119   : > { %v4080_v45 = vpop.xlane.xlu2 %672 }
 0x11a   : > { %5501 = vst [vmem:[#allocation24_spill] sm:$0xff] %v4080_v45 }
 0x11c   : > { %804 = vadd.xlane.f32.xlu1 %v803_v46 }
 0x11d   : > { %801 = vadd.xlane.f32.xlu0 %v800_v47 }
 0x11e   : > { %807 = vadd.xlane.f32.xlu2 %v806_v48  ;;  %v821_v48 = vadd.f32 %v475_v22, %v474_v21  ;;  %v830_v22 = vadd.f32 %v481_v0, %v480_v60 }
 0x11f   : > { %v4088_v3 = vpop.xlane.xlu1 %678 }
 0x120   : > { %5502 = vst [vmem:[#allocation25_spill] sm:$0xff] %v4088_v3  ;;  %v4090_v4 = vpop.xlane.xlu0 %675 }
 0x121   : > { %5503 = vst [vmem:[#allocation26_spill] sm:$0xff] %v4090_v4  ;;  %v4092_v5 = vpop.xlane.xlu2 %681 }
 0x122   : > { %5504 = vst [vmem:[#allocation27_spill] sm:$0xff] %v4092_v5  ;;  %v932_v5 = vmul.f32 0.00390625, %v3922_v14  ;;  %v4142_v14 = vadd.s32 4294967256, %v4113_v31 }
 0x124   : > { %813 = vadd.xlane.f32.xlu1 %v812_v6  ;;  %v482_v6 = vld [vmem:[%s3810_s26 + $0x5f0] sm:$0xff] }
 0x125   : > { %810 = vadd.xlane.f32.xlu0 %v809_v19  ;;  %v483_v19 = vld [vmem:[%s3810_s26 + $0x5f8] sm:$0xff] }
 0x126   : > { %816 = vadd.xlane.f32.xlu2 %v815_v20  ;;  %v833_v30 = vadd.f32 %v483_v19, %v482_v6 }
 0x127   : > { %v4100_v36 = vpop.xlane.xlu1 %687 }
 0x128   : > { %5505 = vst [vmem:[#allocation28_spill] sm:$0xff] %v4100_v36  ;;  %v4102_v46 = vpop.xlane.xlu0 %684 }
 0x129   : > { %5506 = vst [vmem:[#allocation29_spill] sm:$0xff] %v4102_v46  ;;  %v4104_v47 = vpop.xlane.xlu2 %690  ;;  %v489_v46 = vld [vmem:[%s3810_s26 + $0x628] sm:$0xff] }
 0x12a   : > { %5507 = vst [vmem:[#allocation30_spill] sm:$0xff] %v4104_v47  ;;  %v484_v47 = vld [vmem:[%s3810_s26 + $0x600] sm:$0xff]  ;;  %v842_v10 = vadd.f32 %v489_v46, %v488_v61  ;;  %v4138_v61 = vadd.s32 4294967264, %v4113_v31  ;;  %v490_v46 = vld [vmem:[%s3810_s26 + $0x630] sm:$0xff] }
 0x12c   : > { %822 = vadd.xlane.f32.xlu1 %v821_v48 }
 0x12d   : > { %819 = vadd.xlane.f32.xlu0 %v818_v52  ;;  %v486_v52 = vld [vmem:[%s3810_s26 + $0x610] sm:$0xff] }
 0x12e   : > { %825 = vadd.xlane.f32.xlu2 %v824_v56  ;;  %v487_v56 = vld [vmem:[%s3810_s26 + $0x618] sm:$0xff] }
 0x12f   : > { %v697_v20 = vpop.xlane.xlu1 %696 }
 0x130   : > { %v694_v36 = vpop.xlane.xlu0 %693  ;;  %v981_v35 = vmul.f32 0.00390625, %v697_v20  ;;  %v839_v20 = vadd.f32 %v487_v56, %v486_v52  ;;  %v493_v56 = vld [vmem:[%s3810_s26 + $0x648] sm:$0xff] }
 0x131   : > { %v700_v21 = vpop.xlane.xlu2 %699  ;;  %v980_v48 = vmul.f32 0.00390625, %v694_v36 }
 0x132   : > { %v982_v60 = vmul.f32 0.00390625, %v700_v21  ;;  %v1334_v2 = vperm.slane %v981_v35, %v4119_v32  ;;  %v4131_v21 = vadd.s32 4294967272, %v4113_v31 }
 0x133   : > { %v1333_v36 = vperm.slane %v980_v48, %v4113_v31 }
 0x134   : > { %831 = vadd.xlane.f32.xlu1 %v830_v22  ;;  %v933_v22 = vmul.f32 0.00390625, %v3934_v26  ;;  %v1336_v35 = vperm.slane %v982_v60, %v4125_v1  ;;  %v934_v60 = vmul.f32 0.00390625, %v3920_v13 }
 0x135   : > { %828 = vadd.xlane.f32.xlu0 %v827_v23  ;;  %v1335_v52 = vsel %vm1213_vm0, %v1334_v2, %v1333_v36  ;;  %v491_v2 = vld [vmem:[%s3810_s26 + $0x638] sm:$0xff]  ;;  %v494_v36 = vld [vmem:[%s3810_s26 + $0x650] sm:$0xff] }
 0x136   : > { %834 = vadd.xlane.f32.xlu2 %v833_v30  ;;  %v836_v30 = vadd.f32 %v485_v63, %v484_v47  ;;  %v1212_v63 = vperm.slane %v933_v22, %v4119_v32  ;;  %v492_v47 = vld [vmem:[%s3810_s26 + $0x640] sm:$0xff]  ;;  %v1337_v22 = vsel %vm1217_vm1, %v1336_v35, %v1335_v52  ;;  %v1216_v35 = vperm.slane %v934_v60, %v4125_v1 }
 0x137   : > { %v706_v0 = vpop.xlane.xlu1 %705  ;;  %v848_v3 = vadd.f32 %v493_v56, %v492_v47  ;;  %v937_v56 = vmul.f32 0.00390625, %v3936_v27  ;;  %v496_v60 = vld [vmem:[%s3810_s26 + $0x660] sm:$0xff] }
 0x138   : > { %v703_v6 = vpop.xlane.xlu0 %702  ;;  %v984_v48 = vmul.f32 0.00390625, %v706_v0 }
 0x139   : > { %v709_v19 = vpop.xlane.xlu2 %708  ;;  %v983_v23 = vmul.f32 0.00390625, %v703_v6  ;;  %v495_v6 = vld [vmem:[%s3810_s26 + $0x658] sm:$0xff] }
 0x13a   : > { %v985_v0 = vmul.f32 0.00390625, %v709_v19  ;;  %v1340_v33 = vperm.slane %v984_v48, %v4138_v61 }
 0x13b   : > { %v1338_v26 = vperm.slane %v983_v23, %v4131_v21  ;;  %v935_v23 = vmul.f32 0.00390625, %v3932_v25  ;;  %v851_v25 = vadd.f32 %v495_v6, %v494_v36  ;;  %v499_v36 = vld [vmem:[%s3810_s26 + $0x678] sm:$0xff]  ;;  %v501_v6 = vld [vmem:[%s3810_s26 + $0x688] sm:$0xff] }
 0x13c   : > { %840 = vadd.xlane.f32.xlu1 %v839_v20  ;;  %v1210_v20 = vperm.slane %v932_v5, %v4113_v31  ;;  %v845_v5 = vadd.f32 %v491_v2, %v490_v46  ;;  %v1342_v48 = vperm.slane %v985_v0, %v4142_v14  ;;  %v936_v46 = vmul.f32 0.00390625, %v3924_v15 }
 0x13d   : > { %837 = vadd.xlane.f32.xlu0 %v836_v30  ;;  %v1339_v13 = vsel %vm1221_vm2, %v1338_v26, %v1337_v22  ;;  %v1220_v4 = vperm.slane %v935_v23, %v4131_v21  ;;  %v4164_v26 = vadd.s32 4294967240, %v4113_v31  ;;  %v4173_v0 = vadd.s32 4294967232, %v4113_v31 }
 0x13e   : > { %843 = vadd.xlane.f32.xlu2 %v842_v10  ;;  %v4156_v10 = vadd.s32 4294967248, %v4113_v31  ;;  %v1214_v8 = vsel %vm1213_vm0, %v1212_v63, %v1210_v20  ;;  %v1341_v63 = vsel %vm1225_vm3, %v1340_v33, %v1339_v13  ;;  %v497_v33 = vld [vmem:[%s3810_s26 + $0x668] sm:$0xff]  ;;  %v4179_v15 = vadd.s32 4294967216, %v4113_v31 }
 0x13f   : > { %v715_v30 = vpop.xlane.xlu1 %714  ;;  %v1218_v47 = vsel %vm1217_vm1, %v1216_v35, %v1214_v8  ;;  %v1343_v27 = vsel %vm1229_vm4, %v1342_v48, %v1341_v63  ;;  %v938_v23 = vmul.f32 0.00390625, %v3946_v38  ;;  %v4188_v22 = vadd.s32 4294967224, %v4113_v31 }
 0x140   : > { %v712_v16 = vpop.xlane.xlu0 %711  ;;  %v987_v52 = vmul.f32 0.00390625, %v715_v30  ;;  %v1222_v20 = vsel %vm1221_vm2, %v1220_v4, %v1218_v47  ;;  %v854_v48 = vadd.f32 %v497_v33, %v496_v60  ;;  %v4204_v33 = vadd.s32 4294967192, %v4113_v31 }
 0x141   : > { %v718_v19 = vpop.xlane.xlu2 %717  ;;  %v986_v62 = vmul.f32 0.00390625, %v712_v16 }
 0x142   : > { %v988_v2 = vmul.f32 0.00390625, %v718_v19  ;;  %v1346_v8 = vperm.slane %v987_v52, %v4164_v26  ;;  %v1224_v19 = vperm.slane %v936_v46, %v4138_v61  ;;  %v1232_v46 = vperm.slane %v938_v23, %v4156_v10 }
 0x143   : > { %v1344_v16 = vperm.slane %v986_v62, %v4156_v10  ;;  %v498_v62 = vld [vmem:[%s3810_s26 + $0x670] sm:$0xff]  ;;  %v1236_v23 = vperm.slane %v939_v12, %v4164_v26 }
 0x144   : > { %849 = vadd.xlane.f32.xlu1 %v848_v3  ;;  %v500_v3 = vld [vmem:[%s3810_s26 + $0x680] sm:$0xff]  ;;  %v857_v52 = vadd.f32 %v499_v36, %v498_v62  ;;  %v1348_v63 = vperm.slane %v988_v2, %v4173_v0  ;;  %v1226_v47 = vsel %vm1225_vm3, %v1224_v19, %v1222_v20  ;;  %v940_v2 = vmul.f32 0.00390625, %v3948_v39  ;;  %v502_v62 = vld [vmem:[%s3810_s26 + $0x690] sm:$0xff]  ;;  %v503_v39 = vld [vmem:[%s3810_s26 + $0x698] sm:$0xff] }
 0x145   : > { %846 = vadd.xlane.f32.xlu0 %v845_v5  ;;  %v1345_v30 = vsel %vm1233_vm5, %v1344_v16, %v1343_v27  ;;  %v1228_v5 = vperm.slane %v937_v56, %v4142_v14  ;;  %v860_v38 = vadd.f32 %v501_v6, %v500_v3  ;;  %v4199_v56 = vadd.s32 4294967208, %v4113_v31  ;;  %v504_v6 = vld [vmem:[%s3810_s26 + $0x6a0] sm:$0xff]  ;;  %v505_v20 = vld [vmem:[%s3810_s26 + $0x6a8] sm:$0xff] }
 0x146   : > { %852 = vadd.xlane.f32.xlu2 %v851_v25  ;;  %v1347_v16 = vsel %vm1237_vm6, %v1346_v8, %v1345_v30  ;;  %v4209_v27 = vadd.s32 4294967200, %v4113_v31  ;;  %v948_v30 = vmul.f32 0.00390625, %v3980_v9 }
 0x147   : > { %v724_v13 = vpop.xlane.xlu1 %723  ;;  %v1230_v36 = vsel %vm1229_vm4, %v1228_v5, %v1226_v47  ;;  %v1349_v8 = vsel %vm1241_vm7, %v1348_v63, %v1347_v16  ;;  %v506_v5 = vld [vmem:[%s3810_s26 + $0x6b0] sm:$0xff]  ;;  %v1240_v63 = vperm.slane %v940_v2, %v4173_v0  ;;  %v951_v2 = vmul.f32 0.00390625, %v3992_v24 }
 0x148   : > { %v721_v25 = vpop.xlane.xlu0 %720  ;;  %v990_v45 = vmul.f32 0.00390625, %v724_v13  ;;  %v949_v13 = vmul.f32 0.00390625, %v3984_v11 }
 0x149   : > { %v727_v35 = vpop.xlane.xlu2 %726  ;;  %v989_v4 = vmul.f32 0.00390625, %v721_v25  ;;  %v507_v25 = vld [vmem:[%s3810_s26 + $0x6b8] sm:$0xff] }
 0x14a   : > { %v991_v37 = vmul.f32 0.00390625, %v727_v35  ;;  %v1352_v3 = vperm.slane %v990_v45, %v4179_v15  ;;  %v1234_v35 = vsel %vm1233_vm5, %v1232_v46, %v1230_v36  ;;  %v4224_v45 = vadd.s32 4294967184, %v4113_v31 }
 0x14b   : > { %v1350_v60 = vperm.slane %v989_v4, %v4188_v22  ;;  %v863_v4 = vadd.f32 %v503_v39, %v502_v62  ;;  %v1238_v36 = vsel %vm1237_vm6, %v1236_v23, %v1234_v35  ;;  %v964_v39 = vmul.f32 0.00390625, %v4044_v34  ;;  %v508_v34 = vld [vmem:[%s3810_s26 + $0x6c0] sm:$0xff] }
 0x14c   : > { %858 = vadd.xlane.f32.xlu1 %v857_v52  ;;  %v1354_v9 = vperm.slane %v991_v37, %v4199_v56  ;;  %v4235_v37 = vadd.s32 4294967176, %v4113_v31  ;;  %v4243_v24 = vsel %vm1241_vm7, %v1240_v63, %v1238_v36  ;;  %v1276_v35 = vperm.slane %v951_v2, %v4131_v21  ;;  %v512_v63 = vld [vmem:[%s3810_s26 + $0x6e0] sm:$0xff] }
 0x14d   : > { %855 = vadd.xlane.f32.xlu0 %v854_v48  ;;  %v1351_v19 = vsel %vm1245_vm8, %v1350_v60, %v1349_v8  ;;  %v950_v48 = vmul.f32 0.00390625, %v3994_v28  ;;  %v869_v60 = vadd.f32 %v507_v25, %v506_v5  ;;  %v1271_v8 = vperm.slane %v948_v30, %v4113_v31 }
 0x14e   : > { %861 = vadd.xlane.f32.xlu2 %v860_v38  ;;  %v866_v38 = vadd.f32 %v505_v20, %v504_v6  ;;  %v1353_v47 = vsel %vm5485_vm9, %v1352_v3, %v1351_v19  ;;  %v1272_v28 = vperm.slane %v949_v13, %v4119_v32  ;;  %v965_v6 = vmul.f32 0.00390625, %v4054_v54  ;;  %v510_v19 = vld [vmem:[%s3810_s26 + $0x6d0] sm:$0xff]  ;;  %v511_v54 = vld [vmem:[%s3810_s26 + $0x6d8] sm:$0xff] }
 0x14f   : > { %v733_v52 = vpop.xlane.xlu1 %732  ;;  %v1274_v62 = vperm.slane %v950_v48, %v4125_v1  ;;  %v1355_v20 = vsel %vm5484_vm10, %v1354_v9, %v1353_v47  ;;  %v4251_v5 = vmul.f32 0.00390625, %v3956_v49  ;;  %v952_v48 = vmul.f32 0.00390625, %v3996_v29  ;;  %v513_v9 = vld [vmem:[%s3810_s26 + $0x6e8] sm:$0xff] }
 0x150   : > { %v730_v12 = vpop.xlane.xlu0 %729  ;;  %v993_v16 = vmul.f32 0.00390625, %v733_v52  ;;  %v1273_v25 = vsel %vm1213_vm0, %v1272_v28, %v1271_v8  ;;  %v509_v52 = vld [vmem:[%s3810_s26 + $0x6c8] sm:$0xff]  ;;  %v1302_v47 = vperm.slane %v964_v39, %v4113_v31  ;;  %v875_v36 = vadd.f32 %v511_v54, %v510_v19  ;;  %v515_v19 = vld [vmem:[%s3810_s26 + $0x6f8] sm:$0xff]  ;;  %v518_v54 = vld [vmem:[%s3810_s26 + $0x710] sm:$0xff] }
 0x151   : > { %v736_v11 = vpop.xlane.xlu2 %735  ;;  %v992_v46 = vmul.f32 0.00390625, %v730_v12  ;;  %v4260_v12 = vmul.f32 0.00390625, %v3958_v50  ;;  %v872_v28 = vadd.f32 %v509_v52, %v508_v34  ;;  %v878_v2 = vadd.f32 %v513_v9, %v512_v63  ;;  %v514_v34 = vld [vmem:[%s3810_s26 + $0x6f0] sm:$0xff]  ;;  %v519_v52 = vld [vmem:[%s3810_s26 + $0x718] sm:$0xff]  ;;  %v516_v63 = vld [vmem:[%s3810_s26 + $0x700] sm:$0xff] }
 0x152   : > { %v994_v23 = vmul.f32 0.00390625, %v736_v11  ;;  %v1358_v30 = vperm.slane %v993_v16, %v4204_v33  ;;  %v1275_v11 = vsel %vm1217_vm1, %v1274_v62, %v1273_v25  ;;  %v1303_v16 = vperm.slane %v965_v6, %v4119_v32  ;;  %v517_v9 = vld [vmem:[%s3810_s26 + $0x708] sm:$0xff] }
 0x153   : > { %v1356_v3 = vperm.slane %v992_v46, %v4209_v27  ;;  %v1278_v62 = vperm.slane %v952_v48, %v4138_v61 }
 0x154   : > { %867 = vadd.xlane.f32.xlu1 %v866_v38  ;;  %v966_v38 = vmul.f32 0.00390625, %v4052_v53  ;;  %v1360_v46 = vperm.slane %v994_v23, %v4224_v45  ;;  %v1277_v53 = vsel %vm1221_vm2, %v1276_v35, %v1275_v11 }
 0x155   : > { %v1357_v13 = vsel %vm5486_vm11, %v1356_v3, %v1355_v20  ;;  %864 = vadd.xlane.f32.xlu0 %v863_v4  ;;  %v953_v4 = vmul.f32 0.00390625, %v4006_v43  ;;  %v4270_v43 = vmul.f32 0.00390625, %v3960_v51  ;;  %v954_v3 = vmul.f32 0.00390625, %v4004_v42 }
 0x156   : > { %870 = vadd.xlane.f32.xlu2 %v869_v60  ;;  %v1359_v8 = vsel %vm1261_vm12, %v1358_v30, %v1357_v13  ;;  %v1305_v6 = vperm.slane %v966_v38, %v4125_v1  ;;  %v967_v20 = vmul.f32 0.00390625, %v4056_v55  ;;  %v1248_v51 = vperm.slane %v4251_v5, %v4179_v15 }
 0x157   : > { %v742_v49 = vpop.xlane.xlu1 %741  ;;  %v1280_v39 = vperm.slane %v953_v4, %v4142_v14  ;;  %v1304_v30 = vsel %vm1213_vm0, %v1303_v16, %v1302_v47  ;;  %v968_v13 = vmul.f32 0.00390625, %v4066_v17  ;;  %v1361_v42 = vsel %vm1265_vm13, %v1360_v46, %v1359_v8 }
 0x158   : > { %v739_v29 = vpop.xlane.xlu0 %738  ;;  %v1244_v55 = vperm.slane %v4260_v12, %v4188_v22  ;;  %v996_v25 = vmul.f32 0.00390625, %v742_v49  ;;  %v1279_v17 = vsel %vm1225_vm3, %v1278_v62, %v1277_v53  ;;  %v1282_v11 = vperm.slane %v954_v3, %v4156_v10 }
 0x159   : > { %v745_v60 = vpop.xlane.xlu2 %744  ;;  %v995_v50 = vmul.f32 0.00390625, %v739_v29  ;;  %v955_v4 = vmul.f32 0.00390625, %v4008_v44  ;;  %v956_v38 = vmul.f32 0.00390625, %v4018_v58  ;;  %v1281_v12 = vsel %vm1229_vm4, %v1280_v39, %v1279_v17 }
 0x15a   : > { %v997_v48 = vmul.f32 0.00390625, %v745_v60  ;;  %v1306_v49 = vsel %vm1217_vm1, %v1305_v6, %v1304_v30  ;;  %v1307_v47 = vperm.slane %v967_v20, %v4131_v21  ;;  %v969_v16 = vmul.f32 0.00390625, %v4064_v7 }
 0x15b   : > { %v1362_v23 = vperm.slane %v995_v50, %v4235_v37  ;;  %v1309_v29 = vperm.slane %v968_v13, %v4138_v61  ;;  %v881_v8 = vadd.f32 %v515_v19, %v514_v34  ;;  %v887_v50 = vadd.f32 %v519_v52, %v518_v54  ;;  %v520_v19 = vld [vmem:[%s3810_s26 + $0x720] sm:$0xff]  ;;  %v523_v52 = vld [vmem:[%s3810_s26 + $0x738] sm:$0xff] }
 0x15c   : > { %876 = vadd.xlane.f32.xlu1 %v875_v36  ;;  %v1364_v44 = vperm.slane %v996_v25, %v4113_v31  ;;  %v1365_v58 = vperm.slane %v997_v48, %v4119_v32  ;;  %v1283_v62 = vsel %vm1233_vm5, %v1282_v11, %v1281_v12  ;;  %v1284_v3 = vperm.slane %v955_v4, %v4164_v26  ;;  %v521_v48 = vld [vmem:[%s3810_s26 + $0x728] sm:$0xff]  ;;  %v524_v11 = vld [vmem:[%s3810_s26 + $0x740] sm:$0xff] }
 0x15d   : > { %v4290_v35 = vsel %vm1269_vm14, %v1362_v23, %v1361_v42  ;;  %873 = vadd.xlane.f32.xlu0 %v872_v28  ;;  %v884_v28 = vadd.f32 %v517_v9, %v516_v63  ;;  %v957_v7 = vmul.f32 0.00390625, %v4016_v57  ;;  %v1286_v39 = vperm.slane %v956_v38, %v4173_v0  ;;  %v525_v4 = vld [vmem:[%s3810_s26 + $0x748] sm:$0xff] }
 0x15e   : > { %879 = vadd.xlane.f32.xlu2 %v878_v2  ;;  %v1308_v6 = vsel %vm1221_vm2, %v1307_v47, %v1306_v49  ;;  %v1311_v20 = vperm.slane %v969_v16, %v4142_v14  ;;  %v970_v23 = vmul.f32 0.00390625, %v4068_v18  ;;  %v1252_v13 = vperm.slane %v4270_v43, %v4199_v56  ;;  %v522_v43 = vld [vmem:[%s3810_s26 + $0x730] sm:$0xff] }
 0x15f   : > { %v751_v46 = vpop.xlane.xlu1 %750  ;;  %v1310_v42 = vsel %vm1225_vm3, %v1309_v29, %v1308_v6  ;;  %v971_v57 = vmul.f32 0.00390625, %v4078_v41  ;;  %v1246_v54 = vsel %vm1245_vm8, %v1244_v55, %v4243_v24  ;;  %v1366_v25 = vsel %vm1213_vm0, %v1365_v58, %v1364_v44 }
 0x160   : > { %v748_v60 = vpop.xlane.xlu0 %747  ;;  %v999_v2 = vmul.f32 0.00390625, %v751_v46  ;;  %v1285_v63 = vsel %vm1237_vm6, %v1284_v3, %v1283_v62  ;;  %v1288_v41 = vperm.slane %v957_v7, %v4188_v22  ;;  %v958_v9 = vmul.f32 0.00390625, %v4020_v59  ;;  %v5509_v7 = vld [vmem:[#allocation24_spill] sm:$0xff] }
 0x161   : > { %v754_v36 = vpop.xlane.xlu2 %753  ;;  %v998_v53 = vmul.f32 0.00390625, %v748_v60  ;;  %v1287_v24 = vsel %vm1241_vm7, %v1286_v39, %v1285_v63  ;;  %v1312_v55 = vsel %vm1229_vm4, %v1311_v20, %v1310_v42  ;;  %v1313_v38 = vperm.slane %v970_v23, %v4156_v10  ;;  %v526_v42 = vld [vmem:[%s3810_s26 + $0x750] sm:$0xff] }
 0x162   : > { %v1000_v34 = vmul.f32 0.00390625, %v754_v36  ;;  %v1369_v18 = vperm.slane %v999_v2, %v4131_v21  ;;  %v972_v12 = vmul.f32 0.00390625, %v4076_v40  ;;  %v1315_v47 = vperm.slane %v971_v57, %v4164_v26  ;;  %v5508_v2 = vld [vmem:[#allocation20_spill] sm:$0xff] }
 0x163   : > { %v1367_v30 = vperm.slane %v998_v53, %v4125_v1  ;;  %v890_v59 = vadd.f32 %v521_v48, %v520_v19  ;;  %v893_v60 = vadd.f32 %v523_v52, %v522_v43  ;;  %v1250_v40 = vsel %vm5485_vm9, %v1248_v51, %v1246_v54  ;;  %v5510_v51 = vld [vmem:[#allocation26_spill] sm:$0xff]  ;;  %v527_v19 = vld [vmem:[%s3810_s26 + $0x758] sm:$0xff]  ;;  %v5512_v52 = vld [vmem:[#allocation19_spill] sm:$0xff] }
 0x164   : > { %885 = vadd.xlane.f32.xlu1 %v884_v28  ;;  %v1371_v16 = vperm.slane %v1000_v34, %v4138_v61  ;;  %v896_v28 = vadd.f32 %v525_v4, %v524_v11  ;;  %v1289_v44 = vsel %vm1245_vm8, %v1288_v41, %v1287_v24  ;;  %v1290_v58 = vperm.slane %v958_v9, %v4179_v15  ;;  %v528_v54 = vld [vmem:[%s3810_s26 + $0x760] sm:$0xff]  ;;  %v5511_v48 = vld [vmem:[#allocation16_spill] sm:$0xff] }
 0x165   : > { %882 = vadd.xlane.f32.xlu0 %v881_v8  ;;  %v1368_v17 = vsel %vm1217_vm1, %v1367_v30, %v1366_v25  ;;  %v959_v53 = vmul.f32 0.00390625, %v5508_v2  ;;  %v1314_v62 = vsel %vm1233_vm5, %v1313_v38, %v1312_v55  ;;  %v1317_v3 = vperm.slane %v972_v12, %v4173_v0  ;;  %v529_v25 = vld [vmem:[%s3810_s26 + $0x768] sm:$0xff]  ;;  %v530_v9 = vld [vmem:[%s3810_s26 + $0x770] sm:$0xff]  ;;  %v5513_v55 = vld [vmem:[#allocation25_spill] sm:$0xff] }
 0x166   : > { %888 = vadd.xlane.f32.xlu2 %v887_v50  ;;  %v1370_v36 = vsel %vm1221_vm2, %v1369_v18, %v1368_v17  ;;  %v973_v39 = vmul.f32 0.00390625, %v5509_v7  ;;  %v1316_v5 = vsel %vm1237_vm6, %v1315_v47, %v1314_v62  ;;  %v974_v20 = vmul.f32 0.00390625, %v5510_v51  ;;  %v531_v17 = vld [vmem:[%s3810_s26 + $0x778] sm:$0xff] }
 0x167   : > { %v760_v49 = vpop.xlane.xlu1 %759  ;;  %v1372_v23 = vsel %vm1225_vm3, %v1371_v16, %v1370_v36  ;;  %v4360_v18 = vsel %vm5484_vm10, %v1252_v13, %v1250_v40  ;;  %v4363_v43 = vmul.f32 0.00390625, %v5511_v48  ;;  %v960_v63 = vmul.f32 0.00390625, %v5512_v52  ;;  %v5514_v40 = vld [vmem:[#allocation21_spill] sm:$0xff]  ;;  %v533_v48 = vld [vmem:[%s3810_s26 + $0x788] sm:$0xff]  ;;  %v534_v52 = vld [vmem:[%s3810_s26 + $0x790] sm:$0xff] }
 0x168   : > { %v757_v46 = vpop.xlane.xlu0 %756  ;;  %v1002_v8 = vmul.f32 0.00390625, %v760_v49  ;;  %v1292_v41 = vperm.slane %v959_v53, %v4199_v56  ;;  %v1291_v11 = vsel %vm5485_vm9, %v1290_v58, %v1289_v44  ;;  %v1318_v4 = vsel %vm1241_vm7, %v1317_v3, %v1316_v5  ;;  %v5515_v58 = vld [vmem:[#allocation23_spill] sm:$0xff]  ;;  %v5517_v5 = vld [vmem:[#allocation29_spill] sm:$0xff] }
 0x169   : > { %v763_v29 = vpop.xlane.xlu2 %762  ;;  %v1001_v50 = vmul.f32 0.00390625, %v757_v46  ;;  %v1319_v24 = vperm.slane %v973_v39, %v4188_v22  ;;  %v975_v38 = vmul.f32 0.00390625, %v5513_v55  ;;  %v1321_v13 = vperm.slane %v974_v20, %v4179_v15  ;;  %v5516_v3 = vld [vmem:[#allocation27_spill] sm:$0xff] }
 0x16a   : > { %v1003_v30 = vmul.f32 0.00390625, %v763_v29  ;;  %v1375_v57 = vperm.slane %v1002_v8, %v4156_v10  ;;  %v899_v46 = vadd.f32 %v527_v19, %v526_v42  ;;  %v902_v29 = vadd.f32 %v529_v25, %v528_v54  ;;  %v5518_v42 = vld [vmem:[#allocation15_spill] sm:$0xff] }
 0x16b   : > { %v1373_v6 = vperm.slane %v1001_v50, %v4142_v14  ;;  %v905_v8 = vadd.f32 %v531_v17, %v530_v9  ;;  %v1294_v50 = vperm.slane %v960_v63, %v4209_v27  ;;  %v961_v44 = vmul.f32 0.00390625, %v5514_v40  ;;  %v535_v63 = vld [vmem:[%s3810_s26 + $0x798] sm:$0xff]  ;;  %v537_v55 = vld [vmem:[%s3810_s26 + $0x7a8] sm:$0xff] }
 0x16c   : > { %894 = vadd.xlane.f32.xlu1 %v893_v60  ;;  %v1377_v49 = vperm.slane %v1003_v30, %v4164_v26  ;;  %v962_v2 = vmul.f32 0.00390625, %v5515_v58  ;;  %v1320_v53 = vsel %vm1245_vm8, %v1319_v24, %v1318_v4  ;;  %v1323_v62 = vperm.slane %v975_v38, %v4199_v56  ;;  %v532_v30 = vld [vmem:[%s3810_s26 + $0x780] sm:$0xff] }
 0x16d   : > { %v1374_v34 = vsel %vm1229_vm4, %v1373_v6, %v1372_v23  ;;  %891 = vadd.xlane.f32.xlu0 %v890_v59  ;;  %v976_v7 = vmul.f32 0.00390625, %v5516_v3  ;;  %v1322_v6 = vsel %vm5485_vm9, %v1321_v13, %v1320_v53  ;;  %v977_v51 = vmul.f32 0.00390625, %v5517_v5  ;;  %v536_v24 = vld [vmem:[%s3810_s26 + $0x7a0] sm:$0xff] }
 0x16e   : > { %897 = vadd.xlane.f32.xlu2 %v896_v28  ;;  %v1376_v59 = vsel %vm1233_vm5, %v1375_v57, %v1374_v34  ;;  %v1293_v28 = vsel %vm5484_vm10, %v1292_v41, %v1291_v11  ;;  %v945_v57 = vmul.f32 0.00390625, %v5518_v42  ;;  %v5519_v34 = vld [vmem:[#allocation17_spill] sm:$0xff]  ;;  %v1256_v41 = vperm.slane %v4363_v43, %v4209_v27  ;;  %v5520_v11 = vld [vmem:[#allocation22_spill] sm:$0xff] }
 0x16f   : > { %v769_v12 = vpop.xlane.xlu1 %768  ;;  %v1378_v20 = vsel %vm1237_vm6, %v1377_v49, %v1376_v59  ;;  %v4390_v19 = vmul.f32 0.00390625, %v5519_v34  ;;  %v1295_v9 = vsel %vm5486_vm11, %v1294_v50, %v1293_v28  ;;  %v1296_v17 = vperm.slane %v961_v44, %v4204_v33  ;;  %v5521_v49 = vld [vmem:[#allocation28_spill] sm:$0xff] }
 0x170   : > { %v766_v47 = vpop.xlane.xlu0 %765  ;;  %v1005_v60 = vmul.f32 0.00390625, %v769_v12  ;;  %v963_v4 = vmul.f32 0.00390625, %v5520_v11  ;;  %v1298_v38 = vperm.slane %v962_v2, %v4224_v45  ;;  %v1324_v12 = vsel %vm5484_vm10, %v1323_v62, %v1322_v6  ;;  %v5522_v2 = vld [vmem:[#allocation18_spill] sm:$0xff]  ;;  %v538_v34 = vld [vmem:[%s3810_s26 + $0x7b0] sm:$0xff] }
 0x171   : > { %v772_v16 = vpop.xlane.xlu2 %771  ;;  %v1004_v36 = vmul.f32 0.00390625, %v766_v47  ;;  %v1325_v13 = vperm.slane %v976_v7, %v4209_v27  ;;  %v978_v47 = vmul.f32 0.00390625, %v5521_v49  ;;  %v914_v40 = vadd.f32 %v537_v55, %v536_v24  ;;  %v5523_v62 = vld [vmem:[#allocation30_spill] sm:$0xff] }
 0x172   : > { %v1006_v23 = vmul.f32 0.00390625, %v772_v16  ;;  %v1381_v54 = vperm.slane %v1005_v60, %v4188_v22  ;;  %v908_v60 = vadd.f32 %v533_v48, %v532_v30  ;;  %v1260_v44 = vperm.slane %v945_v57, %v4204_v33 }
 0x173   : > { %v1379_v39 = vperm.slane %v1004_v36, %v4173_v0  ;;  %v911_v36 = vadd.f32 %v535_v63, %v534_v52  ;;  %v1258_v58 = vsel %vm5486_vm11, %v1256_v41, %v4360_v18  ;;  %v947_v53 = vmul.f32 0.00390625, %v5522_v2  ;;  %v539_v63 = vld [vmem:[%s3810_s26 + $0x7b8] sm:$0xff]  ;;  %v542_v41 = vld [vmem:[%s3810_s26 + $0x7d0] sm:$0xff] }
 0x174   : > { %903 = vadd.xlane.f32.xlu1 %v902_v29  ;;  %v1383_v43 = vperm.slane %v1006_v23, %v4179_v15  ;;  %v979_v3 = vmul.f32 0.00390625, %v5523_v62  ;;  %v1297_v7 = vsel %vm1261_vm12, %v1296_v17, %v1295_v9  ;;  %v1329_v6 = vperm.slane %v978_v47, %v4224_v45  ;;  %v543_v9 = vld [vmem:[%s3810_s26 + $0x7d8] sm:$0xff] }
 0x175   : > { %v1380_v25 = vsel %vm1241_vm7, %v1379_v39, %v1378_v20  ;;  %900 = vadd.xlane.f32.xlu0 %v899_v46  ;;  %v1327_v46 = vperm.slane %v977_v51, %v4204_v33  ;;  %v1326_v39 = vsel %vm5486_vm11, %v1325_v13, %v1324_v12  ;;  %v1300_v51 = vperm.slane %v963_v4, %v4235_v37  ;;  %v547_v2 = vld [vmem:[%s3810_s26 + $0x7f8] sm:$0xff] }
 0x176   : > { %906 = vadd.xlane.f32.xlu2 %v905_v8  ;;  %v1382_v8 = vsel %vm1245_vm8, %v1381_v54, %v1380_v25  ;;  %v1299_v30 = vsel %vm1265_vm13, %v1298_v38, %v1297_v7  ;;  %v540_v54 = vld [vmem:[%s3810_s26 + $0x7c0] sm:$0xff]  ;;  %v541_v25 = vld [vmem:[%s3810_s26 + $0x7c8] sm:$0xff]  ;;  %v1264_v48 = vperm.slane %v4390_v19, %v4224_v45  ;;  %v1331_v52 = vperm.slane %v979_v3, %v4235_v37 }
 0x177   : > { %v778_v16 = vpop.xlane.xlu1 %777  ;;  %v1328_v18 = vsel %vm1261_vm12, %v1327_v46, %v1326_v39  ;;  %v1384_v20 = vsel %vm5485_vm9, %v1383_v43, %v1382_v8  ;;  %v1262_v17 = vsel %vm1261_vm12, %v1260_v44, %v1258_v58  ;;  %v1268_v11 = vperm.slane %v947_v53, %v4235_v37  ;;  %v546_v58 = vld [vmem:[%s3810_s26 + $0x7f0] sm:$0xff]  ;;  %v544_v7 = vld [vmem:[%s3810_s26 + $0x7e0] sm:$0xff]  ;;  %v545_v39 = vld [vmem:[%s3810_s26 + $0x7e8] sm:$0xff] }
 0x178   : > { %v775_v29 = vpop.xlane.xlu0 %774  ;;  %v1008_v50 = vmul.f32 0.00390625, %v778_v16  ;;  %v1330_v4 = vsel %vm1265_vm13, %v1329_v6, %v1328_v18  ;;  %v1301_v55 = vsel %vm1269_vm14, %v1300_v51, %v1299_v30  ;;  %v920_v49 = vadd.f32 %v541_v25, %v540_v54 }
 0x179   : > { %v781_v59 = vpop.xlane.xlu2 %780  ;;  %v1007_v28 = vmul.f32 0.00390625, %v775_v29  ;;  %v917_v46 = vadd.f32 %v539_v63, %v538_v34  ;;  %v923_v43 = vadd.f32 %v543_v9, %v542_v41  ;;  %v1266_v29 = vsel %vm1265_vm13, %v1264_v48, %v1262_v17 }
 0x17a   : > { %v1009_v23 = vmul.f32 0.00390625, %v781_v59  ;;  %v1387_v42 = vperm.slane %v1008_v50, %v4209_v27  ;;  %v1332_v59 = vsel %vm1269_vm14, %v1331_v52, %v1330_v4  ;;  %vm1492_vm9 = vcmask 1043459  }
 0x17b   : > { %v1385_v5 = vperm.slane %v1007_v28, %v4199_v56 }
 0x17c   : > { %912 = vadd.xlane.f32.xlu1 %v911_v36  ;;  %v1389_v38 = vperm.slane %v1009_v23, %v4204_v33  ;;  %v1270_v36 = vsel %vm1269_vm14, %v1268_v11, %v1266_v29 }
 0x17d   : > { %v1386_v57 = vsel %vm5484_vm10, %v1385_v5, %v1384_v20  ;;  %909 = vadd.xlane.f32.xlu0 %v908_v60  ;;  %vm1490_vm10 = vcmask 1042434   ;;  %v1489_v50 = vsel %vm1488_vm15, %v1301_v55, %v1270_v36  ;;  %v929_v20 = vadd.f32 %v547_v2, %v546_v58 }
 0x17e   : > { %915 = vadd.xlane.f32.xlu2 %v914_v40  ;;  %v1388_v47 = vsel %vm5486_vm11, %v1387_v42, %v1386_v57  ;;  %vm1494_vm11 = vcmask 1044484   ;;  %v1491_v40 = vsel %vm1490_vm10, %v1332_v59, %v1489_v50  ;;  %v926_v42 = vadd.f32 %v545_v39, %v544_v7 }
 0x17f   : > { %v787_v24 = vpop.xlane.xlu1 %786  ;;  %v1390_v28 = vsel %vm1261_vm12, %v1389_v38, %v1388_v47  ;;  %v1493_v53 = vsel %vm1492_vm9, %v4290_v35, %v1491_v40  ;;  %vm5524_vm9 = vcmask 720512   ;;  %vm5525_vm10 = vcmask 786112  }
 0x180   : > { %v1011_v12 = vmul.f32 0.00390625, %v787_v24  ;;  %v784_v13 = vpop.xlane.xlu0 %783  ;;  %vm1496_vm15 = vcmask 1045509  }
 0x181   : > { %v790_v19 = vpop.xlane.xlu2 %789  ;;  %v1010_v16 = vmul.f32 0.00390625, %v784_v13 }
 0x182   : > { %v1393_v60 = vperm.slane %v1011_v12, %v4235_v37  ;;  %v1012_v3 = vmul.f32 0.00390625, %v790_v19 }
 0x183   : > { %v1391_v8 = vperm.slane %v1010_v16, %v4224_v45 }
 0x184   : > { %921 = vadd.xlane.f32.xlu1 %v920_v49  ;;  %v1395_v57 = vperm.slane %v1012_v3, %v4113_v31 }
 0x185   : > { %v1392_v44 = vsel %vm1265_vm13, %v1391_v8, %v1390_v28  ;;  %918 = vadd.xlane.f32.xlu0 %v917_v46 }
 0x186   : > { %924 = vadd.xlane.f32.xlu2 %v923_v43  ;;  %v1394_v62 = vsel %vm1269_vm14, %v1393_v60, %v1392_v44 }
 0x187   : > { %v796_v6 = vpop.xlane.xlu1 %795  ;;  %v4455_v5 = vsel %vm1494_vm11, %v1394_v62, %v1493_v53  ;;  %vm5526_vm11 = vcmask 851712  }
 0x188   : > { %v793_v51 = vpop.xlane.xlu0 %792  ;;  %v1014_v23 = vmul.f32 0.00390625, %v796_v6 }
 0x189   : > { %v799_v18 = vpop.xlane.xlu2 %798  ;;  %v1013_v30 = vmul.f32 0.00390625, %v793_v51 }
 0x18a   : > { %v1015_v54 = vmul.f32 0.00390625, %v799_v18  ;;  %v1398_v35 = vperm.slane %v1014_v23, %v4125_v1 }
 0x18b   : > { %v1396_v34 = vperm.slane %v1013_v30, %v4119_v32 }
 0x18c   : > { %930 = vadd.xlane.f32.xlu1 %v929_v20  ;;  %v1400_v52 = vperm.slane %v1015_v54, %v4131_v21 }
 0x18d   : > { %927 = vadd.xlane.f32.xlu0 %v926_v42  ;;  %v1397_v25 = vsel %vm1213_vm0, %v1396_v34, %v1395_v57 }
 0x18e   : > { %v1399_v9 = vsel %vm1217_vm1, %v1398_v35, %v1397_v25 }
 0x18f   : > { %v805_v48 = vpop.xlane.xlu1 %804  ;;  %v1401_v24 = vsel %vm1221_vm2, %v1400_v52, %v1399_v9 }
 0x190   : > { %v802_v63 = vpop.xlane.xlu0 %801  ;;  %v1017_v17 = vmul.f32 0.00390625, %v805_v48 }
 0x191   : > { %v808_v41 = vpop.xlane.xlu2 %807  ;;  %v1016_v11 = vmul.f32 0.00390625, %v802_v63 }
 0x192   : > { %v1018_v55 = vmul.f32 0.00390625, %v808_v41  ;;  %v1404_v38 = vperm.slane %v1017_v17, %v4142_v14 }
 0x193   : > { %v1402_v4 = vperm.slane %v1016_v11, %v4138_v61 }
 0x194   : > { %v1406_v19 = vperm.slane %v1018_v55, %v4156_v10 }
 0x195   : > { %v1403_v12 = vsel %vm1225_vm3, %v1402_v4, %v1401_v24 }
 0x196   : > { %v1405_v16 = vsel %vm1229_vm4, %v1404_v38, %v1403_v12 }
 0x197   : > { %v814_v13 = vpop.xlane.xlu1 %813  ;;  %v1407_v59 = vsel %vm1233_vm5, %v1406_v19, %v1405_v16 }
 0x198   : > { %v811_v49 = vpop.xlane.xlu0 %810  ;;  %v1020_v46 = vmul.f32 0.00390625, %v814_v13 }
 0x199   : > { %v817_v47 = vpop.xlane.xlu2 %816  ;;  %v1019_v43 = vmul.f32 0.00390625, %v811_v49 }
 0x19a   : > { %v1021_v60 = vmul.f32 0.00390625, %v817_v47  ;;  %v1410_v36 = vperm.slane %v1020_v46, %v4173_v0 }
 0x19b   : > { %v1408_v29 = vperm.slane %v1019_v43, %v4164_v26 }
 0x19c   : > { %v1412_v28 = vperm.slane %v1021_v60, %v4188_v22 }
 0x19d   : > { %v1409_v8 = vsel %vm1237_vm6, %v1408_v29, %v1407_v59 }
 0x19e   : > { %v1411_v58 = vsel %vm1241_vm7, %v1410_v36, %v1409_v8 }
 0x19f   : > { %v823_v50 = vpop.xlane.xlu1 %822  ;;  %v1413_v3 = vsel %vm1245_vm8, %v1412_v28, %v1411_v58 }
 0x1a0   : > { %v820_v40 = vpop.xlane.xlu0 %819  ;;  %v1023_v2 = vmul.f32 0.00390625, %v823_v50 }
 0x1a1   : > { %v826_v44 = vpop.xlane.xlu2 %825  ;;  %v1022_v53 = vmul.f32 0.00390625, %v820_v40 }
 0x1a2   : > { %v1024_v7 = vmul.f32 0.00390625, %v826_v44  ;;  %v1416_v39 = vperm.slane %v1023_v2, %v4199_v56 }
 0x1a3   : > { %v1414_v62 = vperm.slane %v1022_v53, %v4179_v15 }
 0x1a4   : > { %v1418_v18 = vperm.slane %v1024_v7, %v4209_v27 }
 0x1a5   : > { %v1415_v6 = vsel %vm5524_vm9, %v1414_v62, %v1413_v3 }
 0x1a6   : > { %v1417_v42 = vsel %vm5525_vm10, %v1416_v39, %v1415_v6 }
 0x1a7   : > { %v832_v51 = vpop.xlane.xlu1 %831  ;;  %v1419_v48 = vsel %vm5526_vm11, %v1418_v18, %v1417_v42 }
 0x1a8   : > { %v1026_v20 = vmul.f32 0.00390625, %v832_v51  ;;  %v829_v23 = vpop.xlane.xlu0 %828 }
 0x1a9   : > { %v835_v30 = vpop.xlane.xlu2 %834  ;;  %v1025_v57 = vmul.f32 0.00390625, %v829_v23  ;;  %v1075_v23 = vld [vmem:[%s5478_s1 + $0x78] sm:$0xff] }
 0x1aa   : > { %v1027_v34 = vmul.f32 0.00390625, %v835_v30  ;;  %v1422_v54 = vperm.slane %v1026_v20, %v4224_v45  ;;  %1503 = vmatpush.msra.mxu0 %v1075_v23 }
 0x1ab   : > { %v1420_v35 = vperm.slane %v1025_v57, %v4204_v33 }
 0x1ac   : > { %v1424_v25 = vperm.slane %v1027_v34, %v4235_v37  ;;  %v1074_v34 = vld [vmem:[%s5478_s1 + $0x70] sm:$0xff] }
 0x1ad   : > { %v1421_v52 = vsel %vm1261_vm12, %v1420_v35, %v1419_v48  ;;  %1504 = vmatpush.msra.mxu0 %v1074_v34 }
 0x1ae   : > { %v1423_v63 = vsel %vm1265_vm13, %v1422_v54, %v1421_v52 }
 0x1af   : > { %v841_v41 = vpop.xlane.xlu1 %840  ;;  %v1425_v9 = vsel %vm1269_vm14, %v1424_v25, %v1423_v63  ;;  %v1073_v25 = vld [vmem:[%s5478_s1 + $0x68] sm:$0xff] }
 0x1b0   : > { %v838_v17 = vpop.xlane.xlu0 %837  ;;  %v4489_v4 = vsel %vm1496_vm15, %v1425_v9, %v4455_v5  ;;  %v1029_v24 = vmul.f32 0.00390625, %v841_v41  ;;  %1505 = vmatpush.msra.mxu0 %v1073_v25  ;;  %v1072_v41 = vld [vmem:[%s5478_s1 + $0x60] sm:$0xff]  ;;  %vm1498_vm15 = vcmask 1046534  }
 0x1b1   : > { %v844_v11 = vpop.xlane.xlu2 %843  ;;  %v1028_v55 = vmul.f32 0.00390625, %v838_v17  ;;  %v1060_v25 = vld [vmem:[%s5478_s1] sm:$0xff] }
 0x1b2   : > { %v1030_v12 = vmul.f32 0.00390625, %v844_v11  ;;  %v1427_v49 = vperm.slane %v1029_v24, %v4119_v32  ;;  %1506 = vmatpush.msra.mxu0 %v1072_v41 }
 0x1b3   : > { %v1426_v47 = vperm.slane %v1028_v55, %v4113_v31  ;;  %v1071_v55 = vld [vmem:[%s5478_s1 + $0x58] sm:$0xff] }
 0x1b4   : > { %v1429_v46 = vperm.slane %v1030_v12, %v4125_v1  ;;  %1507 = vmatpush.msra.mxu0 %v1071_v55 }
 0x1b5   : > { %v1428_v29 = vsel %vm1213_vm0, %v1427_v49, %v1426_v47  ;;  %v1070_v49 = vld [vmem:[%s5478_s1 + $0x50] sm:$0xff] }
 0x1b6   : > { %v1430_v36 = vsel %vm1217_vm1, %v1429_v46, %v1428_v29  ;;  %1508 = vmatpush.msra.mxu0 %v1070_v49  ;;  %v1069_v46 = vld [vmem:[%s5478_s1 + $0x48] sm:$0xff] }
 0x1b7   : > { %v850_v38 = vpop.xlane.xlu1 %849 }
 0x1b8   : > { %v847_v13 = vpop.xlane.xlu0 %846  ;;  %v1032_v43 = vmul.f32 0.00390625, %v850_v38  ;;  %1509 = vmatpush.msra.mxu0 %v1069_v46 }
 0x1b9   : > { %v853_v19 = vpop.xlane.xlu2 %852  ;;  %v1031_v16 = vmul.f32 0.00390625, %v847_v13 }
 0x1ba   : > { %v1033_v5 = vmul.f32 0.00390625, %v853_v19  ;;  %v1433_v8 = vperm.slane %v1032_v43, %v4138_v61 }
 0x1bb   : > { %v1431_v59 = vperm.slane %v1031_v16, %v4131_v21 }
 0x1bc   : > { %v1435_v58 = vperm.slane %v1033_v5, %v4142_v14  ;;  %v1068_v5 = vld [vmem:[%s5478_s1 + $0x40] sm:$0xff] }
 0x1bd   : > { %v1432_v40 = vsel %vm1221_vm2, %v1431_v59, %v1430_v36  ;;  %1510 = vmatpush.msra.mxu0 %v1068_v5 }
 0x1be   : > { %v1434_v53 = vsel %vm1225_vm3, %v1433_v8, %v1432_v40 }
 0x1bf   : > { %v859_v60 = vpop.xlane.xlu1 %858  ;;  %v1436_v7 = vsel %vm1229_vm4, %v1435_v58, %v1434_v53  ;;  %v1066_v58 = vld [vmem:[%s5478_s1 + $0x30] sm:$0xff]  ;;  %v1065_v53 = vld [vmem:[%s5478_s1 + $0x28] sm:$0xff] }
 0x1c0   : > { %v856_v50 = vpop.xlane.xlu0 %855  ;;  %v1035_v2 = vmul.f32 0.00390625, %v859_v60 }
 0x1c1   : > { %v862_v28 = vpop.xlane.xlu2 %861  ;;  %v1034_v44 = vmul.f32 0.00390625, %v856_v50 }
 0x1c2   : > { %v1036_v3 = vmul.f32 0.00390625, %v862_v28  ;;  %v1439_v39 = vperm.slane %v1035_v2, %v4164_v26  ;;  %v1067_v28 = vld [vmem:[%s5478_s1 + $0x38] sm:$0xff] }
 0x1c3   : > { %v1437_v62 = vperm.slane %v1034_v44, %v4156_v10  ;;  %1511 = vmatpush.msra.mxu0 %v1067_v28 }
 0x1c4   : > { %v1441_v42 = vperm.slane %v1036_v3, %v4173_v0 }
 0x1c5   : > { %v1438_v51 = vsel %vm1233_vm5, %v1437_v62, %v1436_v7  ;;  %1512 = vmatpush.msra.mxu0 %v1066_v58  ;;  %v1064_v7 = vld [vmem:[%s5478_s1 + $0x20] sm:$0xff] }
 0x1c6   : > { %v1440_v54 = vsel %vm1237_vm6, %v1439_v39, %v1438_v51 }
 0x1c7   : > { %v868_v6 = vpop.xlane.xlu1 %867  ;;  %v1442_v52 = vsel %vm1241_vm7, %v1441_v42, %v1440_v54  ;;  %1513 = vmatpush.msra.mxu0 %v1065_v53 }
 0x1c8   : > { %v865_v18 = vpop.xlane.xlu0 %864  ;;  %v1038_v57 = vmul.f32 0.00390625, %v868_v6 }
 0x1c9   : > { %v871_v20 = vpop.xlane.xlu2 %870  ;;  %v1037_v30 = vmul.f32 0.00390625, %v865_v18  ;;  %1514 = vmatpush.msra.mxu0 %v1064_v7 }
 0x1ca   : > { %v1039_v48 = vmul.f32 0.00390625, %v871_v20  ;;  %v1445_v63 = vperm.slane %v1038_v57, %v4179_v15  ;;  %v1062_v57 = vld [vmem:[%s5478_s1 + $0x10] sm:$0xff] }
 0x1cb   : > { %v1443_v35 = vperm.slane %v1037_v30, %v4188_v22  ;;  %v1063_v30 = vld [vmem:[%s5478_s1 + $0x18] sm:$0xff] }
 0x1cc   : > { %v1447_v38 = vperm.slane %v1039_v48, %v4199_v56  ;;  %1515 = vmatpush.msra.mxu0 %v1063_v30 }
 0x1cd   : > { %v1444_v9 = vsel %vm1245_vm8, %v1443_v35, %v1442_v52 }
 0x1ce   : > { %v1446_v19 = vsel %vm5524_vm9, %v1445_v63, %v1444_v9  ;;  %1516 = vmatpush.msra.mxu0 %v1062_v57 }
 0x1cf   : > { %v877_v17 = vpop.xlane.xlu1 %876  ;;  %v1448_v43 = vsel %vm5525_vm10, %v1447_v38, %v1446_v19 }
 0x1d0   : > { %v874_v11 = vpop.xlane.xlu0 %873  ;;  %v1041_v13 = vmul.f32 0.00390625, %v877_v17 }
 0x1d1   : > { %v880_v24 = vpop.xlane.xlu2 %879  ;;  %v1040_v12 = vmul.f32 0.00390625, %v874_v11 }
 0x1d2   : > { %v1042_v16 = vmul.f32 0.00390625, %v880_v24  ;;  %v1451_v29 = vperm.slane %v1041_v13, %v4204_v33 }
 0x1d3   : > { %v1449_v47 = vperm.slane %v1040_v12, %v4209_v27 }
 0x1d4   : > { %v1453_v36 = vperm.slane %v1042_v16, %v4224_v45 }
 0x1d5   : > { %v1450_v59 = vsel %vm5526_vm11, %v1449_v47, %v1448_v43 }
 0x1d6   : > { %v1452_v40 = vsel %vm1261_vm12, %v1451_v29, %v1450_v59 }
 0x1d7   : > { %v886_v60 = vpop.xlane.xlu1 %885  ;;  %v1454_v62 = vsel %vm1265_vm13, %v1453_v36, %v1452_v40 }
 0x1d8   : > { %v883_v8 = vpop.xlane.xlu0 %882  ;;  %v1044_v18 = vmul.f32 0.00390625, %v886_v60 }
 0x1d9   : > { %v889_v50 = vpop.xlane.xlu2 %888  ;;  %v1043_v44 = vmul.f32 0.00390625, %v883_v8 }
 0x1da   : > { %v1045_v51 = vmul.f32 0.00390625, %v889_v50  ;;  %v1457_v54 = vperm.slane %v1044_v18, %v4113_v31 }
 0x1db   : > { %v1455_v2 = vperm.slane %v1043_v44, %v4235_v37 }
 0x1dc   : > { %v1458_v34 = vperm.slane %v1045_v51, %v4119_v32 }
 0x1dd   : > { %v1456_v3 = vsel %vm1269_vm14, %v1455_v2, %v1454_v62 }
 0x1de   : > { %v4559_v39 = vsel %vm1498_vm15, %v1456_v3, %v4489_v4  ;;  %v1061_v4 = vld [vmem:[%s5478_s1 + $0x8] sm:$0xff]  ;;  %v1459_v41 = vsel %vm1213_vm0, %v1458_v34, %v1457_v54  ;;  %vm5527_vm0 = vmmov %vm5524_vm9 }
 0x1df   : > { %v895_v6 = vpop.xlane.xlu1 %894  ;;  %1517 = vmatpush.msra.mxu0 %v1061_v4 }
 0x1e0   : > { %v892_v20 = vpop.xlane.xlu0 %891  ;;  %v1047_v35 = vmul.f32 0.00390625, %v895_v6 }
 0x1e1   : > { %v898_v23 = vpop.xlane.xlu2 %897  ;;  %v1046_v42 = vmul.f32 0.00390625, %v892_v20  ;;  %1518 = vmatpush.msra.mxu0 %v1060_v25 }
 0x1e2   : > { %v1048_v52 = vmul.f32 0.00390625, %v898_v23  ;;  %v1462_v9 = vperm.slane %v1047_v35, %v4131_v21 }
 0x1e3   : > { %v1460_v48 = vperm.slane %v1046_v42, %v4125_v1  ;;  %v3208_v42 = vld [vmem:[#allocation5] ss:$0 sm:$0xff] }
 0x1e4   : > { %v1464_v24 = vperm.slane %v1048_v52, %v4138_v61 }
 0x1e5   : > { %v1461_v32 = vsel %vm1217_vm1, %v1460_v48, %v1459_v41  ;;  %vm5528_vm1 = vmmov %vm5525_vm10 }
 0x1e6   : > { %v1463_v38 = vsel %vm1221_vm2, %v1462_v9, %v1461_v32  ;;  %vm5529_vm2 = vmmov %vm5526_vm11 }
 0x1e7   : > { %v904_v63 = vpop.xlane.xlu1 %903  ;;  %v1465_v13 = vsel %vm1225_vm3, %v1464_v24, %v1463_v38  ;;  %vm1500_vm3 = vcmask 1047559  }
 0x1e8   : > { %v901_v17 = vpop.xlane.xlu0 %900  ;;  %v1050_v55 = vmul.f32 0.00390625, %v904_v63 }
 0x1e9   : > { %v907_v11 = vpop.xlane.xlu2 %906  ;;  %v1049_v31 = vmul.f32 0.00390625, %v901_v17 }
 0x1ea   : > { %v1051_v12 = vmul.f32 0.00390625, %v907_v11  ;;  %v1468_v19 = vperm.slane %v1050_v55, %v4156_v10 }
 0x1eb   : > { %v1466_v1 = vperm.slane %v1049_v31, %v4142_v14 }
 0x1ec   : > { %v1470_v43 = vperm.slane %v1051_v12, %v4164_v26 }
 0x1ed   : > { %v1467_v21 = vsel %vm1229_vm4, %v1466_v1, %v1465_v13  ;;  %vm1529_vm4 = vcmask 64512  }
 0x1ee   : > { %v1469_v61 = vsel %vm1233_vm5, %v1468_v19, %v1467_v21 }
 0x1ef   : > { %v913_v49 = vpop.xlane.xlu1 %912  ;;  %v1471_v14 = vsel %vm1237_vm6, %v1470_v43, %v1469_v61 }
 0x1f0   : > { %v910_v47 = vpop.xlane.xlu0 %909  ;;  %v1053_v29 = vmul.f32 0.00390625, %v913_v49 }
 0x1f1   : > { %v916_v16 = vpop.xlane.xlu2 %915  ;;  %v1052_v46 = vmul.f32 0.00390625, %v910_v47 }
 0x1f2   : > { %v1054_v5 = vmul.f32 0.00390625, %v916_v16  ;;  %v1474_v60 = vperm.slane %v1053_v29, %v4188_v22 }
 0x1f3   : > { %v1472_v59 = vperm.slane %v1052_v46, %v4173_v0 }
 0x1f4   : > { %v1476_v50 = vperm.slane %v1054_v5, %v4179_v15 }
 0x1f5   : > { %v1473_v10 = vsel %vm1241_vm7, %v1472_v59, %v1471_v14 }
 0x1f6   : > { %v1475_v26 = vsel %vm1245_vm8, %v1474_v60, %v1473_v10 }
 0x1f7   : > { %v922_v36 = vpop.xlane.xlu1 %921  ;;  %v1477_v0 = vsel %vm5527_vm0, %v1476_v50, %v1475_v26  ;;  %v3215_v50 = vld [vmem:[%s3810_s26 + $0x8] sm:$0xff]  ;;  %v3216_v26 = vld [vmem:[%s3810_s26 + $0x30] sm:$0xff] }
 0x1f8   : > { %v919_v8 = vpop.xlane.xlu0 %918  ;;  %v1056_v40 = vmul.f32 0.00390625, %v922_v36  ;;  %v3214_v36 = vld [vmem:[%s3810_s26] sm:$0xff] }
 0x1f9   : > { %v1055_v28 = vmul.f32 0.00390625, %v919_v8  ;;  %v925_v44 = vpop.xlane.xlu2 %924 }
 0x1fa   : > { %v1057_v2 = vmul.f32 0.00390625, %v925_v44  ;;  %v1480_v53 = vperm.slane %v1056_v40, %v4209_v27 }
 0x1fb   : > { %v1478_v58 = vperm.slane %v1055_v28, %v4199_v56 }
 0x1fc   : > { %v1482_v3 = vperm.slane %v1057_v2, %v4204_v33  ;;  %v1524_v33 = vld [vmem:[#allocation7] sm:$0xff]  ;;  %v3217_v2 = vld [vmem:[%s3810_s26 + $0x38] sm:$0xff] }
 0x1fd   : > { %v1479_v22 = vsel %vm5528_vm1, %v1478_v58, %v1477_v0  ;;  %1548 = vmatpush.msra.mxu1 %v1524_v33 }
 0x1fe   : > { %v1481_v15 = vsel %vm5529_vm2, %v1480_v53, %v1479_v22 }
 0x1ff   : > { %v931_v62 = vpop.xlane.xlu1 %930  ;;  %v1483_v56 = vsel %vm1261_vm12, %v1482_v3, %v1481_v15  ;;  %v3218_v3 = vld [vmem:[%s3810_s26 + $0x300] sm:$0xff] }
 0x200   : > { %v928_v7 = vpop.xlane.xlu0 %927  ;;  %v1059_v6 = vmul.f32 0.00390625, %v931_v62 }
 0x201   : > { %v1058_v51 = vmul.f32 0.00390625, %v928_v7 }
 0x202   : > { %v1486_v18 = vperm.slane %v1059_v6, %v4235_v37  ;;  %v5530_v37 = vlaneseq  ;;  %v3219_v6 = vld [vmem:[%s3810_s26 + $0x308] sm:$0xff] }
 0x203   : > { %v1484_v20 = vperm.slane %v1058_v51, %v4224_v45  ;;  %v3220_v51 = vld [vmem:[%s3810_s26 + $0x20] sm:$0xff] }
 0x204   : > { %v4606_v45 = vshrl.u32 %v5530_v37, 7  ;;  %v3224_v37 = vld [vmem:[%s3810_s26 + $0x350] sm:$0xff] }
 0x205   : > { %v1485_v23 = vsel %vm1265_vm13, %v1484_v20, %v1483_v56  ;;  %v3221_v20 = vld [vmem:[%s3810_s26 + $0x28] sm:$0xff] }
 0x206   : > { %v1487_v27 = vsel %vm1269_vm14, %v1486_v18, %v1485_v23  ;;  %3127 = vset.pattern.permute.xlu0 %v4606_v45  ;;  %3088 = vset.pattern.permute.xlu2 %v4606_v45  ;;  %v4611_v54 = vadd.s32 16, %v4606_v45  ;;  %v4626_v19 = vadd.s32 40, %v4606_v45  ;;  %v4629_v49 = vadd.s32 24, %v4606_v45 }
 0x207   : > { %v1501_v30 = vsel %vm1500_vm3, %v1487_v27, %v4559_v39  ;;  %v3209_v39 = vld [vmem:[#allocation8] ss:$0 sm:$0xff]  ;;  %v4638_v21 = vadd.s32 80, %v4606_v45  ;;  %v4641_v47 = vadd.s32 56, %v4606_v45  ;;  %v4644_v16 = vadd.s32 32, %v4606_v45 }
 0x208   : > { %1519 = vmatmul.f32.vlgmr.msra.gmra.mxu0 %v1501_v30  ;;  %3089 = vset.pattern.permute.xlu1 %v4611_v54  ;;  %v4653_v46 = vadd.s32 120, %v4606_v45  ;;  %v4656_v43 = vadd.s32 48, %v4606_v45  ;;  %v4665_v29 = vadd.s32 96, %v4606_v45  ;;  %v4668_v61 = vadd.s32 72, %v4606_v45  ;;  %v3222_v30 = vld [vmem:[%s3810_s26 + $0x40] sm:$0xff] }
 0x209   : > { %v4680_v5 = vadd.s32 88, %v4606_v45  ;;  %v4689_v14 = vadd.s32 112, %v4606_v45  ;;  %v4692_v60 = vadd.s32 8, %v4606_v45  ;;  %v4729_v23 = vadd.s32 64, %v4606_v45 }
 0x285   : > { %v1520_v57 = vpop.f32.mrf.mxu0 }
 0x286   : > { %v1521_v4 = vadd.f32 %v3208_v42, %v1520_v57  ;;  %v3223_v42 = vld [vmem:[%s3810_s26 + $0x48] sm:$0xff] }
 0x288   : > { %v1523_v34 = vmax.f32 %v1521_v4, 0.0 }
 0x28a   : > { %2995 = vmatmul.msk.f32.vlgmr.msra.gmra.mxu1 %vm1529_vm4, %v1523_v34 }
 0x307   : > { %v1550_v35 = vpop.f32.mrf.mxu1 }
 0x308   : > { %v1551_v25 = vadd.f32 %v3209_v39, %v1550_v35  ;;  %v3225_v35 = vld [vmem:[%s3810_s26 + $0x358] sm:$0xff] }
 0x30a   : > { %v2996_v48 = vmul.f32 -1.442695, %v1551_v25 }
 0x30c   : > { %3210 = vpow2.f32 %v2996_v48  ;;  %v3226_v48 = vld [vmem:[%s3810_s26 + $0x50] sm:$0xff] }
 0x312   : > { %v3211_v52 = vpop.eup %3210 }
 0x313   : > { %v1556_v63 = vadd.f32 1.0, %v3211_v52 }
 0x315   : > { %3212 = vrcp.f32 %v1556_v63  ;;  %v1568_v11 = vand.u32 2147483648, %v1556_v63  ;;  %v1566_v31 = vand.u32 2147483647, %v1556_v63  ;;  %vm1562_vm6 = vweird.f32 %v1556_v63 }
 0x317   : > { %v1569_v55 = vor.u32 1.1754944e-38, %v1568_v11  ;;  %vm1567_vm8 = vcmp.eq.f32.partialorder %v1566_v31, 8.507059e+37 }
 0x31b   : > { %v3213_v41 = vpop.eup %3212 }
 0x31c   : > { %v1558_v9 = vmul.f32 %v3213_v41, %v1556_v63  ;;  %vm1563_vm5 = vweird.f32 %v3213_v41  ;;  %v3227_v63 = vld [vmem:[%s3810_s26 + $0x58] sm:$0xff] }
 0x31d   : > { %vm1564_vm7 = vmor %vm1562_vm6, %vm1563_vm5 }
 0x31e   : > { %v1559_v17 = vsub.f32 1.0, %v1558_v9 }
 0x320   : > { %v1560_v32 = vmul.f32 %v3213_v41, %v1559_v17  ;;  %v3228_v17 = vld [vmem:[%s3810_s26 + $0x60] sm:$0xff] }
 0x322   : > { %v1561_v24 = vadd.f32 %v3213_v41, %v1560_v32  ;;  %v3229_v32 = vld [vmem:[%s3810_s26 + $0x68] sm:$0xff] }
 0x324   : > { %v1565_v38 = vsel %vm1564_vm7, %v3213_v41, %v1561_v24  ;;  %v4759_v24 = vadd.s32 104, %v4606_v45 }
 0x325   : > { %v4614_v1 = vsel %vm1567_vm8, %v1569_v55, %v1565_v38 }
 0x326   : > { %v4617_v12 = vperm.slane %v4614_v1, 0  ;;  %v4620_v13 = vperm.slane %v4614_v1, 3  ;;  %v4674_v59 = vperm.slane %v4614_v1, 4  ;;  %v4700_v40 = vperm.slane %v4614_v1, 1 }
 0x327   : > { %v4717_v53 = vperm.slane %v4614_v1, 5 }
 0x328   : > { %1868 = vperm.xlu0 %3127, %v4620_v13   ;;  %1589 = vperm.xlu1 %3089, %v4617_v12  }
 0x329   : > { %1577 = vperm.xlu2 %3088, %v4617_v12  }
 0x330   : > { %3132 = vset.pattern.permute.xlu0 %v4626_v19  ;;  %3092 = vset.pattern.permute.xlu1 %v4626_v19 }
 0x331   : > { %3090 = vset.pattern.permute.xlu2 %v4629_v49 }
 0x338   : > { %1898 = vperm.xlu0 %3132, %v4620_v13   ;;  %1607 = vperm.xlu1 %3092, %v4617_v12  }
 0x339   : > { %1595 = vperm.xlu2 %3090, %v4617_v12  }
 0x340   : > { %3137 = vset.pattern.permute.xlu0 %v4638_v21  ;;  %3094 = vset.pattern.permute.xlu1 %v4641_v47 }
 0x341   : > { %3091 = vset.pattern.permute.xlu2 %v4644_v16 }
 0x348   : > { %1928 = vperm.xlu0 %3137, %v4620_v13   ;;  %1619 = vperm.xlu1 %3094, %v4617_v12  }
 0x349   : > { %1601 = vperm.xlu2 %3091, %v4617_v12  }
 0x350   : > { %3142 = vset.pattern.permute.xlu0 %v4653_v46  ;;  %3096 = vset.pattern.permute.xlu1 %v4638_v21 }
 0x351   : > { %3093 = vset.pattern.permute.xlu2 %v4656_v43 }
 0x358   : > { %1958 = vperm.xlu0 %3142, %v4620_v13   ;;  %1637 = vperm.xlu1 %3096, %v4617_v12  }
 0x359   : > { %1613 = vperm.xlu2 %3093, %v4617_v12  }
 0x360   : > { %3147 = vset.pattern.permute.xlu0 %v4644_v16  ;;  %3098 = vset.pattern.permute.xlu1 %v4665_v29 }
 0x361   : > { %3095 = vset.pattern.permute.xlu2 %v4668_v61 }
 0x368   : > { %1989 = vperm.xlu0 %3147, %v4674_v59   ;;  %1649 = vperm.xlu1 %3098, %v4617_v12  }
 0x369   : > { %1631 = vperm.xlu2 %3095, %v4617_v12  }
 0x370   : > { %3152 = vset.pattern.permute.xlu0 %v4668_v61  ;;  %3100 = vset.pattern.permute.xlu1 %v4653_v46 }
 0x371   : > { %3097 = vset.pattern.permute.xlu2 %v4680_v5 }
 0x378   : > { %2019 = vperm.xlu0 %3152, %v4674_v59   ;;  %1667 = vperm.xlu1 %3100, %v4617_v12  }
 0x379   : > { %1643 = vperm.xlu2 %3097, %v4617_v12  }
 0x380   : > { %3157 = vset.pattern.permute.xlu0 %v4689_v14  ;;  %3102 = vset.pattern.permute.xlu1 %v4692_v60 }
 0x381   : > { %3099 = vset.pattern.permute.xlu2 %v4689_v14 }
 0x383   : > { %v1578_v10 = vpop.permute.xlu2 %1577 }
 0x384   : > { %v2348_v8 = vmul.f32 %v3214_v36, %v1578_v10  ;;  %v2349_v28 = vmul.f32 %v3215_v50, %v1578_v10  ;;  %v3230_v10 = vld [vmem:[%s3810_s26 + $0x3a0] sm:$0xff] }
 0x386   : > { %2604 = vst [vmem:[%s4704_s6] sm:$0xff] %v2348_v8  ;;  %v3231_v8 = vld [vmem:[%s3810_s26 + $0x3a8] sm:$0xff] }
 0x387   : > { %2605 = vst [vmem:[%s4704_s6 + $0x8] sm:$0xff] %v2349_v28  ;;  %v3232_v28 = vld [vmem:[%s3810_s26 + $0x70] sm:$0xff] }
 0x388   : > { %2049 = vperm.xlu0 %3157, %v4674_v59   ;;  %1680 = vperm.xlu1 %3102, %v4700_v40  }
 0x389   : > { %1661 = vperm.xlu2 %3099, %v4617_v12  }
 0x390   : > { %3162 = vset.pattern.permute.xlu0 %v4629_v49  ;;  %3104 = vset.pattern.permute.xlu1 %v4644_v16 }
 0x391   : > { %3101 = vset.pattern.permute.xlu2 %v4606_v45 }
 0x393   : > { %v1596_v44 = vpop.permute.xlu2 %1595 }
 0x394   : > { %v2354_v58 = vmul.f32 %v3216_v26, %v1596_v44  ;;  %v2355_v0 = vmul.f32 %v3217_v2, %v1596_v44  ;;  %v3233_v26 = vld [vmem:[%s3810_s26 + $0x78] sm:$0xff] }
 0x396   : > { %2610 = vst [vmem:[%s4704_s6 + $0x30] sm:$0xff] %v2354_v58 }
 0x397   : > { %2611 = vst [vmem:[%s4704_s6 + $0x38] sm:$0xff] %v2355_v0  ;;  %v3234_v0 = vld [vmem:[%s3810_s26 + $0x90] sm:$0xff] }
 0x398   : > { %2080 = vperm.xlu0 %3162, %v4717_v53   ;;  %1698 = vperm.xlu1 %3104, %v4700_v40  }
 0x399   : > { %1674 = vperm.xlu2 %3101, %v4700_v40  }
 0x39a   : > { %v1869_v22 = vpop.permute.xlu0 %1868  ;;  %v1590_v62 = vpop.permute.xlu1 %1589 }
 0x39b   : > { %v2444_v7 = vmul.f32 %v3218_v3, %v1869_v22  ;;  %v2445_v15 = vmul.f32 %v3219_v6, %v1869_v22  ;;  %v2352_v18 = vmul.f32 %v3220_v51, %v1590_v62  ;;  %v2353_v56 = vmul.f32 %v3221_v20, %v1590_v62  ;;  %v3235_v62 = vld [vmem:[%s3810_s26 + $0x98] sm:$0xff] }
 0x39d   : > { %2700 = vst [vmem:[%s4704_s6 + $0x300] sm:$0xff] %v2444_v7 }
 0x39e   : > { %2701 = vst [vmem:[%s4704_s6 + $0x308] sm:$0xff] %v2445_v15  ;;  %v3236_v15 = vld [vmem:[%s3810_s26 + $0x3f0] sm:$0xff] }
 0x39f   : > { %2608 = vst [vmem:[%s4704_s6 + $0x20] sm:$0xff] %v2352_v18  ;;  %v3237_v18 = vld [vmem:[%s3810_s26 + $0x3f8] sm:$0xff] }
 0x3a0   : > { %2609 = vst [vmem:[%s4704_s6 + $0x28] sm:$0xff] %v2353_v56  ;;  %3163 = vset.pattern.permute.xlu0 %v4729_v23  ;;  %3106 = vset.pattern.permute.xlu1 %v4656_v43  ;;  %v3238_v56 = vld [vmem:[%s3810_s26 + $0xa0] sm:$0xff] }
 0x3a1   : > { %3103 = vset.pattern.permute.xlu2 %v4629_v49 }
 0x3a3   : > { %v1602_v27 = vpop.permute.xlu2 %1601 }
 0x3a4   : > { %v2356_v33 = vmul.f32 %v3222_v30, %v1602_v27  ;;  %v2357_v57 = vmul.f32 %v3223_v42, %v1602_v27  ;;  %v3239_v30 = vld [vmem:[%s3810_s26 + $0xa8] sm:$0xff] }
 0x3a6   : > { %2612 = vst [vmem:[%s4704_s6 + $0x40] sm:$0xff] %v2356_v33 }
 0x3a7   : > { %2613 = vst [vmem:[%s4704_s6 + $0x48] sm:$0xff] %v2357_v57  ;;  %v3240_v57 = vld [vmem:[%s3810_s26 + $0xb0] sm:$0xff] }
 0x3a8   : > { %1625 = vperm.xlu0 %3163, %v4617_v12   ;;  %1710 = vperm.xlu1 %3106, %v4700_v40  }
 0x3a9   : > { %1692 = vperm.xlu2 %3103, %v4700_v40  }
 0x3aa   : > { %v1899_v4 = vpop.permute.xlu0 %1898  ;;  %v1608_v34 = vpop.permute.xlu1 %1607 }
 0x3ab   : > { %v2454_v39 = vmul.f32 %v3224_v37, %v1899_v4  ;;  %v2455_v25 = vmul.f32 %v3225_v35, %v1899_v4  ;;  %v2358_v52 = vmul.f32 %v3226_v48, %v1608_v34  ;;  %v2359_v41 = vmul.f32 %v3227_v63, %v1608_v34  ;;  %v3241_v34 = vld [vmem:[%s3810_s26 + $0xb8] sm:$0xff] }
 0x3ad   : > { %2710 = vst [vmem:[%s4704_s6 + $0x350] sm:$0xff] %v2454_v39 }
 0x3ae   : > { %2711 = vst [vmem:[%s4704_s6 + $0x358] sm:$0xff] %v2455_v25  ;;  %v3242_v25 = vld [vmem:[%s3810_s26 + $0x440] sm:$0xff] }
 0x3af   : > { %2614 = vst [vmem:[%s4704_s6 + $0x50] sm:$0xff] %v2358_v52  ;;  %v3243_v52 = vld [vmem:[%s3810_s26 + $0x448] sm:$0xff] }
 0x3b0   : > { %2615 = vst [vmem:[%s4704_s6 + $0x58] sm:$0xff] %v2359_v41  ;;  %2110 = vperm.xlu0 %3163, %v4717_v53   ;;  %3108 = vset.pattern.permute.xlu1 %v4668_v61  ;;  %v3244_v41 = vld [vmem:[%s3810_s26 + $0xc0] sm:$0xff] }
 0x3b1   : > { %3105 = vset.pattern.permute.xlu2 %v4626_v19 }
 0x3b3   : > { %v1614_v9 = vpop.permute.xlu2 %1613 }
 0x3b4   : > { %v2360_v11 = vmul.f32 %v3228_v17, %v1614_v9  ;;  %v2361_v31 = vmul.f32 %v3229_v32, %v1614_v9  ;;  %v3245_v17 = vld [vmem:[%s3810_s26 + $0xc8] sm:$0xff]  ;;  %v4808_v32 = vperm.slane %v4614_v1, 6 }
 0x3b6   : > { %2616 = vst [vmem:[%s4704_s6 + $0x60] sm:$0xff] %v2360_v11 }
 0x3b7   : > { %2617 = vst [vmem:[%s4704_s6 + $0x68] sm:$0xff] %v2361_v31 }
 0x3b8   : > { %3168 = vset.pattern.permute.xlu0 %v4759_v24  ;;  %1728 = vperm.xlu1 %3108, %v4700_v40  }
 0x3b9   : > { %1704 = vperm.xlu2 %3105, %v4700_v40  }
 0x3ba   : > { %v1929_v55 = vpop.permute.xlu0 %1928  ;;  %v1620_v38 = vpop.permute.xlu1 %1619 }
 0x3bb   : > { %v2464_v36 = vmul.f32 %v3230_v10, %v1929_v55  ;;  %v2465_v50 = vmul.f32 %v3231_v8, %v1929_v55  ;;  %v2362_v44 = vmul.f32 %v3232_v28, %v1620_v38  ;;  %v2363_v58 = vmul.f32 %v3233_v26, %v1620_v38  ;;  %v3246_v55 = vld [vmem:[%s3810_s26 + $0xe0] sm:$0xff]  ;;  %v3247_v10 = vld [vmem:[%s3810_s26 + $0xe8] sm:$0xff] }
 0x3bc   : > { %v4819_v8 = vperm.slane %v4614_v1, 2 }
 0x3bd   : > { %2720 = vst [vmem:[%s4704_s6 + $0x3a0] sm:$0xff] %v2464_v36 }
 0x3be   : > { %2721 = vst [vmem:[%s4704_s6 + $0x3a8] sm:$0xff] %v2465_v50 }
 0x3bf   : > { %2618 = vst [vmem:[%s4704_s6 + $0x70] sm:$0xff] %v2362_v44  ;;  %v3248_v44 = vld [vmem:[%s3810_s26 + $0x490] sm:$0xff] }
 0x3c0   : > { %2619 = vst [vmem:[%s4704_s6 + $0x78] sm:$0xff] %v2363_v58  ;;  %1655 = vperm.xlu0 %3168, %v4617_v12   ;;  %3110 = vset.pattern.permute.xlu1 %v4680_v5  ;;  %v3249_v58 = vld [vmem:[%s3810_s26 + $0x498] sm:$0xff] }
 0x3c1   : > { %3107 = vset.pattern.permute.xlu2 %v4729_v23 }
 0x3c3   : > { %v1632_v2 = vpop.permute.xlu2 %1631 }
 0x3c4   : > { %v2366_v22 = vmul.f32 %v3234_v0, %v1632_v2  ;;  %v2367_v3 = vmul.f32 %v3235_v62, %v1632_v2  ;;  %v3250_v0 = vld [vmem:[%s3810_s26 + $0xf0] sm:$0xff]  ;;  %v3251_v62 = vld [vmem:[%s3810_s26 + $0xf8] sm:$0xff] }
 0x3c6   : > { %2622 = vst [vmem:[%s4704_s6 + $0x90] sm:$0xff] %v2366_v22 }
 0x3c7   : > { %2623 = vst [vmem:[%s4704_s6 + $0x98] sm:$0xff] %v2367_v3 }
 0x3c8   : > { %2140 = vperm.xlu0 %3168, %v4717_v53   ;;  %1740 = vperm.xlu1 %3110, %v4700_v40  }
 0x3c9   : > { %1722 = vperm.xlu2 %3107, %v4700_v40  }
 0x3ca   : > { %v1959_v7 = vpop.permute.xlu0 %1958  ;;  %v1638_v6 = vpop.permute.xlu1 %1637 }
 0x3cb   : > { %v2474_v51 = vmul.f32 %v3236_v15, %v1959_v7  ;;  %v2475_v20 = vmul.f32 %v3237_v18, %v1959_v7  ;;  %v2368_v27 = vmul.f32 %v3238_v56, %v1638_v6  ;;  %v2369_v33 = vmul.f32 %v3239_v30, %v1638_v6  ;;  %v3252_v6 = vld [vmem:[%s3810_s26 + $0x100] sm:$0xff] }
 0x3cd   : > { %2730 = vst [vmem:[%s4704_s6 + $0x3f0] sm:$0xff] %v2474_v51  ;;  %v3253_v51 = vld [vmem:[%s3810_s26 + $0x108] sm:$0xff] }
 0x3ce   : > { %2731 = vst [vmem:[%s4704_s6 + $0x3f8] sm:$0xff] %v2475_v20 }
 0x3cf   : > { %2624 = vst [vmem:[%s4704_s6 + $0xa0] sm:$0xff] %v2368_v27  ;;  %v3254_v27 = vld [vmem:[%s3810_s26 + $0x4e0] sm:$0xff] }
 0x3d0   : > { %2625 = vst [vmem:[%s4704_s6 + $0xa8] sm:$0xff] %v2369_v33  ;;  %3173 = vset.pattern.permute.xlu0 %v4611_v54  ;;  %3112 = vset.pattern.permute.xlu1 %v4689_v14  ;;  %v3255_v33 = vld [vmem:[%s3810_s26 + $0x4e8] sm:$0xff] }
 0x3d1   : > { %3109 = vset.pattern.permute.xlu2 %v4638_v21 }
 0x3d3   : > { %v1644_v42 = vpop.permute.xlu2 %1643 }
 0x3d4   : > { %v2370_v4 = vmul.f32 %v3240_v57, %v1644_v42  ;;  %v2371_v37 = vmul.f32 %v3241_v34, %v1644_v42  ;;  %v3256_v57 = vld [vmem:[%s3810_s26 + $0x110] sm:$0xff]  ;;  %v3257_v34 = vld [vmem:[%s3810_s26 + $0x118] sm:$0xff] }
 0x3d6   : > { %2626 = vst [vmem:[%s4704_s6 + $0xb0] sm:$0xff] %v2370_v4 }
 0x3d7   : > { %2627 = vst [vmem:[%s4704_s6 + $0xb8] sm:$0xff] %v2371_v37 }
 0x3d8   : > { %1686 = vperm.xlu0 %3173, %v4700_v40   ;;  %1758 = vperm.xlu1 %3112, %v4700_v40  }
 0x3d9   : > { %1734 = vperm.xlu2 %3109, %v4700_v40  }
 0x3da   : > { %v1990_v39 = vpop.permute.xlu0 %1989  ;;  %v1650_v35 = vpop.permute.xlu1 %1649 }
 0x3db   : > { %v2484_v48 = vmul.f32 %v3242_v25, %v1990_v39  ;;  %v2485_v63 = vmul.f32 %v3243_v52, %v1990_v39  ;;  %v2372_v9 = vmul.f32 %v3244_v41, %v1650_v35  ;;  %v2373_v11 = vmul.f32 %v3245_v17, %v1650_v35  ;;  %v3258_v35 = vld [vmem:[%s3810_s26 + $0x130] sm:$0xff] }
 0x3dd   : > { %2740 = vst [vmem:[%s4704_s6 + $0x440] sm:$0xff] %v2484_v48  ;;  %v3259_v48 = vld [vmem:[%s3810_s26 + $0x138] sm:$0xff] }
 0x3de   : > { %2741 = vst [vmem:[%s4704_s6 + $0x448] sm:$0xff] %v2485_v63 }
 0x3df   : > { %2628 = vst [vmem:[%s4704_s6 + $0xc0] sm:$0xff] %v2372_v9  ;;  %v3260_v9 = vld [vmem:[%s3810_s26 + $0x530] sm:$0xff] }
 0x3e0   : > { %2629 = vst [vmem:[%s4704_s6 + $0xc8] sm:$0xff] %v2373_v11  ;;  %2171 = vperm.xlu0 %3173, %v4808_v32   ;;  %3114 = vset.pattern.permute.xlu1 %v4606_v45  ;;  %v3261_v11 = vld [vmem:[%s3810_s26 + $0x538] sm:$0xff] }
 0x3e1   : > { %3111 = vset.pattern.permute.xlu2 %v4759_v24 }
 0x3e3   : > { %v1662_v31 = vpop.permute.xlu2 %1661 }
 0x3e4   : > { %v2376_v38 = vmul.f32 %v3246_v55, %v1662_v31  ;;  %v2377_v36 = vmul.f32 %v3247_v10, %v1662_v31  ;;  %v3262_v55 = vld [vmem:[%s3810_s26 + $0x140] sm:$0xff]  ;;  %v3263_v10 = vld [vmem:[%s3810_s26 + $0x148] sm:$0xff] }
 0x3e6   : > { %2632 = vst [vmem:[%s4704_s6 + $0xe0] sm:$0xff] %v2376_v38 }
 0x3e7   : > { %2633 = vst [vmem:[%s4704_s6 + $0xe8] sm:$0xff] %v2377_v36 }
 0x3e8   : > { %3178 = vset.pattern.permute.xlu0 %v4641_v47  ;;  %1771 = vperm.xlu1 %3114, %v4819_v8  }
 0x3e9   : > { %1752 = vperm.xlu2 %3111, %v4700_v40  }
 0x3ea   : > { %v2020_v50 = vpop.permute.xlu0 %2019  ;;  %v1668_v28 = vpop.permute.xlu1 %1667 }
 0x3eb   : > { %v2494_v26 = vmul.f32 %v3248_v44, %v2020_v50  ;;  %v2495_v2 = vmul.f32 %v3249_v58, %v2020_v50  ;;  %v2378_v22 = vmul.f32 %v3250_v0, %v1668_v28  ;;  %v2379_v3 = vmul.f32 %v3251_v62, %v1668_v28  ;;  %v3264_v50 = vld [vmem:[%s3810_s26 + $0x150] sm:$0xff]  ;;  %v3265_v44 = vld [vmem:[%s3810_s26 + $0x158] sm:$0xff]  ;;  %v3266_v0 = vld [vmem:[%s3810_s26 + $0x80] sm:$0xff] }
 0x3ec   : > { %v3267_v62 = vld [vmem:[%s3810_s26 + $0x88] sm:$0xff] }
 0x3ed   : > { %2750 = vst [vmem:[%s4704_s6 + $0x490] sm:$0xff] %v2494_v26 }
 0x3ee   : > { %2751 = vst [vmem:[%s4704_s6 + $0x498] sm:$0xff] %v2495_v2 }
 0x3ef   : > { %2634 = vst [vmem:[%s4704_s6 + $0xf0] sm:$0xff] %v2378_v22 }
 0x3f0   : > { %2635 = vst [vmem:[%s4704_s6 + $0xf8] sm:$0xff] %v2379_v3  ;;  %1716 = vperm.xlu0 %3178, %v4700_v40   ;;  %3116 = vset.pattern.permute.xlu1 %v4629_v49 }
 0x3f1   : > { %3113 = vset.pattern.permute.xlu2 %v4653_v46 }
 0x3f3   : > { %v1675_v7 = vpop.permute.xlu2 %1674 }
 0x3f4   : > { %v2380_v15 = vmul.f32 %v3252_v6, %v1675_v7  ;;  %v2381_v18 = vmul.f32 %v3253_v51, %v1675_v7  ;;  %v3268_v7 = vld [vmem:[%s3810_s26 + $0x160] sm:$0xff] }
 0x3f6   : > { %2636 = vst [vmem:[%s4704_s6 + $0x100] sm:$0xff] %v2380_v15  ;;  %v3269_v15 = vld [vmem:[%s3810_s26 + $0x168] sm:$0xff] }
 0x3f7   : > { %2637 = vst [vmem:[%s4704_s6 + $0x108] sm:$0xff] %v2381_v18 }
 0x3f8   : > { %2201 = vperm.xlu0 %3178, %v4808_v32   ;;  %1789 = vperm.xlu1 %3116, %v4819_v8  }
 0x3f9   : > { %1764 = vperm.xlu2 %3113, %v4700_v40  }
 0x3fa   : > { %v2050_v20 = vpop.permute.xlu0 %2049  ;;  %v1681_v56 = vpop.permute.xlu1 %1680 }
 0x3fb   : > { %v2504_v30 = vmul.f32 %v3254_v27, %v2050_v20  ;;  %v2505_v42 = vmul.f32 %v3255_v33, %v2050_v20  ;;  %v2382_v4 = vmul.f32 %v3256_v57, %v1681_v56  ;;  %v2383_v37 = vmul.f32 %v3257_v34, %v1681_v56  ;;  %v3270_v20 = vld [vmem:[%s3810_s26 + $0x580] sm:$0xff]  ;;  %v3271_v27 = vld [vmem:[%s3810_s26 + $0x588] sm:$0xff] }
 0x3fd   : > { %2760 = vst [vmem:[%s4704_s6 + $0x4e0] sm:$0xff] %v2504_v30 }
 0x3fe   : > { %2761 = vst [vmem:[%s4704_s6 + $0x4e8] sm:$0xff] %v2505_v42  ;;  %v3272_v42 = vld [vmem:[%s3810_s26 + $0x180] sm:$0xff] }
 0x3ff   : > { %2638 = vst [vmem:[%s4704_s6 + $0x110] sm:$0xff] %v2382_v4  ;;  %v3273_v4 = vld [vmem:[%s3810_s26 + $0x188] sm:$0xff] }
 0x400   : > { %2639 = vst [vmem:[%s4704_s6 + $0x118] sm:$0xff] %v2383_v37  ;;  %3183 = vset.pattern.permute.xlu0 %v4665_v29  ;;  %3118 = vset.pattern.permute.xlu1 %v4626_v19  ;;  %v3274_v37 = vld [vmem:[%s3810_s26 + $0x190] sm:$0xff] }
 0x401   : > { %3115 = vset.pattern.permute.xlu2 %v4611_v54 }
 0x403   : > { %v1693_v39 = vpop.permute.xlu2 %1692 }
 0x404   : > { %v2386_v25 = vmul.f32 %v3258_v35, %v1693_v39  ;;  %v2387_v52 = vmul.f32 %v3259_v48, %v1693_v39  ;;  %v3275_v35 = vld [vmem:[%s3810_s26 + $0x198] sm:$0xff]  ;;  %v4906_v48 = vperm.slane %v4614_v1, 7  ;;  %v3278_v1 = vld [vmem:[%s3810_s26 + $0x1a0] sm:$0xff] }
 0x406   : > { %2642 = vst [vmem:[%s4704_s6 + $0x130] sm:$0xff] %v2386_v25 }
 0x407   : > { %2643 = vst [vmem:[%s4704_s6 + $0x138] sm:$0xff] %v2387_v52 }
 0x408   : > { %1746 = vperm.xlu0 %3183, %v4700_v40   ;;  %1801 = vperm.xlu1 %3118, %v4819_v8  }
 0x409   : > { %1783 = vperm.xlu2 %3115, %v4819_v8  }
 0x40a   : > { %v2081_v63 = vpop.permute.xlu0 %2080  ;;  %v1699_v41 = vpop.permute.xlu1 %1698 }
 0x40b   : > { %v2514_v17 = vmul.f32 %v3260_v9, %v2081_v63  ;;  %v2515_v31 = vmul.f32 %v3261_v11, %v2081_v63  ;;  %v2388_v38 = vmul.f32 %v3262_v55, %v1699_v41  ;;  %v2389_v36 = vmul.f32 %v3263_v10, %v1699_v41  ;;  %v3276_v63 = vld [vmem:[%s3810_s26 + $0xd0] sm:$0xff]  ;;  %v3277_v9 = vld [vmem:[%s3810_s26 + $0xd8] sm:$0xff]  ;;  %v3279_v55 = vld [vmem:[%s3810_s26 + $0x1a8] sm:$0xff] }
 0x40d   : > { %2770 = vst [vmem:[%s4704_s6 + $0x530] sm:$0xff] %v2514_v17 }
 0x40e   : > { %2771 = vst [vmem:[%s4704_s6 + $0x538] sm:$0xff] %v2515_v31 }
 0x40f   : > { %2644 = vst [vmem:[%s4704_s6 + $0x140] sm:$0xff] %v2388_v38 }
 0x410   : > { %2645 = vst [vmem:[%s4704_s6 + $0x148] sm:$0xff] %v2389_v36  ;;  %2231 = vperm.xlu0 %3183, %v4808_v32   ;;  %3120 = vset.pattern.permute.xlu1 %v4729_v23 }
 0x411   : > { %3117 = vset.pattern.permute.xlu2 %v4644_v16 }
 0x413   : > { %v1705_v40 = vpop.permute.xlu2 %1704 }
 0x414   : > { %v2390_v28 = vmul.f32 %v3264_v50, %v1705_v40  ;;  %v2391_v26 = vmul.f32 %v3265_v44, %v1705_v40  ;;  %v3280_v40 = vld [vmem:[%s3810_s26 + $0x5d0] sm:$0xff] }
 0x416   : > { %2646 = vst [vmem:[%s4704_s6 + $0x150] sm:$0xff] %v2390_v28  ;;  %v3281_v28 = vld [vmem:[%s3810_s26 + $0x5d8] sm:$0xff] }
 0x417   : > { %2647 = vst [vmem:[%s4704_s6 + $0x158] sm:$0xff] %v2391_v26  ;;  %v3282_v26 = vld [vmem:[%s3810_s26 + $0x1b0] sm:$0xff] }
 0x418   : > { %3188 = vset.pattern.permute.xlu0 %v4692_v60  ;;  %1819 = vperm.xlu1 %3120, %v4819_v8  }
 0x419   : > { %1795 = vperm.xlu2 %3117, %v4819_v8  }
 0x41a   : > { %v1626_v58 = vpop.permute.xlu0 %1625  ;;  %v1711_v2 = vpop.permute.xlu1 %1710 }
 0x41b   : > { %v2364_v22 = vmul.f32 %v3266_v0, %v1626_v58  ;;  %v2365_v3 = vmul.f32 %v3267_v62, %v1626_v58  ;;  %v2392_v6 = vmul.f32 %v3268_v7, %v1711_v2  ;;  %v2393_v51 = vmul.f32 %v3269_v15, %v1711_v2  ;;  %v3283_v2 = vld [vmem:[%s3810_s26 + $0x1b8] sm:$0xff]  ;;  %v3284_v62 = vld [vmem:[%s3810_s26 + $0x1d0] sm:$0xff] }
 0x41c   : > { %v3285_v7 = vld [vmem:[%s3810_s26 + $0x1d8] sm:$0xff] }
 0x41d   : > { %2620 = vst [vmem:[%s4704_s6 + $0x80] sm:$0xff] %v2364_v22 }
 0x41e   : > { %2621 = vst [vmem:[%s4704_s6 + $0x88] sm:$0xff] %v2365_v3 }
 0x41f   : > { %2648 = vst [vmem:[%s4704_s6 + $0x160] sm:$0xff] %v2392_v6 }
 0x420   : > { %2649 = vst [vmem:[%s4704_s6 + $0x168] sm:$0xff] %v2393_v51  ;;  %1583 = vperm.xlu0 %3188, %v4617_v12   ;;  %3122 = vset.pattern.permute.xlu1 %v4638_v21 }
 0x421   : > { %3119 = vset.pattern.permute.xlu2 %v4641_v47 }
 0x422   : > { %v2111_v18 = vpop.permute.xlu0 %2110 }
 0x423   : > { %v2524_v56 = vmul.f32 %v3270_v20, %v2111_v18  ;;  %v2525_v30 = vmul.f32 %v3271_v27, %v2111_v18  ;;  %v1723_v33 = vpop.permute.xlu2 %1722  ;;  %v3286_v18 = vld [vmem:[%s3810_s26 + $0x120] sm:$0xff] }
 0x424   : > { %v2396_v57 = vmul.f32 %v3272_v42, %v1723_v33  ;;  %v2397_v34 = vmul.f32 %v3273_v4, %v1723_v33  ;;  %v3289_v42 = vld [vmem:[%s3810_s26 + $0x1e8] sm:$0xff] }
 0x425   : > { %2780 = vst [vmem:[%s4704_s6 + $0x580] sm:$0xff] %v2524_v56  ;;  %v3287_v56 = vld [vmem:[%s3810_s26 + $0x128] sm:$0xff] }
 0x426   : > { %2781 = vst [vmem:[%s4704_s6 + $0x588] sm:$0xff] %v2525_v30  ;;  %v3288_v30 = vld [vmem:[%s3810_s26 + $0x1e0] sm:$0xff] }
 0x427   : > { %2652 = vst [vmem:[%s4704_s6 + $0x180] sm:$0xff] %v2396_v57 }
 0x428   : > { %2653 = vst [vmem:[%s4704_s6 + $0x188] sm:$0xff] %v2397_v34  ;;  %1777 = vperm.xlu0 %3188, %v4819_v8   ;;  %1831 = vperm.xlu1 %3122, %v4819_v8   ;;  %v3290_v34 = vld [vmem:[%s3810_s26 + $0x620] sm:$0xff] }
 0x429   : > { %1813 = vperm.xlu2 %3119, %v4819_v8  }
 0x42a   : > { %v1729_v12 = vpop.permute.xlu1 %1728 }
 0x42b   : > { %v2398_v39 = vmul.f32 %v3274_v37, %v1729_v12  ;;  %v2399_v25 = vmul.f32 %v3275_v35, %v1729_v12  ;;  %v3291_v37 = vld [vmem:[%s3810_s26 + $0x628] sm:$0xff] }
 0x42d   : > { %2654 = vst [vmem:[%s4704_s6 + $0x190] sm:$0xff] %v2398_v39 }
 0x42e   : > { %2655 = vst [vmem:[%s4704_s6 + $0x198] sm:$0xff] %v2399_v25  ;;  %v3292_v25 = vld [vmem:[%s3810_s26 + $0x1f0] sm:$0xff] }
 0x430   : > { %2262 = vperm.xlu0 %3188, %v4906_v48   ;;  %3124 = vset.pattern.permute.xlu1 %v4759_v24 }
 0x431   : > { %3121 = vset.pattern.permute.xlu2 %v4668_v61 }
 0x432   : > { %v1656_v52 = vpop.permute.xlu0 %1655 }
 0x433   : > { %v2374_v41 = vmul.f32 %v3276_v63, %v1656_v52  ;;  %v2375_v17 = vmul.f32 %v3277_v9, %v1656_v52  ;;  %v1735_v11 = vpop.permute.xlu2 %1734  ;;  %v3293_v63 = vld [vmem:[%s3810_s26 + $0x1f8] sm:$0xff] }
 0x434   : > { %v2400_v31 = vmul.f32 %v3278_v1, %v1735_v11  ;;  %v2401_v38 = vmul.f32 %v3279_v55, %v1735_v11  ;;  %v3295_v1 = vld [vmem:[%s3810_s26 + $0x208] sm:$0xff]  ;;  %v3296_v55 = vld [vmem:[%s3810_s26 + $0x170] sm:$0xff] }
 0x435   : > { %2630 = vst [vmem:[%s4704_s6 + $0xd0] sm:$0xff] %v2374_v41 }
 0x436   : > { %2631 = vst [vmem:[%s4704_s6 + $0xd8] sm:$0xff] %v2375_v17  ;;  %v3294_v17 = vld [vmem:[%s3810_s26 + $0x200] sm:$0xff] }
 0x437   : > { %2656 = vst [vmem:[%s4704_s6 + $0x1a0] sm:$0xff] %v2400_v31 }
 0x438   : > { %2657 = vst [vmem:[%s4704_s6 + $0x1a8] sm:$0xff] %v2401_v38  ;;  %3193 = vset.pattern.permute.xlu0 %v4656_v43  ;;  %1849 = vperm.xlu1 %3124, %v4819_v8  }
 0x439   : > { %1825 = vperm.xlu2 %3121, %v4819_v8  }
 0x43a   : > { %v2141_v10 = vpop.permute.xlu0 %2140  ;;  %v1741_v36 = vpop.permute.xlu1 %1740 }
 0x43b   : > { %v2534_v50 = vmul.f32 %v3280_v40, %v2141_v10  ;;  %v2535_v44 = vmul.f32 %v3281_v28, %v2141_v10  ;;  %v2402_v58 = vmul.f32 %v3282_v26, %v1741_v36  ;;  %v2403_v0 = vmul.f32 %v3283_v2, %v1741_v36  ;;  %v3297_v10 = vld [vmem:[%s3810_s26 + $0x178] sm:$0xff] }
 0x43d   : > { %2790 = vst [vmem:[%s4704_s6 + $0x5d0] sm:$0xff] %v2534_v50  ;;  %v3298_v50 = vld [vmem:[%s3810_s26 + $0x220] sm:$0xff] }
 0x43e   : > { %2791 = vst [vmem:[%s4704_s6 + $0x5d8] sm:$0xff] %v2535_v44  ;;  %v3299_v44 = vld [vmem:[%s3810_s26 + $0x228] sm:$0xff] }
 0x43f   : > { %2658 = vst [vmem:[%s4704_s6 + $0x1b0] sm:$0xff] %v2402_v58 }
 0x440   : > { %2659 = vst [vmem:[%s4704_s6 + $0x1b8] sm:$0xff] %v2403_v0  ;;  %1807 = vperm.xlu0 %3193, %v4819_v8   ;;  %3126 = vset.pattern.permute.xlu1 %v4653_v46  ;;  %v3300_v0 = vld [vmem:[%s3810_s26 + $0x670] sm:$0xff] }
 0x441   : > { %3123 = vset.pattern.permute.xlu2 %v4665_v29 }
 0x443   : > { %v1753_v22 = vpop.permute.xlu2 %1752 }
 0x444   : > { %v2406_v3 = vmul.f32 %v3284_v62, %v1753_v22  ;;  %v2407_v6 = vmul.f32 %v3285_v7, %v1753_v22  ;;  %v3301_v62 = vld [vmem:[%s3810_s26 + $0x678] sm:$0xff]  ;;  %v3302_v7 = vld [vmem:[%s3810_s26 + $0x230] sm:$0xff] }
 0x446   : > { %2662 = vst [vmem:[%s4704_s6 + $0x1d0] sm:$0xff] %v2406_v3 }
 0x447   : > { %2663 = vst [vmem:[%s4704_s6 + $0x1d8] sm:$0xff] %v2407_v6 }
 0x448   : > { %2292 = vperm.xlu0 %3193, %v4906_v48   ;;  %1861 = vperm.xlu1 %3126, %v4819_v8  }
 0x449   : > { %1843 = vperm.xlu2 %3123, %v4819_v8  }
 0x44a   : > { %v1687_v15 = vpop.permute.xlu0 %1686  ;;  %v1759_v51 = vpop.permute.xlu1 %1758 }
 0x44b   : > { %v2384_v20 = vmul.f32 %v3286_v18, %v1687_v15  ;;  %v2385_v27 = vmul.f32 %v3287_v56, %v1687_v15  ;;  %v2408_v33 = vmul.f32 %v3288_v30, %v1759_v51  ;;  %v2409_v57 = vmul.f32 %v3289_v42, %v1759_v51  ;;  %v3303_v15 = vld [vmem:[%s3810_s26 + $0x238] sm:$0xff] }
 0x44d   : > { %2640 = vst [vmem:[%s4704_s6 + $0x120] sm:$0xff] %v2384_v20  ;;  %v3304_v20 = vld [vmem:[%s3810_s26 + $0x240] sm:$0xff] }
 0x44e   : > { %2641 = vst [vmem:[%s4704_s6 + $0x128] sm:$0xff] %v2385_v27  ;;  %v3305_v27 = vld [vmem:[%s3810_s26 + $0x248] sm:$0xff] }
 0x44f   : > { %2664 = vst [vmem:[%s4704_s6 + $0x1e0] sm:$0xff] %v2408_v33 }
 0x450   : > { %2665 = vst [vmem:[%s4704_s6 + $0x1e8] sm:$0xff] %v2409_v57  ;;  %3198 = vset.pattern.permute.xlu0 %v4680_v5  ;;  %3129 = vset.pattern.permute.xlu1 %v4611_v54  ;;  %v3306_v57 = vld [vmem:[%s3810_s26 + $0x1c0] sm:$0xff] }
 0x451   : > { %3125 = vset.pattern.permute.xlu2 %v4689_v14 }
 0x452   : > { %v2172_v4 = vpop.permute.xlu0 %2171 }
 0x453   : > { %v2544_v12 = vmul.f32 %v3290_v34, %v2172_v4  ;;  %v2545_v39 = vmul.f32 %v3291_v37, %v2172_v4  ;;  %v1765_v35 = vpop.permute.xlu2 %1764  ;;  %v3307_v34 = vld [vmem:[%s3810_s26 + $0x1c8] sm:$0xff]  ;;  %v3308_v37 = vld [vmem:[%s3810_s26 + $0x250] sm:$0xff] }
 0x454   : > { %v2410_v52 = vmul.f32 %v3292_v25, %v1765_v35  ;;  %v2411_v41 = vmul.f32 %v3293_v63, %v1765_v35  ;;  %v3309_v35 = vld [vmem:[%s3810_s26 + $0x258] sm:$0xff]  ;;  %v3310_v63 = vld [vmem:[%s3810_s26 + $0x6c0] sm:$0xff] }
 0x455   : > { %2800 = vst [vmem:[%s4704_s6 + $0x620] sm:$0xff] %v2544_v12 }
 0x456   : > { %2801 = vst [vmem:[%s4704_s6 + $0x628] sm:$0xff] %v2545_v39 }
 0x457   : > { %2666 = vst [vmem:[%s4704_s6 + $0x1f0] sm:$0xff] %v2410_v52 }
 0x458   : > { %2667 = vst [vmem:[%s4704_s6 + $0x1f8] sm:$0xff] %v2411_v41  ;;  %1837 = vperm.xlu0 %3198, %v4819_v8   ;;  %1880 = vperm.xlu1 %3129, %v4620_v13  }
 0x459   : > { %1855 = vperm.xlu2 %3125, %v4819_v8  }
 0x45a   : > { %v1772_v9 = vpop.permute.xlu1 %1771 }
 0x45b   : > { %v2412_v11 = vmul.f32 %v3294_v17, %v1772_v9  ;;  %v2413_v31 = vmul.f32 %v3295_v1, %v1772_v9  ;;  %v3311_v9 = vld [vmem:[%s3810_s26 + $0x6c8] sm:$0xff]  ;;  %v3312_v1 = vld [vmem:[%s3810_s26 + $0x270] sm:$0xff] }
 0x45d   : > { %2668 = vst [vmem:[%s4704_s6 + $0x200] sm:$0xff] %v2412_v11 }
 0x45e   : > { %2669 = vst [vmem:[%s4704_s6 + $0x208] sm:$0xff] %v2413_v31 }
 0x460   : > { %2322 = vperm.xlu0 %3198, %v4906_v48   ;;  %3131 = vset.pattern.permute.xlu1 %v4644_v16 }
 0x461   : > { %3128 = vset.pattern.permute.xlu2 %v4692_v60 }
 0x462   : > { %v1717_v8 = vpop.permute.xlu0 %1716 }
 0x463   : > { %v2394_v38 = vmul.f32 %v3296_v55, %v1717_v8  ;;  %v2395_v36 = vmul.f32 %v3297_v10, %v1717_v8  ;;  %v1784_v40 = vpop.permute.xlu2 %1783  ;;  %v3313_v8 = vld [vmem:[%s3810_s26 + $0x278] sm:$0xff]  ;;  %v3314_v10 = vld [vmem:[%s3810_s26 + $0x280] sm:$0xff] }
 0x464   : > { %v2416_v28 = vmul.f32 %v3298_v50, %v1784_v40  ;;  %v2417_v26 = vmul.f32 %v3299_v44, %v1784_v40  ;;  %v3315_v40 = vld [vmem:[%s3810_s26 + $0x288] sm:$0xff]  ;;  %v3316_v44 = vld [vmem:[%s3810_s26 + $0x10] sm:$0xff] }
 0x465   : > { %2650 = vst [vmem:[%s4704_s6 + $0x170] sm:$0xff] %v2394_v38 }
 0x466   : > { %2651 = vst [vmem:[%s4704_s6 + $0x178] sm:$0xff] %v2395_v36 }
 0x467   : > { %2672 = vst [vmem:[%s4704_s6 + $0x220] sm:$0xff] %v2416_v28 }
 0x468   : > { %2673 = vst [vmem:[%s4704_s6 + $0x228] sm:$0xff] %v2417_v26  ;;  %1892 = vperm.xlu1 %3131, %v4620_v13   ;;  %3207 = vset.pattern.permute.xlu0 %v4653_v46 }
 0x469   : > { %1874 = vperm.xlu2 %3128, %v4620_v13  }
 0x46a   : > { %v2202_v58 = vpop.permute.xlu0 %2201  ;;  %v1790_v2 = vpop.permute.xlu1 %1789 }
 0x46b   : > { %v2554_v22 = vmul.f32 %v3300_v0, %v2202_v58  ;;  %v2555_v3 = vmul.f32 %v3301_v62, %v2202_v58  ;;  %v2418_v6 = vmul.f32 %v3302_v7, %v1790_v2  ;;  %v2419_v51 = vmul.f32 %v3303_v15, %v1790_v2  ;;  %v3317_v58 = vld [vmem:[%s3810_s26 + $0x18] sm:$0xff] }
 0x46d   : > { %2810 = vst [vmem:[%s4704_s6 + $0x670] sm:$0xff] %v2554_v22  ;;  %v3318_v22 = vld [vmem:[%s3810_s26 + $0x290] sm:$0xff] }
 0x46e   : > { %2811 = vst [vmem:[%s4704_s6 + $0x678] sm:$0xff] %v2555_v3  ;;  %v3319_v3 = vld [vmem:[%s3810_s26 + $0x298] sm:$0xff] }
 0x46f   : > { %2674 = vst [vmem:[%s4704_s6 + $0x230] sm:$0xff] %v2418_v6 }
 0x470   : > { %2675 = vst [vmem:[%s4704_s6 + $0x238] sm:$0xff] %v2419_v51  ;;  %3134 = vset.pattern.permute.xlu1 %v4641_v47  ;;  %v3320_v51 = vld [vmem:[%s3810_s26 + $0x210] sm:$0xff] }
 0x471   : > { %3130 = vset.pattern.permute.xlu2 %v4629_v49 }
 0x473   : > { %v1796_v18 = vpop.permute.xlu2 %1795 }
 0x474   : > { %v2420_v56 = vmul.f32 %v3304_v20, %v1796_v18  ;;  %v2421_v30 = vmul.f32 %v3305_v27, %v1796_v18  ;;  %v3321_v20 = vld [vmem:[%s3810_s26 + $0x218] sm:$0xff]  ;;  %v3322_v27 = vld [vmem:[%s3810_s26 + $0x2a0] sm:$0xff] }
 0x476   : > { %2676 = vst [vmem:[%s4704_s6 + $0x240] sm:$0xff] %v2420_v56 }
 0x477   : > { %2677 = vst [vmem:[%s4704_s6 + $0x248] sm:$0xff] %v2421_v30 }
 0x478   : > { %1910 = vperm.xlu1 %3134, %v4620_v13  }
 0x479   : > { %1886 = vperm.xlu2 %3130, %v4620_v13  }
 0x47a   : > { %v1747_v33 = vpop.permute.xlu0 %1746  ;;  %v1802_v42 = vpop.permute.xlu1 %1801 }
 0x47b   : > { %v2404_v4 = vmul.f32 %v3306_v57, %v1747_v33  ;;  %v2405_v12 = vmul.f32 %v3307_v34, %v1747_v33  ;;  %v2422_v39 = vmul.f32 %v3308_v37, %v1802_v42  ;;  %v2423_v25 = vmul.f32 %v3309_v35, %v1802_v42  ;;  %v3323_v33 = vld [vmem:[%s3810_s26 + $0x2a8] sm:$0xff]  ;;  %v3326_v35 = vld [vmem:[%s3810_s26 + $0x2c0] sm:$0xff] }
 0x47d   : > { %2660 = vst [vmem:[%s4704_s6 + $0x1c0] sm:$0xff] %v2404_v4  ;;  %v3324_v4 = vld [vmem:[%s3810_s26 + $0x710] sm:$0xff] }
 0x47e   : > { %2661 = vst [vmem:[%s4704_s6 + $0x1c8] sm:$0xff] %v2405_v12  ;;  %v3325_v12 = vld [vmem:[%s3810_s26 + $0x718] sm:$0xff] }
 0x47f   : > { %2678 = vst [vmem:[%s4704_s6 + $0x250] sm:$0xff] %v2422_v39 }
 0x480   : > { %2679 = vst [vmem:[%s4704_s6 + $0x258] sm:$0xff] %v2423_v25  ;;  %3136 = vset.pattern.permute.xlu1 %v4668_v61 }
 0x481   : > { %3133 = vset.pattern.permute.xlu2 %v4656_v43 }
 0x482   : > { %v2232_v52 = vpop.permute.xlu0 %2231 }
 0x483   : > { %v2564_v41 = vmul.f32 %v3310_v63, %v2232_v52  ;;  %v2565_v17 = vmul.f32 %v3311_v9, %v2232_v52  ;;  %v1814_v11 = vpop.permute.xlu2 %1813  ;;  %v3327_v52 = vld [vmem:[%s3810_s26 + $0x2c8] sm:$0xff]  ;;  %v3328_v9 = vld [vmem:[%s3810_s26 + $0x2d0] sm:$0xff] }
 0x484   : > { %v2426_v31 = vmul.f32 %v3312_v1, %v1814_v11  ;;  %v2427_v55 = vmul.f32 %v3313_v8, %v1814_v11  ;;  %v3329_v11 = vld [vmem:[%s3810_s26 + $0x2d8] sm:$0xff]  ;;  %v3330_v8 = vld [vmem:[%s3810_s26 + $0x260] sm:$0xff] }
 0x485   : > { %2820 = vst [vmem:[%s4704_s6 + $0x6c0] sm:$0xff] %v2564_v41 }
 0x486   : > { %2821 = vst [vmem:[%s4704_s6 + $0x6c8] sm:$0xff] %v2565_v17 }
 0x487   : > { %2682 = vst [vmem:[%s4704_s6 + $0x270] sm:$0xff] %v2426_v31 }
 0x488   : > { %2683 = vst [vmem:[%s4704_s6 + $0x278] sm:$0xff] %v2427_v55  ;;  %1922 = vperm.xlu1 %3136, %v4620_v13  }
 0x489   : > { %1904 = vperm.xlu2 %3133, %v4620_v13  }
 0x48a   : > { %v1820_v38 = vpop.permute.xlu1 %1819 }
 0x48b   : > { %v2428_v36 = vmul.f32 %v3314_v10, %v1820_v38  ;;  %v2429_v50 = vmul.f32 %v3315_v40, %v1820_v38  ;;  %v3331_v38 = vld [vmem:[%s3810_s26 + $0x268] sm:$0xff]  ;;  %v3332_v40 = vld [vmem:[%s3810_s26 + $0x2e0] sm:$0xff] }
 0x48d   : > { %2684 = vst [vmem:[%s4704_s6 + $0x280] sm:$0xff] %v2428_v36 }
 0x48e   : > { %2685 = vst [vmem:[%s4704_s6 + $0x288] sm:$0xff] %v2429_v50 }
 0x490   : > { %3139 = vset.pattern.permute.xlu1 %v4665_v29 }
 0x491   : > { %3135 = vset.pattern.permute.xlu2 %v4729_v23 }
 0x492   : > { %v1584_v28 = vpop.permute.xlu0 %1583 }
 0x493   : > { %v2350_v26 = vmul.f32 %v3316_v44, %v1584_v28  ;;  %v2351_v2 = vmul.f32 %v3317_v58, %v1584_v28  ;;  %v1826_v0 = vpop.permute.xlu2 %1825  ;;  %v3333_v28 = vld [vmem:[%s3810_s26 + $0x2e8] sm:$0xff] }
 0x494   : > { %v2430_v62 = vmul.f32 %v3318_v22, %v1826_v0  ;;  %v2431_v7 = vmul.f32 %v3319_v3, %v1826_v0  ;;  %v3335_v22 = vld [vmem:[%s3810_s26 + $0x768] sm:$0xff]  ;;  %v3336_v3 = vld [vmem:[%s3810_s26 + $0x2f0] sm:$0xff] }
 0x495   : > { %2606 = vst [vmem:[%s4704_s6 + $0x10] sm:$0xff] %v2350_v26 }
 0x496   : > { %2607 = vst [vmem:[%s4704_s6 + $0x18] sm:$0xff] %v2351_v2  ;;  %v3334_v2 = vld [vmem:[%s3810_s26 + $0x760] sm:$0xff] }
 0x497   : > { %2686 = vst [vmem:[%s4704_s6 + $0x290] sm:$0xff] %v2430_v62 }
 0x498   : > { %2687 = vst [vmem:[%s4704_s6 + $0x298] sm:$0xff] %v2431_v7  ;;  %1940 = vperm.xlu1 %3139, %v4620_v13  }
 0x499   : > { %1916 = vperm.xlu2 %3135, %v4620_v13  }
 0x49a   : > { %v1778_v6 = vpop.permute.xlu0 %1777  ;;  %v1832_v15 = vpop.permute.xlu1 %1831 }
 0x49b   : > { %v2414_v18 = vmul.f32 %v3320_v51, %v1778_v6  ;;  %v2415_v56 = vmul.f32 %v3321_v20, %v1778_v6  ;;  %v2432_v30 = vmul.f32 %v3322_v27, %v1832_v15  ;;  %v2433_v42 = vmul.f32 %v3323_v33, %v1832_v15  ;;  %v3337_v6 = vld [vmem:[%s3810_s26 + $0x2f8] sm:$0xff]  ;;  %v3338_v51 = vld [vmem:[%s3810_s26 + $0x310] sm:$0xff] }
 0x49c   : > { %v3339_v20 = vld [vmem:[%s3810_s26 + $0x318] sm:$0xff]  ;;  %v3340_v33 = vld [vmem:[%s3810_s26 + $0x2b0] sm:$0xff] }
 0x49d   : > { %2670 = vst [vmem:[%s4704_s6 + $0x210] sm:$0xff] %v2414_v18 }
 0x49e   : > { %2671 = vst [vmem:[%s4704_s6 + $0x218] sm:$0xff] %v2415_v56 }
 0x49f   : > { %2688 = vst [vmem:[%s4704_s6 + $0x2a0] sm:$0xff] %v2432_v30 }
 0x4a0   : > { %2689 = vst [vmem:[%s4704_s6 + $0x2a8] sm:$0xff] %v2433_v42  ;;  %3141 = vset.pattern.permute.xlu1 %v4689_v14 }
 0x4a1   : > { %3138 = vset.pattern.permute.xlu2 %v4680_v5 }
 0x4a2   : > { %v2263_v57 = vpop.permute.xlu0 %2262 }
 0x4a3   : > { %v2574_v34 = vmul.f32 %v3324_v4, %v2263_v57  ;;  %v2575_v37 = vmul.f32 %v3325_v12, %v2263_v57  ;;  %v1844_v39 = vpop.permute.xlu2 %1843  ;;  %v3341_v57 = vld [vmem:[%s3810_s26 + $0x2b8] sm:$0xff] }
 0x4a4   : > { %v2436_v25 = vmul.f32 %v3326_v35, %v1844_v39  ;;  %v2437_v63 = vmul.f32 %v3327_v52, %v1844_v39 }
 0x4a5   : > { %2830 = vst [vmem:[%s4704_s6 + $0x710] sm:$0xff] %v2574_v34  ;;  %v3342_v34 = vld [vmem:[%s3810_s26 + $0x320] sm:$0xff] }
 0x4a6   : > { %2831 = vst [vmem:[%s4704_s6 + $0x718] sm:$0xff] %v2575_v37  ;;  %v3343_v37 = vld [vmem:[%s3810_s26 + $0x328] sm:$0xff] }
 0x4a7   : > { %2692 = vst [vmem:[%s4704_s6 + $0x2c0] sm:$0xff] %v2436_v25  ;;  %v3344_v25 = vld [vmem:[%s3810_s26 + $0x7b0] sm:$0xff] }
 0x4a8   : > { %2693 = vst [vmem:[%s4704_s6 + $0x2c8] sm:$0xff] %v2437_v63  ;;  %1952 = vperm.xlu1 %3141, %v4620_v13   ;;  %v3345_v63 = vld [vmem:[%s3810_s26 + $0x7b8] sm:$0xff] }
 0x4a9   : > { %1934 = vperm.xlu2 %3138, %v4620_v13  }
 0x4aa   : > { %v1850_v41 = vpop.permute.xlu1 %1849 }
 0x4ab   : > { %v2438_v17 = vmul.f32 %v3328_v9, %v1850_v41  ;;  %v2439_v1 = vmul.f32 %v3329_v11, %v1850_v41 }
 0x4ad   : > { %2694 = vst [vmem:[%s4704_s6 + $0x2d0] sm:$0xff] %v2438_v17  ;;  %v3346_v17 = vld [vmem:[%s3810_s26 + $0x330] sm:$0xff] }
 0x4ae   : > { %2695 = vst [vmem:[%s4704_s6 + $0x2d8] sm:$0xff] %v2439_v1  ;;  %v3347_v1 = vld [vmem:[%s3810_s26 + $0x338] sm:$0xff] }
 0x4b0   : > { %3144 = vset.pattern.permute.xlu1 %v4692_v60 }
 0x4b1   : > { %3140 = vset.pattern.permute.xlu2 %v4759_v24 }
 0x4b2   : > { %v1808_v31 = vpop.permute.xlu0 %1807 }
 0x4b3   : > { %v2424_v55 = vmul.f32 %v3330_v8, %v1808_v31  ;;  %v2425_v10 = vmul.f32 %v3331_v38, %v1808_v31  ;;  %v1856_v36 = vpop.permute.xlu2 %1855 }
 0x4b4   : > { %v2440_v50 = vmul.f32 %v3332_v40, %v1856_v36  ;;  %v2441_v44 = vmul.f32 %v3333_v28, %v1856_v36 }
 0x4b5   : > { %2680 = vst [vmem:[%s4704_s6 + $0x260] sm:$0xff] %v2424_v55  ;;  %v3348_v55 = vld [vmem:[%s3810_s26 + $0x340] sm:$0xff] }
 0x4b6   : > { %2681 = vst [vmem:[%s4704_s6 + $0x268] sm:$0xff] %v2425_v10  ;;  %v3349_v10 = vld [vmem:[%s3810_s26 + $0x348] sm:$0xff] }
 0x4b7   : > { %2696 = vst [vmem:[%s4704_s6 + $0x2e0] sm:$0xff] %v2440_v50  ;;  %v3350_v50 = vld [vmem:[%s3810_s26 + $0x360] sm:$0xff] }
 0x4b8   : > { %2697 = vst [vmem:[%s4704_s6 + $0x2e8] sm:$0xff] %v2441_v44  ;;  %1971 = vperm.xlu1 %3144, %v4674_v59   ;;  %v3351_v44 = vld [vmem:[%s3810_s26 + $0x368] sm:$0xff] }
 0x4b9   : > { %1946 = vperm.xlu2 %3140, %v4620_v13  }
 0x4ba   : > { %v2293_v26 = vpop.permute.xlu0 %2292  ;;  %v1862_v58 = vpop.permute.xlu1 %1861 }
 0x4bb   : > { %v2584_v0 = vmul.f32 %v3334_v2, %v2293_v26  ;;  %v2585_v62 = vmul.f32 %v3335_v22, %v2293_v26  ;;  %v2442_v7 = vmul.f32 %v3336_v3, %v1862_v58  ;;  %v2443_v15 = vmul.f32 %v3337_v6, %v1862_v58  ;;  %v3352_v2 = vld [vmem:[%s3810_s26 + $0x370] sm:$0xff]  ;;  %v3353_v22 = vld [vmem:[%s3810_s26 + $0x378] sm:$0xff] }
 0x4bd   : > { %2840 = vst [vmem:[%s4704_s6 + $0x760] sm:$0xff] %v2584_v0 }
 0x4be   : > { %2841 = vst [vmem:[%s4704_s6 + $0x768] sm:$0xff] %v2585_v62 }
 0x4bf   : > { %2698 = vst [vmem:[%s4704_s6 + $0x2f0] sm:$0xff] %v2442_v7  ;;  %v3354_v7 = vld [vmem:[%s3810_s26 + $0x380] sm:$0xff] }
 0x4c0   : > { %2699 = vst [vmem:[%s4704_s6 + $0x2f8] sm:$0xff] %v2443_v15  ;;  %3146 = vset.pattern.permute.xlu1 %v4629_v49  ;;  %v3355_v15 = vld [vmem:[%s3810_s26 + $0x388] sm:$0xff] }
 0x4c1   : > { %3143 = vset.pattern.permute.xlu2 %v4606_v45 }
 0x4c3   : > { %v1875_v13 = vpop.permute.xlu2 %1874 }
 0x4c4   : > { %v2446_v18 = vmul.f32 %v3338_v51, %v1875_v13  ;;  %v2447_v56 = vmul.f32 %v3339_v20, %v1875_v13 }
 0x4c6   : > { %2702 = vst [vmem:[%s4704_s6 + $0x310] sm:$0xff] %v2446_v18  ;;  %v3356_v18 = vld [vmem:[%s3810_s26 + $0x390] sm:$0xff] }
 0x4c7   : > { %2703 = vst [vmem:[%s4704_s6 + $0x318] sm:$0xff] %v2447_v56  ;;  %v3357_v56 = vld [vmem:[%s3810_s26 + $0x398] sm:$0xff] }
 0x4c8   : > { %1983 = vperm.xlu1 %3146, %v4674_v59  }
 0x4c9   : > { %1965 = vperm.xlu2 %3143, %v4674_v59  }
 0x4ca   : > { %v1838_v27 = vpop.permute.xlu0 %1837  ;;  %v1881_v30 = vpop.permute.xlu1 %1880 }
 0x4cb   : > { %v2434_v42 = vmul.f32 %v3340_v33, %v1838_v27  ;;  %v2435_v4 = vmul.f32 %v3341_v57, %v1838_v27  ;;  %v2448_v12 = vmul.f32 %v3342_v34, %v1881_v30  ;;  %v2449_v39 = vmul.f32 %v3343_v37, %v1881_v30  ;;  %v3358_v33 = vld [vmem:[%s3810_s26 + $0x3b0] sm:$0xff]  ;;  %v3359_v57 = vld [vmem:[%s3810_s26 + $0x3b8] sm:$0xff] }
 0x4cd   : > { %2690 = vst [vmem:[%s4704_s6 + $0x2b0] sm:$0xff] %v2434_v42 }
 0x4ce   : > { %2691 = vst [vmem:[%s4704_s6 + $0x2b8] sm:$0xff] %v2435_v4 }
 0x4cf   : > { %2704 = vst [vmem:[%s4704_s6 + $0x320] sm:$0xff] %v2448_v12  ;;  %v3360_v12 = vld [vmem:[%s3810_s26 + $0x3c0] sm:$0xff] }
 0x4d0   : > { %2705 = vst [vmem:[%s4704_s6 + $0x328] sm:$0xff] %v2449_v39  ;;  %3149 = vset.pattern.permute.xlu1 %v4656_v43  ;;  %v3361_v39 = vld [vmem:[%s3810_s26 + $0x3c8] sm:$0xff] }
 0x4d1   : > { %3145 = vset.pattern.permute.xlu2 %v4611_v54 }
 0x4d2   : > { %v2323_v35 = vpop.permute.xlu0 %2322 }
 0x4d3   : > { %v2594_v52 = vmul.f32 %v3344_v25, %v2323_v35  ;;  %v2595_v41 = vmul.f32 %v3345_v63, %v2323_v35  ;;  %v1887_v9 = vpop.permute.xlu2 %1886 }
 0x4d4   : > { %v2450_v11 = vmul.f32 %v3346_v17, %v1887_v9  ;;  %v2451_v31 = vmul.f32 %v3347_v1, %v1887_v9 }
 0x4d5   : > { %2850 = vst [vmem:[%s4704_s6 + $0x7b0] sm:$0xff] %v2594_v52  ;;  %v3362_v52 = vld [vmem:[%s3810_s26 + $0x3d0] sm:$0xff] }
 0x4d6   : > { %2851 = vst [vmem:[%s4704_s6 + $0x7b8] sm:$0xff] %v2595_v41  ;;  %v3363_v41 = vld [vmem:[%s3810_s26 + $0x3d8] sm:$0xff] }
 0x4d7   : > { %2706 = vst [vmem:[%s4704_s6 + $0x330] sm:$0xff] %v2450_v11  ;;  %v3364_v11 = vld [vmem:[%s3810_s26 + $0x3e0] sm:$0xff] }
 0x4d8   : > { %2707 = vst [vmem:[%s4704_s6 + $0x338] sm:$0xff] %v2451_v31  ;;  %2001 = vperm.xlu1 %3149, %v4674_v59   ;;  %v3365_v31 = vld [vmem:[%s3810_s26 + $0x3e8] sm:$0xff] }
 0x4d9   : > { %1977 = vperm.xlu2 %3145, %v4674_v59  }
 0x4da   : > { %v1893_v8 = vpop.permute.xlu1 %1892 }
 0x4db   : > { %v2452_v38 = vmul.f32 %v3348_v55, %v1893_v8  ;;  %v2453_v36 = vmul.f32 %v3349_v10, %v1893_v8 }
 0x4dd   : > { %2708 = vst [vmem:[%s4704_s6 + $0x340] sm:$0xff] %v2452_v38  ;;  %v3366_v38 = vld [vmem:[%s3810_s26 + $0x400] sm:$0xff] }
 0x4de   : > { %2709 = vst [vmem:[%s4704_s6 + $0x348] sm:$0xff] %v2453_v36  ;;  %v3367_v36 = vld [vmem:[%s3810_s26 + $0x408] sm:$0xff] }
 0x4e0   : > { %3151 = vset.pattern.permute.xlu1 %v4729_v23 }
 0x4e1   : > { %3148 = vset.pattern.permute.xlu2 %v4626_v19 }
 0x4e3   : > { %v1905_v40 = vpop.permute.xlu2 %1904 }
 0x4e4   : > { %v2456_v28 = vmul.f32 %v3350_v50, %v1905_v40  ;;  %v2457_v26 = vmul.f32 %v3351_v44, %v1905_v40 }
 0x4e6   : > { %2712 = vst [vmem:[%s4704_s6 + $0x360] sm:$0xff] %v2456_v28  ;;  %v3368_v28 = vld [vmem:[%s3810_s26 + $0x410] sm:$0xff] }
 0x4e7   : > { %2713 = vst [vmem:[%s4704_s6 + $0x368] sm:$0xff] %v2457_v26  ;;  %v3369_v26 = vld [vmem:[%s3810_s26 + $0x418] sm:$0xff] }
 0x4e8   : > { %2013 = vperm.xlu1 %3151, %v4674_v59  }
 0x4e9   : > { %1995 = vperm.xlu2 %3148, %v4674_v59  }
 0x4ea   : > { %v1911_v58 = vpop.permute.xlu1 %1910 }
 0x4eb   : > { %v2458_v0 = vmul.f32 %v3352_v2, %v1911_v58  ;;  %v2459_v62 = vmul.f32 %v3353_v22, %v1911_v58 }
 0x4ed   : > { %2714 = vst [vmem:[%s4704_s6 + $0x370] sm:$0xff] %v2458_v0  ;;  %v3370_v0 = vld [vmem:[%s3810_s26 + $0x420] sm:$0xff] }
 0x4ee   : > { %2715 = vst [vmem:[%s4704_s6 + $0x378] sm:$0xff] %v2459_v62 }
 0x4f0   : > { %3154 = vset.pattern.permute.xlu1 %v4680_v5 }
 0x4f1   : > { %3150 = vset.pattern.permute.xlu2 %v4641_v47 }
 0x4f3   : > { %v1917_v3 = vpop.permute.xlu2 %1916 }
 0x4f4   : > { %v2460_v6 = vmul.f32 %v3354_v7, %v1917_v3  ;;  %v2461_v13 = vmul.f32 %v3355_v15, %v1917_v3  ;;  %v3372_v7 = vld [vmem:[%s3810_s26 + $0x430] sm:$0xff]  ;;  %v3373_v15 = vld [vmem:[%s3810_s26 + $0x438] sm:$0xff] }
 0x4f6   : > { %2716 = vst [vmem:[%s4704_s6 + $0x380] sm:$0xff] %v2460_v6 }
 0x4f7   : > { %2717 = vst [vmem:[%s4704_s6 + $0x388] sm:$0xff] %v2461_v13 }
 0x4f8   : > { %2031 = vperm.xlu1 %3154, %v4674_v59  }
 0x4f9   : > { %2007 = vperm.xlu2 %3150, %v4674_v59  }
 0x4fa   : > { %v1923_v51 = vpop.permute.xlu1 %1922 }
 0x4fb   : > { %v2462_v20 = vmul.f32 %v3356_v18, %v1923_v51  ;;  %v2463_v27 = vmul.f32 %v3357_v56, %v1923_v51  ;;  %v3374_v18 = vld [vmem:[%s3810_s26 + $0x450] sm:$0xff]  ;;  %v3375_v56 = vld [vmem:[%s3810_s26 + $0x458] sm:$0xff] }
 0x4fd   : > { %2718 = vst [vmem:[%s4704_s6 + $0x390] sm:$0xff] %v2462_v20 }
 0x4fe   : > { %2719 = vst [vmem:[%s4704_s6 + $0x398] sm:$0xff] %v2463_v27 }
 0x500   : > { %3156 = vset.pattern.permute.xlu1 %v4759_v24 }
 0x501   : > { %3153 = vset.pattern.permute.xlu2 %v4638_v21 }
 0x503   : > { %v1935_v30 = vpop.permute.xlu2 %1934 }
 0x504   : > { %v2466_v42 = vmul.f32 %v3358_v33, %v1935_v30  ;;  %v2467_v4 = vmul.f32 %v3359_v57, %v1935_v30  ;;  %v3376_v33 = vld [vmem:[%s3810_s26 + $0x460] sm:$0xff]  ;;  %v3377_v57 = vld [vmem:[%s3810_s26 + $0x468] sm:$0xff] }
 0x506   : > { %2722 = vst [vmem:[%s4704_s6 + $0x3b0] sm:$0xff] %v2466_v42 }
 0x507   : > { %2723 = vst [vmem:[%s4704_s6 + $0x3b8] sm:$0xff] %v2467_v4 }
 0x508   : > { %2043 = vperm.xlu1 %3156, %v4674_v59  }
 0x509   : > { %2025 = vperm.xlu2 %3153, %v4674_v59  }
 0x50a   : > { %v1941_v34 = vpop.permute.xlu1 %1940 }
 0x50b   : > { %v2468_v37 = vmul.f32 %v3360_v12, %v1941_v34  ;;  %v2469_v35 = vmul.f32 %v3361_v39, %v1941_v34  ;;  %v3378_v12 = vld [vmem:[%s3810_s26 + $0x470] sm:$0xff]  ;;  %v3379_v39 = vld [vmem:[%s3810_s26 + $0x478] sm:$0xff] }
 0x50d   : > { %2724 = vst [vmem:[%s4704_s6 + $0x3c0] sm:$0xff] %v2468_v37 }
 0x50e   : > { %2725 = vst [vmem:[%s4704_s6 + $0x3c8] sm:$0xff] %v2469_v35 }
 0x510   : > { %3159 = vset.pattern.permute.xlu1 %v4606_v45 }
 0x511   : > { %3155 = vset.pattern.permute.xlu2 %v4665_v29 }
 0x513   : > { %v1947_v25 = vpop.permute.xlu2 %1946 }
 0x514   : > { %v2470_v63 = vmul.f32 %v3362_v52, %v1947_v25  ;;  %v2471_v9 = vmul.f32 %v3363_v41, %v1947_v25  ;;  %v3380_v52 = vld [vmem:[%s3810_s26 + $0x480] sm:$0xff]  ;;  %v3381_v41 = vld [vmem:[%s3810_s26 + $0x488] sm:$0xff] }
 0x516   : > { %2726 = vst [vmem:[%s4704_s6 + $0x3d0] sm:$0xff] %v2470_v63 }
 0x517   : > { %2727 = vst [vmem:[%s4704_s6 + $0x3d8] sm:$0xff] %v2471_v9 }
 0x518   : > { %2062 = vperm.xlu1 %3159, %v4717_v53  }
 0x519   : > { %2037 = vperm.xlu2 %3155, %v4674_v59  }
 0x51a   : > { %v1953_v17 = vpop.permute.xlu1 %1952 }
 0x51b   : > { %v2472_v1 = vmul.f32 %v3364_v11, %v1953_v17  ;;  %v2473_v8 = vmul.f32 %v3365_v31, %v1953_v17  ;;  %v3382_v11 = vld [vmem:[%s3810_s26 + $0x4a0] sm:$0xff]  ;;  %v3383_v31 = vld [vmem:[%s3810_s26 + $0x4a8] sm:$0xff] }
 0x51d   : > { %2728 = vst [vmem:[%s4704_s6 + $0x3e0] sm:$0xff] %v2472_v1 }
 0x51e   : > { %2729 = vst [vmem:[%s4704_s6 + $0x3e8] sm:$0xff] %v2473_v8 }
 0x520   : > { %3161 = vset.pattern.permute.xlu1 %v4611_v54 }
 0x521   : > { %3158 = vset.pattern.permute.xlu2 %v4653_v46 }
 0x523   : > { %v1966_v55 = vpop.permute.xlu2 %1965 }
 0x524   : > { %v2476_v10 = vmul.f32 %v3366_v38, %v1966_v55  ;;  %v2477_v40 = vmul.f32 %v3367_v36, %v1966_v55  ;;  %v3384_v38 = vld [vmem:[%s3810_s26 + $0x4b0] sm:$0xff]  ;;  %v3385_v36 = vld [vmem:[%s3810_s26 + $0x4b8] sm:$0xff] }
 0x526   : > { %2732 = vst [vmem:[%s4704_s6 + $0x400] sm:$0xff] %v2476_v10 }
 0x527   : > { %2733 = vst [vmem:[%s4704_s6 + $0x408] sm:$0xff] %v2477_v40 }
 0x528   : > { %2074 = vperm.xlu1 %3161, %v4717_v53  }
 0x529   : > { %2055 = vperm.xlu2 %3158, %v4674_v59   ;;  %v3371_v59 = vld [vmem:[%s3810_s26 + $0x428] sm:$0xff] }
 0x52a   : > { %v1972_v50 = vpop.permute.xlu1 %1971 }
 0x52b   : > { %v2478_v44 = vmul.f32 %v3368_v28, %v1972_v50  ;;  %v2479_v58 = vmul.f32 %v3369_v26, %v1972_v50  ;;  %v3386_v28 = vld [vmem:[%s3810_s26 + $0x4c0] sm:$0xff]  ;;  %v3387_v26 = vld [vmem:[%s3810_s26 + $0x4c8] sm:$0xff] }
 0x52d   : > { %2734 = vst [vmem:[%s4704_s6 + $0x410] sm:$0xff] %v2478_v44 }
 0x52e   : > { %2735 = vst [vmem:[%s4704_s6 + $0x418] sm:$0xff] %v2479_v58 }
 0x530   : > { %3165 = vset.pattern.permute.xlu1 %v4626_v19 }
 0x531   : > { %3160 = vset.pattern.permute.xlu2 %v4692_v60 }
 0x533   : > { %v1978_v2 = vpop.permute.xlu2 %1977 }
 0x534   : > { %v2480_v22 = vmul.f32 %v3370_v0, %v1978_v2  ;;  %v2481_v62 = vmul.f32 %v3371_v59, %v1978_v2  ;;  %v3388_v0 = vld [vmem:[%s3810_s26 + $0x4d0] sm:$0xff]  ;;  %v3389_v59 = vld [vmem:[%s3810_s26 + $0x4d8] sm:$0xff] }
 0x536   : > { %2736 = vst [vmem:[%s4704_s6 + $0x420] sm:$0xff] %v2480_v22 }
 0x537   : > { %2737 = vst [vmem:[%s4704_s6 + $0x428] sm:$0xff] %v2481_v62 }
 0x538   : > { %2092 = vperm.xlu1 %3165, %v4717_v53  }
 0x539   : > { %2068 = vperm.xlu2 %3160, %v4717_v53  }
 0x53a   : > { %v1984_v3 = vpop.permute.xlu1 %1983 }
 0x53b   : > { %v2482_v6 = vmul.f32 %v3372_v7, %v1984_v3  ;;  %v2483_v13 = vmul.f32 %v3373_v15, %v1984_v3  ;;  %v3390_v7 = vld [vmem:[%s3810_s26 + $0x4f0] sm:$0xff]  ;;  %v3391_v15 = vld [vmem:[%s3810_s26 + $0x4f8] sm:$0xff] }
 0x53d   : > { %2738 = vst [vmem:[%s4704_s6 + $0x430] sm:$0xff] %v2482_v6 }
 0x53e   : > { %2739 = vst [vmem:[%s4704_s6 + $0x438] sm:$0xff] %v2483_v13 }
 0x540   : > { %3167 = vset.pattern.permute.xlu1 %v4641_v47 }
 0x541   : > { %3164 = vset.pattern.permute.xlu2 %v4644_v16 }
 0x543   : > { %v1996_v51 = vpop.permute.xlu2 %1995 }
 0x544   : > { %v2486_v20 = vmul.f32 %v3374_v18, %v1996_v51  ;;  %v2487_v27 = vmul.f32 %v3375_v56, %v1996_v51  ;;  %v3392_v51 = vld [vmem:[%s3810_s26 + $0x500] sm:$0xff] }
 0x546   : > { %2742 = vst [vmem:[%s4704_s6 + $0x450] sm:$0xff] %v2486_v20  ;;  %v3393_v20 = vld [vmem:[%s3810_s26 + $0x508] sm:$0xff] }
 0x547   : > { %2743 = vst [vmem:[%s4704_s6 + $0x458] sm:$0xff] %v2487_v27 }
 0x548   : > { %2104 = vperm.xlu1 %3167, %v4717_v53  }
 0x549   : > { %2086 = vperm.xlu2 %3164, %v4717_v53  }
 0x54a   : > { %v2002_v30 = vpop.permute.xlu1 %2001 }
 0x54b   : > { %v2488_v42 = vmul.f32 %v3376_v33, %v2002_v30  ;;  %v2489_v4 = vmul.f32 %v3377_v57, %v2002_v30  ;;  %v3394_v30 = vld [vmem:[%s3810_s26 + $0x510] sm:$0xff] }
 0x54d   : > { %2744 = vst [vmem:[%s4704_s6 + $0x460] sm:$0xff] %v2488_v42 }
 0x54e   : > { %2745 = vst [vmem:[%s4704_s6 + $0x468] sm:$0xff] %v2489_v4  ;;  %v3396_v4 = vld [vmem:[%s3810_s26 + $0x520] sm:$0xff] }
 0x550   : > { %3170 = vset.pattern.permute.xlu1 %v4638_v21 }
 0x551   : > { %3166 = vset.pattern.permute.xlu2 %v4656_v43 }
 0x553   : > { %v2008_v34 = vpop.permute.xlu2 %2007 }
 0x554   : > { %v2490_v37 = vmul.f32 %v3378_v12, %v2008_v34  ;;  %v2491_v35 = vmul.f32 %v3379_v39, %v2008_v34  ;;  %v3397_v12 = vld [vmem:[%s3810_s26 + $0x528] sm:$0xff] }
 0x556   : > { %2746 = vst [vmem:[%s4704_s6 + $0x470] sm:$0xff] %v2490_v37 }
 0x557   : > { %2747 = vst [vmem:[%s4704_s6 + $0x478] sm:$0xff] %v2491_v35  ;;  %v3398_v35 = vld [vmem:[%s3810_s26 + $0x540] sm:$0xff] }
 0x558   : > { %2122 = vperm.xlu1 %3170, %v4717_v53  }
 0x559   : > { %2098 = vperm.xlu2 %3166, %v4717_v53  }
 0x55a   : > { %v2014_v25 = vpop.permute.xlu1 %2013 }
 0x55b   : > { %v2492_v63 = vmul.f32 %v3380_v52, %v2014_v25  ;;  %v2493_v9 = vmul.f32 %v3381_v41, %v2014_v25  ;;  %v3399_v52 = vld [vmem:[%s3810_s26 + $0x548] sm:$0xff]  ;;  %v3400_v41 = vld [vmem:[%s3810_s26 + $0x550] sm:$0xff] }
 0x55d   : > { %2748 = vst [vmem:[%s4704_s6 + $0x480] sm:$0xff] %v2492_v63 }
 0x55e   : > { %2749 = vst [vmem:[%s4704_s6 + $0x488] sm:$0xff] %v2493_v9 }
 0x560   : > { %3172 = vset.pattern.permute.xlu1 %v4665_v29 }
 0x561   : > { %3169 = vset.pattern.permute.xlu2 %v4668_v61 }
 0x563   : > { %v2026_v17 = vpop.permute.xlu2 %2025 }
 0x564   : > { %v2496_v1 = vmul.f32 %v3382_v11, %v2026_v17  ;;  %v2497_v8 = vmul.f32 %v3383_v31, %v2026_v17  ;;  %v3401_v17 = vld [vmem:[%s3810_s26 + $0x558] sm:$0xff]  ;;  %v3402_v31 = vld [vmem:[%s3810_s26 + $0x560] sm:$0xff] }
 0x566   : > { %2752 = vst [vmem:[%s4704_s6 + $0x4a0] sm:$0xff] %v2496_v1 }
 0x567   : > { %2753 = vst [vmem:[%s4704_s6 + $0x4a8] sm:$0xff] %v2497_v8 }
 0x568   : > { %2134 = vperm.xlu1 %3172, %v4717_v53  }
 0x569   : > { %2116 = vperm.xlu2 %3169, %v4717_v53  }
 0x56a   : > { %v2032_v55 = vpop.permute.xlu1 %2031 }
 0x56b   : > { %v2498_v10 = vmul.f32 %v3384_v38, %v2032_v55  ;;  %v2499_v40 = vmul.f32 %v3385_v36, %v2032_v55  ;;  %v3403_v55 = vld [vmem:[%s3810_s26 + $0x568] sm:$0xff]  ;;  %v3404_v36 = vld [vmem:[%s3810_s26 + $0x570] sm:$0xff] }
 0x56d   : > { %2754 = vst [vmem:[%s4704_s6 + $0x4b0] sm:$0xff] %v2498_v10 }
 0x56e   : > { %2755 = vst [vmem:[%s4704_s6 + $0x4b8] sm:$0xff] %v2499_v40 }
 0x570   : > { %3175 = vset.pattern.permute.xlu1 %v4653_v46 }
 0x571   : > { %3171 = vset.pattern.permute.xlu2 %v4680_v5 }
 0x573   : > { %v2038_v50 = vpop.permute.xlu2 %2037 }
 0x574   : > { %v2500_v44 = vmul.f32 %v3386_v28, %v2038_v50  ;;  %v2501_v58 = vmul.f32 %v3387_v26, %v2038_v50  ;;  %v3405_v50 = vld [vmem:[%s3810_s26 + $0x578] sm:$0xff]  ;;  %v3406_v26 = vld [vmem:[%s3810_s26 + $0x590] sm:$0xff] }
 0x576   : > { %2756 = vst [vmem:[%s4704_s6 + $0x4c0] sm:$0xff] %v2500_v44 }
 0x577   : > { %2757 = vst [vmem:[%s4704_s6 + $0x4c8] sm:$0xff] %v2501_v58 }
 0x578   : > { %2152 = vperm.xlu1 %3175, %v4717_v53  }
 0x579   : > { %2128 = vperm.xlu2 %3171, %v4717_v53  }
 0x57a   : > { %v2044_v2 = vpop.permute.xlu1 %2043 }
 0x57b   : > { %v2502_v22 = vmul.f32 %v3388_v0, %v2044_v2  ;;  %v2503_v62 = vmul.f32 %v3389_v59, %v2044_v2  ;;  %v3407_v2 = vld [vmem:[%s3810_s26 + $0x598] sm:$0xff] }
 0x57d   : > { %2758 = vst [vmem:[%s4704_s6 + $0x4d0] sm:$0xff] %v2502_v22  ;;  %v3408_v22 = vld [vmem:[%s3810_s26 + $0x5a0] sm:$0xff] }
 0x57e   : > { %2759 = vst [vmem:[%s4704_s6 + $0x4d8] sm:$0xff] %v2503_v62  ;;  %v3409_v62 = vld [vmem:[%s3810_s26 + $0x5a8] sm:$0xff] }
 0x580   : > { %3177 = vset.pattern.permute.xlu1 %v4692_v60 }
 0x581   : > { %3174 = vset.pattern.permute.xlu2 %v4689_v14 }
 0x583   : > { %v2056_v3 = vpop.permute.xlu2 %2055 }
 0x584   : > { %v2506_v6 = vmul.f32 %v3390_v7, %v2056_v3  ;;  %v2507_v13 = vmul.f32 %v3391_v15, %v2056_v3 }
 0x586   : > { %2762 = vst [vmem:[%s4704_s6 + $0x4f0] sm:$0xff] %v2506_v6  ;;  %v3410_v6 = vld [vmem:[%s3810_s26 + $0x5b0] sm:$0xff] }
 0x587   : > { %2763 = vst [vmem:[%s4704_s6 + $0x4f8] sm:$0xff] %v2507_v13  ;;  %v3411_v13 = vld [vmem:[%s3810_s26 + $0x5b8] sm:$0xff] }
 0x588   : > { %2165 = vperm.xlu1 %3177, %v4808_v32  }
 0x589   : > { %2146 = vperm.xlu2 %3174, %v4717_v53   ;;  %v3395_v53 = vld [vmem:[%s3810_s26 + $0x518] sm:$0xff] }
 0x58a   : > { %v2063_v60 = vpop.permute.xlu1 %2062 }
 0x58b   : > { %v2508_v18 = vmul.f32 %v3392_v51, %v2063_v60  ;;  %v2509_v56 = vmul.f32 %v3393_v20, %v2063_v60 }
 0x58d   : > { %2764 = vst [vmem:[%s4704_s6 + $0x500] sm:$0xff] %v2508_v18  ;;  %v3412_v18 = vld [vmem:[%s3810_s26 + $0x5c0] sm:$0xff] }
 0x58e   : > { %2765 = vst [vmem:[%s4704_s6 + $0x508] sm:$0xff] %v2509_v56  ;;  %v3413_v56 = vld [vmem:[%s3810_s26 + $0x5c8] sm:$0xff] }
 0x590   : > { %3180 = vset.pattern.permute.xlu1 %v4644_v16 }
 0x591   : > { %3176 = vset.pattern.permute.xlu2 %v4606_v45 }
 0x593   : > { %v2069_v27 = vpop.permute.xlu2 %2068 }
 0x594   : > { %v2510_v33 = vmul.f32 %v3394_v30, %v2069_v27  ;;  %v2511_v42 = vmul.f32 %v3395_v53, %v2069_v27 }
 0x596   : > { %2766 = vst [vmem:[%s4704_s6 + $0x510] sm:$0xff] %v2510_v33  ;;  %v3414_v33 = vld [vmem:[%s3810_s26 + $0x5e0] sm:$0xff] }
 0x597   : > { %2767 = vst [vmem:[%s4704_s6 + $0x518] sm:$0xff] %v2511_v42  ;;  %v3415_v42 = vld [vmem:[%s3810_s26 + $0x5e8] sm:$0xff] }
 0x598   : > { %2183 = vperm.xlu1 %3180, %v4808_v32  }
 0x599   : > { %2159 = vperm.xlu2 %3176, %v4808_v32  }
 0x59a   : > { %v2075_v57 = vpop.permute.xlu1 %2074 }
 0x59b   : > { %v2512_v34 = vmul.f32 %v3396_v4, %v2075_v57  ;;  %v2513_v37 = vmul.f32 %v3397_v12, %v2075_v57  ;;  %v3416_v4 = vld [vmem:[%s3810_s26 + $0x5f0] sm:$0xff]  ;;  %v3417_v12 = vld [vmem:[%s3810_s26 + $0x5f8] sm:$0xff] }
 0x59d   : > { %2768 = vst [vmem:[%s4704_s6 + $0x520] sm:$0xff] %v2512_v34 }
 0x59e   : > { %2769 = vst [vmem:[%s4704_s6 + $0x528] sm:$0xff] %v2513_v37 }
 0x5a0   : > { %3182 = vset.pattern.permute.xlu1 %v4656_v43 }
 0x5a1   : > { %3179 = vset.pattern.permute.xlu2 %v4629_v49 }
 0x5a3   : > { %v2087_v39 = vpop.permute.xlu2 %2086 }
 0x5a4   : > { %v2516_v25 = vmul.f32 %v3398_v35, %v2087_v39  ;;  %v2517_v63 = vmul.f32 %v3399_v52, %v2087_v39  ;;  %v3418_v35 = vld [vmem:[%s3810_s26 + $0x600] sm:$0xff]  ;;  %v3419_v52 = vld [vmem:[%s3810_s26 + $0x608] sm:$0xff] }
 0x5a6   : > { %2772 = vst [vmem:[%s4704_s6 + $0x540] sm:$0xff] %v2516_v25 }
 0x5a7   : > { %2773 = vst [vmem:[%s4704_s6 + $0x548] sm:$0xff] %v2517_v63 }
 0x5a8   : > { %2195 = vperm.xlu1 %3182, %v4808_v32  }
 0x5a9   : > { %2177 = vperm.xlu2 %3179, %v4808_v32  }
 0x5aa   : > { %v2093_v43 = vpop.permute.xlu1 %2092 }
 0x5ab   : > { %v2518_v9 = vmul.f32 %v3400_v41, %v2093_v43  ;;  %v2519_v11 = vmul.f32 %v3401_v17, %v2093_v43  ;;  %v3420_v43 = vld [vmem:[%s3810_s26 + $0x610] sm:$0xff] }
 0x5ad   : > { %2774 = vst [vmem:[%s4704_s6 + $0x550] sm:$0xff] %v2518_v9  ;;  %v3421_v9 = vld [vmem:[%s3810_s26 + $0x618] sm:$0xff] }
 0x5ae   : > { %2775 = vst [vmem:[%s4704_s6 + $0x558] sm:$0xff] %v2519_v11 }
 0x5b0   : > { %3185 = vset.pattern.permute.xlu1 %v4668_v61 }
 0x5b1   : > { %3181 = vset.pattern.permute.xlu2 %v4626_v19 }
 0x5b3   : > { %v2099_v1 = vpop.permute.xlu2 %2098 }
 0x5b4   : > { %v2520_v8 = vmul.f32 %v3402_v31, %v2099_v1  ;;  %v2521_v38 = vmul.f32 %v3403_v55, %v2099_v1  ;;  %v3422_v1 = vld [vmem:[%s3810_s26 + $0x630] sm:$0xff]  ;;  %v3424_v55 = vld [vmem:[%s3810_s26 + $0x640] sm:$0xff] }
 0x5b6   : > { %2776 = vst [vmem:[%s4704_s6 + $0x560] sm:$0xff] %v2520_v8 }
 0x5b7   : > { %2777 = vst [vmem:[%s4704_s6 + $0x568] sm:$0xff] %v2521_v38 }
 0x5b8   : > { %2213 = vperm.xlu1 %3185, %v4808_v32  }
 0x5b9   : > { %2189 = vperm.xlu2 %3181, %v4808_v32  }
 0x5ba   : > { %v2105_v10 = vpop.permute.xlu1 %2104 }
 0x5bb   : > { %v2522_v40 = vmul.f32 %v3404_v36, %v2105_v10  ;;  %v2523_v28 = vmul.f32 %v3405_v50, %v2105_v10 }
 0x5bd   : > { %2778 = vst [vmem:[%s4704_s6 + $0x570] sm:$0xff] %v2522_v40  ;;  %v3426_v40 = vld [vmem:[%s3810_s26 + $0x650] sm:$0xff] }
 0x5be   : > { %2779 = vst [vmem:[%s4704_s6 + $0x578] sm:$0xff] %v2523_v28  ;;  %v3427_v28 = vld [vmem:[%s3810_s26 + $0x658] sm:$0xff] }
 0x5c0   : > { %3187 = vset.pattern.permute.xlu1 %v4680_v5 }
 0x5c1   : > { %3184 = vset.pattern.permute.xlu2 %v4729_v23 }
 0x5c3   : > { %v2117_v44 = vpop.permute.xlu2 %2116 }
 0x5c4   : > { %v2526_v58 = vmul.f32 %v3406_v26, %v2117_v44  ;;  %v2527_v0 = vmul.f32 %v3407_v2, %v2117_v44  ;;  %v3428_v26 = vld [vmem:[%s3810_s26 + $0x660] sm:$0xff] }
 0x5c6   : > { %2782 = vst [vmem:[%s4704_s6 + $0x590] sm:$0xff] %v2526_v58 }
 0x5c7   : > { %2783 = vst [vmem:[%s4704_s6 + $0x598] sm:$0xff] %v2527_v0 }
 0x5c8   : > { %2225 = vperm.xlu1 %3187, %v4808_v32  }
 0x5c9   : > { %2207 = vperm.xlu2 %3184, %v4808_v32  }
 0x5ca   : > { %v2123_v5 = vpop.permute.xlu1 %2122 }
 0x5cb   : > { %v2528_v59 = vmul.f32 %v3408_v22, %v2123_v5  ;;  %v2529_v3 = vmul.f32 %v3409_v62, %v2123_v5  ;;  %v3430_v5 = vld [vmem:[%s3810_s26 + $0x680] sm:$0xff] }
 0x5cd   : > { %2784 = vst [vmem:[%s4704_s6 + $0x5a0] sm:$0xff] %v2528_v59  ;;  %v3431_v59 = vld [vmem:[%s3810_s26 + $0x688] sm:$0xff] }
 0x5ce   : > { %2785 = vst [vmem:[%s4704_s6 + $0x5a8] sm:$0xff] %v2529_v3  ;;  %v3432_v3 = vld [vmem:[%s3810_s26 + $0x690] sm:$0xff] }
 0x5d0   : > { %3190 = vset.pattern.permute.xlu1 %v4689_v14 }
 0x5d1   : > { %3186 = vset.pattern.permute.xlu2 %v4638_v21 }
 0x5d3   : > { %v2129_v7 = vpop.permute.xlu2 %2128 }
 0x5d4   : > { %v2530_v15 = vmul.f32 %v3410_v6, %v2129_v7  ;;  %v2531_v60 = vmul.f32 %v3411_v13, %v2129_v7  ;;  %v3434_v13 = vld [vmem:[%s3810_s26 + $0x6a0] sm:$0xff] }
 0x5d6   : > { %2786 = vst [vmem:[%s4704_s6 + $0x5b0] sm:$0xff] %v2530_v15 }
 0x5d7   : > { %2787 = vst [vmem:[%s4704_s6 + $0x5b8] sm:$0xff] %v2531_v60 }
 0x5d8   : > { %2243 = vperm.xlu1 %3190, %v4808_v32  }
 0x5d9   : > { %2219 = vperm.xlu2 %3186, %v4808_v32  }
 0x5da   : > { %v2135_v51 = vpop.permute.xlu1 %2134 }
 0x5db   : > { %v2532_v20 = vmul.f32 %v3412_v18, %v2135_v51  ;;  %v2533_v27 = vmul.f32 %v3413_v56, %v2135_v51  ;;  %v3435_v51 = vld [vmem:[%s3810_s26 + $0x6a8] sm:$0xff] }
 0x5dd   : > { %2788 = vst [vmem:[%s4704_s6 + $0x5c0] sm:$0xff] %v2532_v20  ;;  %v3436_v20 = vld [vmem:[%s3810_s26 + $0x6b0] sm:$0xff] }
 0x5de   : > { %2789 = vst [vmem:[%s4704_s6 + $0x5c8] sm:$0xff] %v2533_v27 }
 0x5e0   : > { %3192 = vset.pattern.permute.xlu1 %v4606_v45 }
 0x5e1   : > { %3189 = vset.pattern.permute.xlu2 %v4759_v24 }
 0x5e3   : > { %v2147_v30 = vpop.permute.xlu2 %2146 }
 0x5e4   : > { %v2536_v53 = vmul.f32 %v3414_v33, %v2147_v30  ;;  %v2537_v57 = vmul.f32 %v3415_v42, %v2147_v30  ;;  %v3438_v33 = vld [vmem:[%s3810_s26 + $0x6d0] sm:$0xff]  ;;  %v3439_v42 = vld [vmem:[%s3810_s26 + $0x6d8] sm:$0xff] }
 0x5e6   : > { %2792 = vst [vmem:[%s4704_s6 + $0x5e0] sm:$0xff] %v2536_v53 }
 0x5e7   : > { %2793 = vst [vmem:[%s4704_s6 + $0x5e8] sm:$0xff] %v2537_v57 }
 0x5e8   : > { %2256 = vperm.xlu1 %3192, %v4906_v48  }
 0x5e9   : > { %2237 = vperm.xlu2 %3189, %v4808_v32  }
 0x5ea   : > { %v2153_v45 = vpop.permute.xlu1 %2152 }
 0x5eb   : > { %v2538_v34 = vmul.f32 %v3416_v4, %v2153_v45  ;;  %v2539_v37 = vmul.f32 %v3417_v12, %v2153_v45  ;;  %v3440_v45 = vld [vmem:[%s3810_s26 + $0x6e0] sm:$0xff]  ;;  %v3441_v4 = vld [vmem:[%s3810_s26 + $0x6e8] sm:$0xff] }
 0x5ed   : > { %2794 = vst [vmem:[%s4704_s6 + $0x5f0] sm:$0xff] %v2538_v34 }
 0x5ee   : > { %2795 = vst [vmem:[%s4704_s6 + $0x5f8] sm:$0xff] %v2539_v37  ;;  %v3442_v37 = vld [vmem:[%s3810_s26 + $0x6f0] sm:$0xff] }
 0x5f0   : > { %3195 = vset.pattern.permute.xlu1 %v4629_v49 }
 0x5f1   : > { %3191 = vset.pattern.permute.xlu2 %v4653_v46 }
 0x5f3   : > { %v2160_v39 = vpop.permute.xlu2 %2159 }
 0x5f4   : > { %v2540_v25 = vmul.f32 %v3418_v35, %v2160_v39  ;;  %v2541_v63 = vmul.f32 %v3419_v52, %v2160_v39  ;;  %v3443_v35 = vld [vmem:[%s3810_s26 + $0x6f8] sm:$0xff] }
 0x5f6   : > { %2796 = vst [vmem:[%s4704_s6 + $0x600] sm:$0xff] %v2540_v25 }
 0x5f7   : > { %2797 = vst [vmem:[%s4704_s6 + $0x608] sm:$0xff] %v2541_v63  ;;  %v3444_v63 = vld [vmem:[%s3810_s26 + $0x700] sm:$0xff] }
 0x5f8   : > { %2274 = vperm.xlu1 %3195, %v4906_v48  }
 0x5f9   : > { %2249 = vperm.xlu2 %3191, %v4808_v32   ;;  %v3423_v32 = vld [vmem:[%s3810_s26 + $0x638] sm:$0xff] }
 0x5fa   : > { %v2166_v49 = vpop.permute.xlu1 %2165 }
 0x5fb   : > { %v2542_v41 = vmul.f32 %v3420_v43, %v2166_v49  ;;  %v2543_v17 = vmul.f32 %v3421_v9, %v2166_v49  ;;  %v3445_v43 = vld [vmem:[%s3810_s26 + $0x708] sm:$0xff]  ;;  %v3446_v9 = vld [vmem:[%s3810_s26 + $0x720] sm:$0xff] }
 0x5fd   : > { %2798 = vst [vmem:[%s4704_s6 + $0x610] sm:$0xff] %v2542_v41 }
 0x5fe   : > { %2799 = vst [vmem:[%s4704_s6 + $0x618] sm:$0xff] %v2543_v17 }
 0x600   : > { %3197 = vset.pattern.permute.xlu1 %v4626_v19 }
 0x601   : > { %3194 = vset.pattern.permute.xlu2 %v4611_v54  ;;  %v3425_v54 = vld [vmem:[%s3810_s26 + $0x648] sm:$0xff] }
 0x603   : > { %v2178_v11 = vpop.permute.xlu2 %2177 }
 0x604   : > { %v2546_v31 = vmul.f32 %v3422_v1, %v2178_v11  ;;  %v2547_v8 = vmul.f32 %v3423_v32, %v2178_v11  ;;  %v3447_v11 = vld [vmem:[%s3810_s26 + $0x728] sm:$0xff] }
 0x606   : > { %2802 = vst [vmem:[%s4704_s6 + $0x630] sm:$0xff] %v2546_v31  ;;  %v3448_v31 = vld [vmem:[%s3810_s26 + $0x730] sm:$0xff] }
 0x607   : > { %2803 = vst [vmem:[%s4704_s6 + $0x638] sm:$0xff] %v2547_v8  ;;  %v3449_v8 = vld [vmem:[%s3810_s26 + $0x738] sm:$0xff] }
 0x608   : > { %2286 = vperm.xlu1 %3197, %v4906_v48  }
 0x609   : > { %2268 = vperm.xlu2 %3194, %v4906_v48  }
 0x60a   : > { %v2184_v19 = vpop.permute.xlu1 %2183 }
 0x60b   : > { %v2548_v38 = vmul.f32 %v3424_v55, %v2184_v19  ;;  %v2549_v10 = vmul.f32 %v3425_v54, %v2184_v19 }
 0x60d   : > { %2804 = vst [vmem:[%s4704_s6 + $0x640] sm:$0xff] %v2548_v38  ;;  %v3450_v38 = vld [vmem:[%s3810_s26 + $0x740] sm:$0xff] }
 0x60e   : > { %2805 = vst [vmem:[%s4704_s6 + $0x648] sm:$0xff] %v2549_v10  ;;  %v3451_v10 = vld [vmem:[%s3810_s26 + $0x748] sm:$0xff] }
 0x610   : > { %3200 = vset.pattern.permute.xlu1 %v4729_v23 }
 0x611   : > { %3196 = vset.pattern.permute.xlu2 %v4644_v16  ;;  %v3429_v16 = vld [vmem:[%s3810_s26 + $0x668] sm:$0xff] }
 0x613   : > { %v2190_v36 = vpop.permute.xlu2 %2189 }
 0x614   : > { %v2550_v50 = vmul.f32 %v3426_v40, %v2190_v36  ;;  %v2551_v44 = vmul.f32 %v3427_v28, %v2190_v36 }
 0x616   : > { %2806 = vst [vmem:[%s4704_s6 + $0x650] sm:$0xff] %v2550_v50  ;;  %v3452_v50 = vld [vmem:[%s3810_s26 + $0x750] sm:$0xff] }
 0x617   : > { %2807 = vst [vmem:[%s4704_s6 + $0x658] sm:$0xff] %v2551_v44  ;;  %v3453_v44 = vld [vmem:[%s3810_s26 + $0x758] sm:$0xff] }
 0x618   : > { %2304 = vperm.xlu1 %3200, %v4906_v48  }
 0x619   : > { %2280 = vperm.xlu2 %3196, %v4906_v48  }
 0x61a   : > { %v2196_v23 = vpop.permute.xlu1 %2195 }
 0x61b   : > { %v2552_v58 = vmul.f32 %v3428_v26, %v2196_v23  ;;  %v2553_v2 = vmul.f32 %v3429_v16, %v2196_v23 }
 0x61d   : > { %2808 = vst [vmem:[%s4704_s6 + $0x660] sm:$0xff] %v2552_v58  ;;  %v3454_v58 = vld [vmem:[%s3810_s26 + $0x770] sm:$0xff] }
 0x61e   : > { %2809 = vst [vmem:[%s4704_s6 + $0x668] sm:$0xff] %v2553_v2  ;;  %v3455_v2 = vld [vmem:[%s3810_s26 + $0x778] sm:$0xff] }
 0x620   : > { %3202 = vset.pattern.permute.xlu1 %v4638_v21 }
 0x621   : > { %3199 = vset.pattern.permute.xlu2 %v4641_v47  ;;  %v3433_v47 = vld [vmem:[%s3810_s26 + $0x698] sm:$0xff] }
 0x623   : > { %v2208_v0 = vpop.permute.xlu2 %2207 }
 0x624   : > { %v2556_v22 = vmul.f32 %v3430_v5, %v2208_v0  ;;  %v2557_v62 = vmul.f32 %v3431_v59, %v2208_v0 }
 0x626   : > { %2812 = vst [vmem:[%s4704_s6 + $0x680] sm:$0xff] %v2556_v22  ;;  %v3456_v22 = vld [vmem:[%s3810_s26 + $0x780] sm:$0xff] }
 0x627   : > { %2813 = vst [vmem:[%s4704_s6 + $0x688] sm:$0xff] %v2557_v62  ;;  %v3457_v62 = vld [vmem:[%s3810_s26 + $0x788] sm:$0xff] }
 0x628   : > { %2316 = vperm.xlu1 %3202, %v4906_v48  }
 0x629   : > { %2298 = vperm.xlu2 %3199, %v4906_v48  }
 0x62a   : > { %v2214_v21 = vpop.permute.xlu1 %2213 }
 0x62b   : > { %v2558_v7 = vmul.f32 %v3432_v3, %v2214_v21  ;;  %v2559_v6 = vmul.f32 %v3433_v47, %v2214_v21 }
 0x62d   : > { %2814 = vst [vmem:[%s4704_s6 + $0x690] sm:$0xff] %v2558_v7  ;;  %v3458_v7 = vld [vmem:[%s3810_s26 + $0x790] sm:$0xff] }
 0x62e   : > { %2815 = vst [vmem:[%s4704_s6 + $0x698] sm:$0xff] %v2559_v6  ;;  %v3459_v6 = vld [vmem:[%s3810_s26 + $0x798] sm:$0xff] }
 0x630   : > { %3204 = vset.pattern.permute.xlu1 %v4759_v24 }
 0x631   : > { %3201 = vset.pattern.permute.xlu2 %v4668_v61  ;;  %v3437_v61 = vld [vmem:[%s3810_s26 + $0x6b8] sm:$0xff] }
 0x633   : > { %v2220_v15 = vpop.permute.xlu2 %2219 }
 0x634   : > { %v2560_v60 = vmul.f32 %v3434_v13, %v2220_v15  ;;  %v2561_v18 = vmul.f32 %v3435_v51, %v2220_v15 }
 0x636   : > { %2816 = vst [vmem:[%s4704_s6 + $0x6a0] sm:$0xff] %v2560_v60  ;;  %v3460_v60 = vld [vmem:[%s3810_s26 + $0x7a0] sm:$0xff] }
 0x637   : > { %2817 = vst [vmem:[%s4704_s6 + $0x6a8] sm:$0xff] %v2561_v18  ;;  %v3461_v18 = vld [vmem:[%s3810_s26 + $0x7a8] sm:$0xff] }
 0x638   : > { %2334 = vperm.xlu1 %3204, %v4906_v48  }
 0x639   : > { %2310 = vperm.xlu2 %3201, %v4906_v48  }
 0x63a   : > { %v2226_v24 = vpop.permute.xlu1 %2225 }
 0x63b   : > { %v2562_v56 = vmul.f32 %v3436_v20, %v2226_v24  ;;  %v2563_v27 = vmul.f32 %v3437_v61, %v2226_v24 }
 0x63d   : > { %2818 = vst [vmem:[%s4704_s6 + $0x6b0] sm:$0xff] %v2562_v56  ;;  %v3462_v56 = vld [vmem:[%s3810_s26 + $0x7c0] sm:$0xff] }
 0x63e   : > { %2819 = vst [vmem:[%s4704_s6 + $0x6b8] sm:$0xff] %v2563_v27  ;;  %v3463_v27 = vld [vmem:[%s3810_s26 + $0x7c8] sm:$0xff] }
 0x640   : > { %3206 = vset.pattern.permute.xlu1 %v4653_v46 }
 0x641   : > { %3203 = vset.pattern.permute.xlu2 %v4665_v29 }
 0x643   : > { %v2238_v30 = vpop.permute.xlu2 %2237 }
 0x644   : > { %v2566_v53 = vmul.f32 %v3438_v33, %v2238_v30  ;;  %v2567_v57 = vmul.f32 %v3439_v42, %v2238_v30 }
 0x646   : > { %2822 = vst [vmem:[%s4704_s6 + $0x6d0] sm:$0xff] %v2566_v53  ;;  %v3464_v53 = vld [vmem:[%s3810_s26 + $0x7d0] sm:$0xff] }
 0x647   : > { %2823 = vst [vmem:[%s4704_s6 + $0x6d8] sm:$0xff] %v2567_v57  ;;  %v3465_v57 = vld [vmem:[%s3810_s26 + $0x7d8] sm:$0xff] }
 0x648   : > { %2346 = vperm.xlu1 %3206, %v4906_v48  }
 0x649   : > { %2328 = vperm.xlu2 %3203, %v4906_v48  }
 0x64a   : > { %v2244_v46 = vpop.permute.xlu1 %2243 }
 0x64b   : > { %v2568_v29 = vmul.f32 %v3440_v45, %v2244_v46  ;;  %v2569_v34 = vmul.f32 %v3441_v4, %v2244_v46 }
 0x64d   : > { %2824 = vst [vmem:[%s4704_s6 + $0x6e0] sm:$0xff] %v2568_v29  ;;  %v3466_v29 = vld [vmem:[%s3810_s26 + $0x7e0] sm:$0xff] }
 0x64e   : > { %2825 = vst [vmem:[%s4704_s6 + $0x6e8] sm:$0xff] %v2569_v34  ;;  %v3467_v34 = vld [vmem:[%s3810_s26 + $0x7e8] sm:$0xff] }
 0x651   : > { %3205 = vset.pattern.permute.xlu2 %v4689_v14 }
 0x653   : > { %v2250_v12 = vpop.permute.xlu2 %2249 }
 0x654   : > { %v2570_v39 = vmul.f32 %v3442_v37, %v2250_v12  ;;  %v2571_v25 = vmul.f32 %v3443_v35, %v2250_v12 }
 0x656   : > { %2826 = vst [vmem:[%s4704_s6 + $0x6f0] sm:$0xff] %v2570_v39  ;;  %v3468_v39 = vld [vmem:[%s3810_s26 + $0x7f0] sm:$0xff] }
 0x657   : > { %2827 = vst [vmem:[%s4704_s6 + $0x6f8] sm:$0xff] %v2571_v25  ;;  %v3469_v25 = vld [vmem:[%s3810_s26 + $0x7f8] sm:$0xff] }
 0x659   : > { %2340 = vperm.xlu2 %3205, %v4906_v48  }
 0x65a   : > { %v2257_v52 = vpop.permute.xlu1 %2256 }
 0x65b   : > { %v2572_v49 = vmul.f32 %v3444_v63, %v2257_v52  ;;  %v2573_v14 = vmul.f32 %v3445_v43, %v2257_v52 }
 0x65d   : > { %2828 = vst [vmem:[%s4704_s6 + $0x700] sm:$0xff] %v2572_v49 }
 0x65e   : > { %2829 = vst [vmem:[%s4704_s6 + $0x708] sm:$0xff] %v2573_v14 }
 0x663   : > { %v2269_v41 = vpop.permute.xlu2 %2268 }
 0x664   : > { %v2576_v17 = vmul.f32 %v3446_v9, %v2269_v41  ;;  %v2577_v1 = vmul.f32 %v3447_v11, %v2269_v41 }
 0x666   : > { %2832 = vst [vmem:[%s4704_s6 + $0x720] sm:$0xff] %v2576_v17 }
 0x667   : > { %2833 = vst [vmem:[%s4704_s6 + $0x728] sm:$0xff] %v2577_v1 }
 0x66a   : > { %v2275_v48 = vpop.permute.xlu1 %2274 }
 0x66b   : > { %v2578_v32 = vmul.f32 %v3448_v31, %v2275_v48  ;;  %v2579_v19 = vmul.f32 %v3449_v8, %v2275_v48 }
 0x66d   : > { %2834 = vst [vmem:[%s4704_s6 + $0x730] sm:$0xff] %v2578_v32 }
 0x66e   : > { %2835 = vst [vmem:[%s4704_s6 + $0x738] sm:$0xff] %v2579_v19 }
 0x673   : > { %v2281_v55 = vpop.permute.xlu2 %2280 }
 0x674   : > { %v2580_v54 = vmul.f32 %v3450_v38, %v2281_v55  ;;  %v2581_v36 = vmul.f32 %v3451_v10, %v2281_v55 }
 0x676   : > { %2836 = vst [vmem:[%s4704_s6 + $0x740] sm:$0xff] %v2580_v54 }
 0x677   : > { %2837 = vst [vmem:[%s4704_s6 + $0x748] sm:$0xff] %v2581_v36 }
 0x67a   : > { %v2287_v40 = vpop.permute.xlu1 %2286 }
 0x67b   : > { %v2582_v28 = vmul.f32 %v3452_v50, %v2287_v40  ;;  %v2583_v23 = vmul.f32 %v3453_v44, %v2287_v40 }
 0x67d   : > { %2838 = vst [vmem:[%s4704_s6 + $0x750] sm:$0xff] %v2582_v28 }
 0x67e   : > { %2839 = vst [vmem:[%s4704_s6 + $0x758] sm:$0xff] %v2583_v23 }
 0x683   : > { %v2299_v26 = vpop.permute.xlu2 %2298 }
 0x684   : > { %v2586_v16 = vmul.f32 %v3454_v58, %v2299_v26  ;;  %v2587_v0 = vmul.f32 %v3455_v2, %v2299_v26 }
 0x686   : > { %2842 = vst [vmem:[%s4704_s6 + $0x770] sm:$0xff] %v2586_v16 }
 0x687   : > { %2843 = vst [vmem:[%s4704_s6 + $0x778] sm:$0xff] %v2587_v0 }
 0x68a   : > { %v2305_v5 = vpop.permute.xlu1 %2304 }
 0x68b   : > { %v2588_v59 = vmul.f32 %v3456_v22, %v2305_v5  ;;  %v2589_v21 = vmul.f32 %v3457_v62, %v2305_v5 }
 0x68d   : > { %2844 = vst [vmem:[%s4704_s6 + $0x780] sm:$0xff] %v2588_v59 }
 0x68e   : > { %2845 = vst [vmem:[%s4704_s6 + $0x788] sm:$0xff] %v2589_v21 }
 0x693   : > { %v2311_v3 = vpop.permute.xlu2 %2310 }
 0x694   : > { %v2590_v47 = vmul.f32 %v3458_v7, %v2311_v3  ;;  %v2591_v15 = vmul.f32 %v3459_v6, %v2311_v3 }
 0x696   : > { %2846 = vst [vmem:[%s4704_s6 + $0x790] sm:$0xff] %v2590_v47 }
 0x697   : > { %2847 = vst [vmem:[%s4704_s6 + $0x798] sm:$0xff] %v2591_v15 }
 0x69a   : > { %v2317_v13 = vpop.permute.xlu1 %2316 }
 0x69b   : > { %v2592_v51 = vmul.f32 %v3460_v60, %v2317_v13  ;;  %v2593_v24 = vmul.f32 %v3461_v18, %v2317_v13 }
 0x69d   : > { %2848 = vst [vmem:[%s4704_s6 + $0x7a0] sm:$0xff] %v2592_v51 }
 0x69e   : > { %2849 = vst [vmem:[%s4704_s6 + $0x7a8] sm:$0xff] %v2593_v24 }
 0x6a3   : > { %v2329_v20 = vpop.permute.xlu2 %2328 }
 0x6a4   : > { %v2596_v61 = vmul.f32 %v3462_v56, %v2329_v20  ;;  %v2597_v30 = vmul.f32 %v3463_v27, %v2329_v20 }
 0x6a6   : > { %2852 = vst [vmem:[%s4704_s6 + $0x7c0] sm:$0xff] %v2596_v61 }
 0x6a7   : > { %2853 = vst [vmem:[%s4704_s6 + $0x7c8] sm:$0xff] %v2597_v30 }
 0x6aa   : > { %v2335_v33 = vpop.permute.xlu1 %2334 }
 0x6ab   : > { %v2598_v42 = vmul.f32 %v3464_v53, %v2335_v33  ;;  %v2599_v46 = vmul.f32 %v3465_v57, %v2335_v33 }
 0x6ad   : > { %2854 = vst [vmem:[%s4704_s6 + $0x7d0] sm:$0xff] %v2598_v42 }
 0x6ae   : > { %2855 = vst [vmem:[%s4704_s6 + $0x7d8] sm:$0xff] %v2599_v46 }
 0x6b3   : > { %v2341_v45 = vpop.permute.xlu2 %2340 }
 0x6b4   : > { %v2600_v4 = vmul.f32 %v3466_v29, %v2341_v45  ;;  %v2601_v12 = vmul.f32 %v3467_v34, %v2341_v45 }
 0x6b6   : > { %2856 = vst [vmem:[%s4704_s6 + $0x7e0] sm:$0xff] %v2600_v4 }
 0x6b7   : > { %2857 = vst [vmem:[%s4704_s6 + $0x7e8] sm:$0xff] %v2601_v12 }
 0x6ba   : > { %v2347_v37 = vpop.permute.xlu1 %2346 }
 0x6bb   : > { %v2602_v35 = vmul.f32 %v3468_v39, %v2347_v37  ;;  %v2603_v52 = vmul.f32 %v3469_v25, %v2347_v37 }
 0x6bd   : > { %2858 = vst [vmem:[%s4704_s6 + $0x7f0] sm:$0xff] %v2602_v35 }
 0x6be   : > { %2859 = vst [vmem:[%s4704_s6 + $0x7f8] sm:$0xff] %v2603_v52 }
 0x6bf   : > { %3617 = shalt.err (!%p3614_p11)
}
 0x6c0   : > { %s3671_s12 = smov 256   ;;  %s3672_s26 = smov 16  }
 0x6c1   : > { %3021 = dma.vmem_to_hbm [thread:$0]  (%p3776_p7), %s2875_s30, 32768, %s2877_s10, %s2861_s22, %s3671_s12, %s3671_s12, %s3672_s26  }
 0x6c2 PF: > { %s2891_s6 = sand.u32 1, %s3652_s18   ;;  %p5531_p12 = scmp.ge.s32.totalorder %s3664_s21, 2 }
 0x6c3   : > { %s2892_s16 = scalar_lea.sflag [#allocation4], %s2891_s6 }
 0x6c4   : > { %p3038_p13 = pnand %p5531_p12, %p3738_p6 }
 0x6c6   : > { %p3039_p0 = pneg %p3038_p13 }
 0x6c8   : > { %3647 = dma.done.wait (%p3039_p0), %s2892_s16, 32768  }
 0x6c9   : > { %3649 = vsyncadd (%p3039_p0), %s2892_s16, 4294934528  ;;  %p20_p3 = scmp.ge.s32.totalorder %s3762_s17, 4   ;;  %s5532_s18 = smov %s3656_s19 }
 0x6ca   : > { %s5533_s19 = smov %s3660_s20  ;;  %s5534_s20 = smov %s3772_s27 }
 0x6cb   : > { %s5535_s21 = smov %s3762_s17  ;;  %22 = sbr.rel (!%p20_p3) target bundleno = 7 (0x7), region = 97 }
 0x6d0   :  { %2898 = vsyncpa [#allocation3], 1 }
 0x6d1   :  { %2900 = vsyncpa [#allocation3 + $0x1], 1 }
 0x6d2   :  { %2901 = vsyncpa [#allocation6], 1 }
 0x6d3   :  { %2902 = vsyncpa [#allocation9], 1 }
 0x6d4   :  { %2903 = vsyncpa [#allocation4], 1 }
 0x6d5   :  { %2905 = vsyncpa [#allocation4 + $0x1], 1 }

</bundles_post_ra>
